<compile_context>
chip_gen: v6e
topology: v6e:2x2x1
jax: 0.10.0
libtpu: 0.0.40
codegen_flags: <defaults>
</compile_context>

<pallas_src>
import functools

import jax
import jax.numpy as jnp
from jax.experimental import pallas as pl
from jax.experimental.pallas import tpu as pltpu

LANE = 128


def _round_up(v, m):
    return ((v + m - 1) // m) * m


# ----------------------------------------------------------------------------
# Pallas kernel: one fused BasicBlock over a tile of `bt` batch elements
# ----------------------------------------------------------------------------
def _basic_block_kernel(*refs, stride, bt, Ho, Wo, Cpi, Cpo, has_shortcut):
    if has_shortcut:
        (xph_ref, w1_ref, b1_ref, w2_ref, b2_ref,
         wsc_ref, bsc_ref, o_ref, hpad_ref) = refs
    else:
        (xph_ref, w1_ref, b1_ref, w2_ref, b2_ref, o_ref, hpad_ref) = refs

    s = stride
    M = bt * Ho * Wo

    def x_tap(kh, kw):
        # Tap of the (spatially padded) input at padded offset (kh, kw) with the conv
        # stride.  Thanks to the stride-phase decomposition done in the wrapper this is
        # always a unit-stride static slice of one phase.
        ph = (kh % s) * s + (kw % s)
        oh, ow = kh // s, kw // s
        t = xph_ref[:, ph:ph + 1, oh:oh + Ho, ow:ow + Wo, :]   # (bt,1,Ho,Wo,Cpi) bf16
        return t.reshape(M, Cpi)

    # ---- conv1 (3x3, stride s, pad 1), bn1 scale folded into w1: 9 bf16 matmuls ----
    acc = jnp.zeros((M, Cpo), jnp.float32)
    for kh in range(3):
        for kw in range(3):
            acc = acc + jnp.dot(x_tap(kh, kw), w1_ref[kh * 3 + kw],
                                preferred_element_type=jnp.float32)
    h = jnp.maximum(acc + b1_ref[...], 0.0)                     # bn1 bias + relu (f32)

    # Stage h (bf16) in a zero-ringed VMEM scratch so conv2's halo taps are plain
    # slices.  Only the halo ring is re-zeroed; the interior is fully overwritten.
    zrow = jnp.zeros((bt, 1, Wo + 2, Cpo), hpad_ref.dtype)
    zcol = jnp.zeros((bt, Ho + 2, 1, Cpo), hpad_ref.dtype)
    hpad_ref[:, 0:1, :, :] = zrow
    hpad_ref[:, Ho + 1:Ho + 2, :, :] = zrow
    hpad_ref[:, :, 0:1, :] = zcol
    hpad_ref[:, :, Wo + 1:Wo + 2, :] = zcol
    hpad_ref[:, 1:1 + Ho, 1:1 + Wo, :] = (
        h.astype(jnp.bfloat16).reshape(bt, Ho, Wo, Cpo))

    # ---- conv2 (3x3, stride 1, pad 1), bn2 scale folded into w2 ----
    acc2 = jnp.zeros((M, Cpo), jnp.float32)
    for kh in range(3):
        for kw in range(3):
            t = hpad_ref[:, kh:kh + Ho, kw:kw + Wo, :].reshape(M, Cpo)
            acc2 = acc2 + jnp.dot(t, w2_ref[kh * 3 + kw],
                                  preferred_element_type=jnp.float32)
    y = acc2 + b2_ref[...]

    # ---- residual path (both variants statically specialized, no dummy DMA) ----
    xr = x_tap(1, 1)   # original (unpadded) x sampled with stride s
    if has_shortcut:   # 1x1 conv, stride s, + folded BN
        res = jnp.dot(xr, wsc_ref[...],
                      preferred_element_type=jnp.float32) + bsc_ref[...]
    else:              # identity (stride == 1, Cpi == Cpo)
        res = xr.astype(jnp.float32)

    o_ref[...] = jnp.maximum(y + res, 0.0).reshape(bt, Ho, Wo, Cpo)


# ----------------------------------------------------------------------------
# Plain-JAX layout plumbing (input read/written once; no im2col HBM blow-up)
# ----------------------------------------------------------------------------
def _phase_decompose(x_nchw, cpi, stride, k=3, pad=1):
    """NCHW f32 -> (N, stride^2, Hph, Wph, cpi) bf16: spatially padded, channel padded
    to 128 lanes, split into stride-phases so every conv tap is a unit-stride slice."""
    N, C, H, W = x_nchw.shape
    s = stride
    x = jnp.transpose(x_nchw, (0, 2, 3, 1)).astype(jnp.bfloat16)      # NHWC bf16
    x = jnp.pad(x, ((0, 0), (0, 0), (0, 0), (0, cpi - C)))            # lane pad
    xp = jnp.pad(x, ((0, 0), (pad, pad), (pad, pad), (0, 0)))         # spatial pad
    Ho = (H + 2 * pad - k) // s + 1
    Wo = (W + 2 * pad - k) // s + 1
    Hph = (k - 1) // s + Ho
    Wph = (k - 1) // s + Wo
    phases = []
    for p in range(s):
        for q in range(s):
            ph = xp[:, p::s, q::s, :][:, :Hph, :Wph, :]
            ph = jnp.pad(ph, ((0, 0), (0, Hph - ph.shape[1]),
                              (0, Wph - ph.shape[2]), (0, 0)))
            phases.append(ph)
    xph = jnp.stack(phases, axis=1)                                    # (N,s*s,Hph,Wph,cpi)
    return xph, Ho, Wo


def _fold_bn(bnp, cpad, eps=1e-5):
    gamma, beta, mean, var = bnp
    c = gamma.shape[0]
    inv = gamma / jnp.sqrt(var + eps)
    scale = jnp.zeros((cpad,), jnp.float32).at[:c].set(inv)
    bias = jnp.zeros((1, cpad), jnp.float32).at[0, :c].set(beta - mean * inv)
    return scale, bias


def _pack_conv3x3(w, cpi, cpo, scale):
    # PyTorch (Cout, Cin, 3, 3) -> (9, cpi, cpo) bf16, zero-padded, tap-major,
    # with the folded BN scale applied per output channel.
    cout, cin = w.shape[0], w.shape[1]
    wk = jnp.transpose(w, (2, 3, 1, 0)).reshape(9, cin, cout)
    out = jnp.zeros((9, cpi, cpo), jnp.float32).at[:, :cin, :cout].set(wk)
    return (out * scale[None, None, :]).astype(jnp.bfloat16)


def _pack_conv1x1(w, cpi, cpo, scale):
    cout, cin = w.shape[0], w.shape[1]
    wk = jnp.transpose(w[:, :, 0, 0], (1, 0))                          # (cin, cout)
    out = jnp.zeros((cpi, cpo), jnp.float32).at[:cin, :cout].set(wk)
    return (out * scale[None, :]).astype(jnp.bfloat16)


def _pick_batch_tile(N, Ho, Wo, Hph, Wph, cpi, cpo, stride):
    """Largest divisor of N that keeps per-step VMEM and matmul M modest."""
    per_b = (2 * stride * stride * Hph * Wph * cpi * 2    # xph bf16, double-buffered
             + 2 * Ho * Wo * cpo * 4                      # output f32, double-buffered
             + (Ho + 2) * (Wo + 2) * cpo * 2)             # bf16 staging scratch
    bt = 1
    for d in range(1, N + 1):
        if N % d:
            continue
        if d * Ho * Wo > 1024:                 # keep f32 accumulators small
            continue
        if d * per_b > 8 * 1024 * 1024:        # VMEM headroom (v7x: 64 MiB total)
            continue
        if N >= 4 and N // d < 2:              # keep >= 2 grid steps for megacore
            continue
        bt = d
    return bt


def basic_block_forward(x_nchw, p):
    """Fused BasicBlock forward: (N, Cin, H, W) f32 -> (N, Cout, Ho, Wo) f32."""
    N, cin, H, W = x_nchw.shape
    cout = p["w1"].shape[0]
    stride = p["stride"]
    has_sc = p["has_shortcut"]
    cpi = _round_up(cin, LANE)
    cpo = _round_up(cout, LANE)

    xph, Ho, Wo = _phase_decompose(x_nchw, cpi, stride)
    Hph, Wph = xph.shape[2], xph.shape[3]

    s1, b1 = _fold_bn(p["bn1"], cpo)
    s2, b2 = _fold_bn(p["bn2"], cpo)
    w1 = _pack_conv3x3(p["w1"], cpi, cpo, s1)
    w2 = _pack_conv3x3(p["w2"], cpo, cpo, s2)

    bt = _pick_batch_tile(N, Ho, Wo, Hph, Wph, cpi, cpo, stride)

    args = [xph, w1, b1, w2, b2]
    in_specs = [
        pl.BlockSpec((bt, stride * stride, Hph, Wph, cpi),
                     lambda n: (n, 0, 0, 0, 0)),
        pl.BlockSpec((9, cpi, cpo), lambda n: (0, 0, 0)),
        pl.BlockSpec((1, cpo), lambda n: (0, 0)),
        pl.BlockSpec((9, cpo, cpo), lambda n: (0, 0, 0)),
        pl.BlockSpec((1, cpo), lambda n: (0, 0)),
    ]
    if has_sc:
        ssc, bsc = _fold_bn(p["bn_sc"], cpo)
        args += [_pack_conv1x1(p["wsc"], cpi, cpo, ssc), bsc]
        in_specs += [
            pl.BlockSpec((cpi, cpo), lambda n: (0, 0)),
            pl.BlockSpec((1, cpo), lambda n: (0, 0)),
        ]

    kernel = functools.partial(
        _basic_block_kernel, stride=stride, bt=bt, Ho=Ho, Wo=Wo,
        Cpi=cpi, Cpo=cpo, has_shortcut=has_sc)

    out = pl.pallas_call(
        kernel,
        out_shape=jax.ShapeDtypeStruct((N, Ho, Wo, cpo), jnp.float32),
        grid=(N // bt,),
        in_specs=in_specs,
        out_specs=pl.BlockSpec((bt, Ho, Wo, cpo), lambda n: (n, 0, 0, 0)),
        scratch_shapes=[pltpu.VMEM((bt, Ho + 2, Wo + 2, cpo), jnp.bfloat16)],
        compiler_params=pltpu.CompilerParams(
            dimension_semantics=("parallel",)),
    )(*args)

    # Drop the lane padding, return PyTorch's NCHW layout.
    return jnp.transpose(out[..., :cout], (0, 3, 1, 2))


# ----------------------------------------------------------------------------
# Parameter init (PyTorch layouts) and a pure-JAX f32 reference
# ----------------------------------------------------------------------------
def _init_bn(key, c):
    k1, k2, k3, k4 = jax.random.split(key, 4)
    gamma = 1.0 + 0.1 * jax.random.normal(k1, (c,), jnp.float32)
    beta = 0.1 * jax.random.normal(k2, (c,), jnp.float32)
    mean = 0.1 * jax.random.normal(k3, (c,), jnp.float32)
    var = jax.random.uniform(k4, (c,), jnp.float32, minval=0.5, maxval=1.5)
    return gamma, beta, mean, var


def init_basic_block(key, in_channel, out_channel, stride):
    ks = jax.random.split(key, 6)
    p = {
        "stride": int(stride),
        "has_shortcut": (stride != 1 or in_channel != out_channel),
        "w1": 0.1 * jax.random.normal(ks[0], (out_channel, in_channel, 3, 3), jnp.float32),
        "bn1": _init_bn(ks[1], out_channel),
        "w2": 0.1 * jax.random.normal(ks[2], (out_channel, out_channel, 3, 3), jnp.float32),
        "bn2": _init_bn(ks[3], out_channel),
    }
    if p["has_shortcut"]:
        p["wsc"] = 0.1 * jax.random.normal(ks[4], (out_channel, in_channel, 1, 1), jnp.float32)
        p["bn_sc"] = _init_bn(ks[5], out_channel)
    return p


def _bn_ref(x, bnp, eps=1e-5):
    gamma, beta, mean, var = bnp
    inv = gamma / jnp.sqrt(var + eps)
    return x * inv[None, :, None, None] + (beta - mean * inv)[None, :, None, None]


def basic_block_ref(x, p):
    def conv(v, w, stride, pad):
        return jax.lax.conv_general_dilated(
            v, w, window_strides=(stride, stride),
            padding=[(pad, pad), (pad, pad)],
            dimension_numbers=("NCHW", "OIHW", "NCHW"))
    residual = (_bn_ref(conv(x, p["wsc"], p["stride"], 0), p["bn_sc"])
                if p["has_shortcut"] else x)
    h = jax.nn.relu(_bn_ref(conv(x, p["w1"], p["stride"], 1), p["bn1"]))
    y = _bn_ref(conv(h, p["w2"], 1, 1), p["bn2"])
    return jax.nn.relu(y + residual)


# ----------------------------------------------------------------------------
if __name__ == "__main__":
    key = jax.random.PRNGKey(0)
    k_x1, k_p1, k_x2, k_p2 = jax.random.split(key, 4)

    # Case 1: projection shortcut (stride=2, channel change).  x: (2, 4, 16, 16) NCHW.
    x1 = jax.random.normal(k_x1, (2, 4, 16, 16), jnp.float32)
    p1 = init_basic_block(k_p1, in_channel=4, out_channel=8, stride=2)
    out1 = jax.block_until_ready(jax.jit(lambda v: basic_block_forward(v, p1))(x1))
    ref1 = basic_block_ref(x1, p1)
    assert out1.shape == ref1.shape == (2, 8, 8, 8)
    assert jnp.max(jnp.abs(out1 - ref1)) < 5e-2, float(jnp.max(jnp.abs(out1 - ref1)))

    # Case 2: identity shortcut (stride=1, same channels).  x: (2, 8, 16, 16) NCHW.
    x2 = jax.random.normal(k_x2, (2, 8, 16, 16), jnp.float32)
    p2 = init_basic_block(k_p2, in_channel=8, out_channel=8, stride=1)
    out2 = jax.block_until_ready(jax.jit(lambda v: basic_block_forward(v, p2))(x2))
    ref2 = basic_block_ref(x2, p2)
    assert out2.shape == ref2.shape == (2, 8, 16, 16)
    assert jnp.max(jnp.abs(out2 - ref2)) < 5e-2, float(jnp.max(jnp.abs(out2 - ref2)))

    print("KERNEL_OK")
</pallas_src>

<mosaic_0001>
module attributes {stable_mosaic.version = 11 : i64} {
  func.func @_basic_block_kernel(%arg0: i32, %arg1: memref<2x4x9x9x128xbf16, #tpu.memory_space<vmem>>, %arg2: memref<9x128x128xbf16, #tpu.memory_space<vmem>>, %arg3: memref<1x128xf32, #tpu.memory_space<vmem>>, %arg4: memref<9x128x128xbf16, #tpu.memory_space<vmem>>, %arg5: memref<1x128xf32, #tpu.memory_space<vmem>>, %arg6: memref<128x128xbf16, #tpu.memory_space<vmem>>, %arg7: memref<1x128xf32, #tpu.memory_space<vmem>>, %arg8: memref<2x8x8x128xf32, #tpu.memory_space<vmem>>, %arg9: memref<2x10x10x128xbf16, #tpu.memory_space<vmem>>) attributes {dimension_semantics = [#tpu.dimension_semantics<parallel>], iteration_bounds = array<i64: 1>, scalar_prefetch = 0 : i64, scratch_operands = 1 : i64, tpu.core_type = #tpu.core_type<tc>, window_params = [{transform_indices = @transform_0, window_bounds = array<i64: 2, 4, 9, 9, 128>}, {pipeline_mode = #tpu.pipeline_mode<synchronous>, transform_indices = @transform_1, window_bounds = array<i64: 9, 128, 128>}, {pipeline_mode = #tpu.pipeline_mode<synchronous>, transform_indices = @transform_2, window_bounds = array<i64: 1, 128>}, {pipeline_mode = #tpu.pipeline_mode<synchronous>, transform_indices = @transform_3, window_bounds = array<i64: 9, 128, 128>}, {pipeline_mode = #tpu.pipeline_mode<synchronous>, transform_indices = @transform_4, window_bounds = array<i64: 1, 128>}, {pipeline_mode = #tpu.pipeline_mode<synchronous>, transform_indices = @transform_5, window_bounds = array<i64: 128, 128>}, {pipeline_mode = #tpu.pipeline_mode<synchronous>, transform_indices = @transform_6, window_bounds = array<i64: 1, 128>}, {transform_indices = @transform_7, window_bounds = array<i64: 2, 8, 8, 128>}]} {
    %cst = arith.constant 0.000000e+00 : f32
    %0 = vector.broadcast %cst : f32 to vector<128x128xf32>
    %c0 = arith.constant 0 : index
    %c0_0 = arith.constant 0 : index
    %c0_1 = arith.constant 0 : index
    %c0_2 = arith.constant 0 : index
    %c0_3 = arith.constant 0 : index
    %1 = vector.load %arg1[%c0, %c0_0, %c0_1, %c0_2, %c0_3] : memref<2x4x9x9x128xbf16, #tpu.memory_space<vmem>>, vector<2x1x8x8x128xbf16>
    %2 = vector.shape_cast %1 : vector<2x1x8x8x128xbf16> to vector<128x128xbf16>
    %c0_4 = arith.constant 0 : index
    %c0_5 = arith.constant 0 : index
    %c0_6 = arith.constant 0 : index
    %3 = vector.load %arg2[%c0_4, %c0_5, %c0_6] : memref<9x128x128xbf16, #tpu.memory_space<vmem>>, vector<1x128x128xbf16>
    %4 = vector.shape_cast %3 : vector<1x128x128xbf16> to vector<128x128xbf16>
    %cst_7 = arith.constant dense<0.000000e+00> : vector<128x128xf32>
    %5 = tpu.matmul %2, %4, %cst_7 {dimension_numbers = #tpu.dot_dimension_numbers<[1], [0], [0], [1], [0, 0, 1, 1], [], []>} : vector<128x128xbf16>, vector<128x128xbf16>, vector<128x128xf32> -> vector<128x128xf32>
    %6 = arith.addf %0, %5 : vector<128x128xf32>
    %c0_8 = arith.constant 0 : index
    %c1 = arith.constant 1 : index
    %c0_9 = arith.constant 0 : index
    %c0_10 = arith.constant 0 : index
    %c0_11 = arith.constant 0 : index
    %7 = vector.load %arg1[%c0_8, %c1, %c0_9, %c0_10, %c0_11] : memref<2x4x9x9x128xbf16, #tpu.memory_space<vmem>>, vector<2x1x8x8x128xbf16>
    %8 = vector.shape_cast %7 : vector<2x1x8x8x128xbf16> to vector<128x128xbf16>
    %c1_12 = arith.constant 1 : index
    %c0_13 = arith.constant 0 : index
    %c0_14 = arith.constant 0 : index
    %9 = vector.load %arg2[%c1_12, %c0_13, %c0_14] : memref<9x128x128xbf16, #tpu.memory_space<vmem>>, vector<1x128x128xbf16>
    %10 = vector.shape_cast %9 : vector<1x128x128xbf16> to vector<128x128xbf16>
    %cst_15 = arith.constant dense<0.000000e+00> : vector<128x128xf32>
    %11 = tpu.matmul %8, %10, %cst_15 {dimension_numbers = #tpu.dot_dimension_numbers<[1], [0], [0], [1], [0, 0, 1, 1], [], []>} : vector<128x128xbf16>, vector<128x128xbf16>, vector<128x128xf32> -> vector<128x128xf32>
    %12 = arith.addf %6, %11 : vector<128x128xf32>
    %c0_16 = arith.constant 0 : index
    %c0_17 = arith.constant 0 : index
    %c0_18 = arith.constant 0 : index
    %c1_19 = arith.constant 1 : index
    %c0_20 = arith.constant 0 : index
    %13 = vector.load %arg1[%c0_16, %c0_17, %c0_18, %c1_19, %c0_20] : memref<2x4x9x9x128xbf16, #tpu.memory_space<vmem>>, vector<2x1x8x8x128xbf16>
    %14 = vector.shape_cast %13 : vector<2x1x8x8x128xbf16> to vector<128x128xbf16>
    %c2 = arith.constant 2 : index
    %c0_21 = arith.constant 0 : index
    %c0_22 = arith.constant 0 : index
    %15 = vector.load %arg2[%c2, %c0_21, %c0_22] : memref<9x128x128xbf16, #tpu.memory_space<vmem>>, vector<1x128x128xbf16>
    %16 = vector.shape_cast %15 : vector<1x128x128xbf16> to vector<128x128xbf16>
    %cst_23 = arith.constant dense<0.000000e+00> : vector<128x128xf32>
    %17 = tpu.matmul %14, %16, %cst_23 {dimension_numbers = #tpu.dot_dimension_numbers<[1], [0], [0], [1], [0, 0, 1, 1], [], []>} : vector<128x128xbf16>, vector<128x128xbf16>, vector<128x128xf32> -> vector<128x128xf32>
    %18 = arith.addf %12, %17 : vector<128x128xf32>
    %c0_24 = arith.constant 0 : index
    %c2_25 = arith.constant 2 : index
    %c0_26 = arith.constant 0 : index
    %c0_27 = arith.constant 0 : index
    %c0_28 = arith.constant 0 : index
    %19 = vector.load %arg1[%c0_24, %c2_25, %c0_26, %c0_27, %c0_28] : memref<2x4x9x9x128xbf16, #tpu.memory_space<vmem>>, vector<2x1x8x8x128xbf16>
    %20 = vector.shape_cast %19 : vector<2x1x8x8x128xbf16> to vector<128x128xbf16>
    %c3 = arith.constant 3 : index
    %c0_29 = arith.constant 0 : index
    %c0_30 = arith.constant 0 : index
    %21 = vector.load %arg2[%c3, %c0_29, %c0_30] : memref<9x128x128xbf16, #tpu.memory_space<vmem>>, vector<1x128x128xbf16>
    %22 = vector.shape_cast %21 : vector<1x128x128xbf16> to vector<128x128xbf16>
    %cst_31 = arith.constant dense<0.000000e+00> : vector<128x128xf32>
    %23 = tpu.matmul %20, %22, %cst_31 {dimension_numbers = #tpu.dot_dimension_numbers<[1], [0], [0], [1], [0, 0, 1, 1], [], []>} : vector<128x128xbf16>, vector<128x128xbf16>, vector<128x128xf32> -> vector<128x128xf32>
    %24 = arith.addf %18, %23 : vector<128x128xf32>
    %c0_32 = arith.constant 0 : index
    %c3_33 = arith.constant 3 : index
    %c0_34 = arith.constant 0 : index
    %c0_35 = arith.constant 0 : index
    %c0_36 = arith.constant 0 : index
    %25 = vector.load %arg1[%c0_32, %c3_33, %c0_34, %c0_35, %c0_36] : memref<2x4x9x9x128xbf16, #tpu.memory_space<vmem>>, vector<2x1x8x8x128xbf16>
    %26 = vector.shape_cast %25 : vector<2x1x8x8x128xbf16> to vector<128x128xbf16>
    %c4 = arith.constant 4 : index
    %c0_37 = arith.constant 0 : index
    %c0_38 = arith.constant 0 : index
    %27 = vector.load %arg2[%c4, %c0_37, %c0_38] : memref<9x128x128xbf16, #tpu.memory_space<vmem>>, vector<1x128x128xbf16>
    %28 = vector.shape_cast %27 : vector<1x128x128xbf16> to vector<128x128xbf16>
    %cst_39 = arith.constant dense<0.000000e+00> : vector<128x128xf32>
    %29 = tpu.matmul %26, %28, %cst_39 {dimension_numbers = #tpu.dot_dimension_numbers<[1], [0], [0], [1], [0, 0, 1, 1], [], []>} : vector<128x128xbf16>, vector<128x128xbf16>, vector<128x128xf32> -> vector<128x128xf32>
    %30 = arith.addf %24, %29 : vector<128x128xf32>
    %c0_40 = arith.constant 0 : index
    %c2_41 = arith.constant 2 : index
    %c0_42 = arith.constant 0 : index
    %c1_43 = arith.constant 1 : index
    %c0_44 = arith.constant 0 : index
    %31 = vector.load %arg1[%c0_40, %c2_41, %c0_42, %c1_43, %c0_44] : memref<2x4x9x9x128xbf16, #tpu.memory_space<vmem>>, vector<2x1x8x8x128xbf16>
    %32 = vector.shape_cast %31 : vector<2x1x8x8x128xbf16> to vector<128x128xbf16>
    %c5 = arith.constant 5 : index
    %c0_45 = arith.constant 0 : index
    %c0_46 = arith.constant 0 : index
    %33 = vector.load %arg2[%c5, %c0_45, %c0_46] : memref<9x128x128xbf16, #tpu.memory_space<vmem>>, vector<1x128x128xbf16>
    %34 = vector.shape_cast %33 : vector<1x128x128xbf16> to vector<128x128xbf16>
    %cst_47 = arith.constant dense<0.000000e+00> : vector<128x128xf32>
    %35 = tpu.matmul %32, %34, %cst_47 {dimension_numbers = #tpu.dot_dimension_numbers<[1], [0], [0], [1], [0, 0, 1, 1], [], []>} : vector<128x128xbf16>, vector<128x128xbf16>, vector<128x128xf32> -> vector<128x128xf32>
    %36 = arith.addf %30, %35 : vector<128x128xf32>
    %c0_48 = arith.constant 0 : index
    %c0_49 = arith.constant 0 : index
    %c1_50 = arith.constant 1 : index
    %c0_51 = arith.constant 0 : index
    %c0_52 = arith.constant 0 : index
    %37 = vector.load %arg1[%c0_48, %c0_49, %c1_50, %c0_51, %c0_52] : memref<2x4x9x9x128xbf16, #tpu.memory_space<vmem>>, vector<2x1x8x8x128xbf16>
    %38 = vector.shape_cast %37 : vector<2x1x8x8x128xbf16> to vector<128x128xbf16>
    %c6 = arith.constant 6 : index
    %c0_53 = arith.constant 0 : index
    %c0_54 = arith.constant 0 : index
    %39 = vector.load %arg2[%c6, %c0_53, %c0_54] : memref<9x128x128xbf16, #tpu.memory_space<vmem>>, vector<1x128x128xbf16>
    %40 = vector.shape_cast %39 : vector<1x128x128xbf16> to vector<128x128xbf16>
    %cst_55 = arith.constant dense<0.000000e+00> : vector<128x128xf32>
    %41 = tpu.matmul %38, %40, %cst_55 {dimension_numbers = #tpu.dot_dimension_numbers<[1], [0], [0], [1], [0, 0, 1, 1], [], []>} : vector<128x128xbf16>, vector<128x128xbf16>, vector<128x128xf32> -> vector<128x128xf32>
    %42 = arith.addf %36, %41 : vector<128x128xf32>
    %c0_56 = arith.constant 0 : index
    %c1_57 = arith.constant 1 : index
    %c1_58 = arith.constant 1 : index
    %c0_59 = arith.constant 0 : index
    %c0_60 = arith.constant 0 : index
    %43 = vector.load %arg1[%c0_56, %c1_57, %c1_58, %c0_59, %c0_60] : memref<2x4x9x9x128xbf16, #tpu.memory_space<vmem>>, vector<2x1x8x8x128xbf16>
    %44 = vector.shape_cast %43 : vector<2x1x8x8x128xbf16> to vector<128x128xbf16>
    %c7 = arith.constant 7 : index
    %c0_61 = arith.constant 0 : index
    %c0_62 = arith.constant 0 : index
    %45 = vector.load %arg2[%c7, %c0_61, %c0_62] : memref<9x128x128xbf16, #tpu.memory_space<vmem>>, vector<1x128x128xbf16>
    %46 = vector.shape_cast %45 : vector<1x128x128xbf16> to vector<128x128xbf16>
    %cst_63 = arith.constant dense<0.000000e+00> : vector<128x128xf32>
    %47 = tpu.matmul %44, %46, %cst_63 {dimension_numbers = #tpu.dot_dimension_numbers<[1], [0], [0], [1], [0, 0, 1, 1], [], []>} : vector<128x128xbf16>, vector<128x128xbf16>, vector<128x128xf32> -> vector<128x128xf32>
    %48 = arith.addf %42, %47 : vector<128x128xf32>
    %c0_64 = arith.constant 0 : index
    %c0_65 = arith.constant 0 : index
    %c1_66 = arith.constant 1 : index
    %c1_67 = arith.constant 1 : index
    %c0_68 = arith.constant 0 : index
    %49 = vector.load %arg1[%c0_64, %c0_65, %c1_66, %c1_67, %c0_68] : memref<2x4x9x9x128xbf16, #tpu.memory_space<vmem>>, vector<2x1x8x8x128xbf16>
    %50 = vector.shape_cast %49 : vector<2x1x8x8x128xbf16> to vector<128x128xbf16>
    %c8 = arith.constant 8 : index
    %c0_69 = arith.constant 0 : index
    %c0_70 = arith.constant 0 : index
    %51 = vector.load %arg2[%c8, %c0_69, %c0_70] : memref<9x128x128xbf16, #tpu.memory_space<vmem>>, vector<1x128x128xbf16>
    %52 = vector.shape_cast %51 : vector<1x128x128xbf16> to vector<128x128xbf16>
    %cst_71 = arith.constant dense<0.000000e+00> : vector<128x128xf32>
    %53 = tpu.matmul %50, %52, %cst_71 {dimension_numbers = #tpu.dot_dimension_numbers<[1], [0], [0], [1], [0, 0, 1, 1], [], []>} : vector<128x128xbf16>, vector<128x128xbf16>, vector<128x128xf32> -> vector<128x128xf32>
    %54 = arith.addf %48, %53 : vector<128x128xf32>
    %c0_72 = arith.constant 0 : index
    %c0_73 = arith.constant 0 : index
    %55 = vector.load %arg3[%c0_72, %c0_73] : memref<1x128xf32, #tpu.memory_space<vmem>>, vector<1x128xf32>
    %56 = vector.broadcast %55 : vector<1x128xf32> to vector<128x128xf32>
    %57 = arith.addf %54, %56 : vector<128x128xf32>
    %cst_74 = arith.constant 0.000000e+00 : f32
    %58 = vector.broadcast %cst_74 : f32 to vector<128x128xf32>
    %59 = arith.maximumf %57, %58 : vector<128x128xf32>
    %cst_75 = arith.constant 0.000000e+00 : bf16
    %60 = vector.broadcast %cst_75 : bf16 to vector<2x1x10x128xbf16>
    %cst_76 = arith.constant 0.000000e+00 : bf16
    %61 = vector.broadcast %cst_76 : bf16 to vector<2x10x1x128xbf16>
    %c0_77 = arith.constant 0 : index
    %c0_78 = arith.constant 0 : index
    %c0_79 = arith.constant 0 : index
    %c0_80 = arith.constant 0 : index
    %62 = vector.load %arg9[%c0_77, %c0_78, %c0_79, %c0_80] : memref<2x10x10x128xbf16, #tpu.memory_space<vmem>>, vector<2x1x10x128xbf16>
    tpu.vector_store %arg9[%c0_77, %c0_78, %c0_79, %c0_80], %60 {strides = array<i32>} : memref<2x10x10x128xbf16, #tpu.memory_space<vmem>>, vector<2x1x10x128xbf16>,
    %c0_81 = arith.constant 0 : index
    %c9 = arith.constant 9 : index
    %c0_82 = arith.constant 0 : index
    %c0_83 = arith.constant 0 : index
    %63 = vector.load %arg9[%c0_81, %c9, %c0_82, %c0_83] : memref<2x10x10x128xbf16, #tpu.memory_space<vmem>>, vector<2x1x10x128xbf16>
    tpu.vector_store %arg9[%c0_81, %c9, %c0_82, %c0_83], %60 {strides = array<i32>} : memref<2x10x10x128xbf16, #tpu.memory_space<vmem>>, vector<2x1x10x128xbf16>,
    %c0_84 = arith.constant 0 : index
    %c0_85 = arith.constant 0 : index
    %c0_86 = arith.constant 0 : index
    %c0_87 = arith.constant 0 : index
    %64 = vector.load %arg9[%c0_84, %c0_85, %c0_86, %c0_87] : memref<2x10x10x128xbf16, #tpu.memory_space<vmem>>, vector<2x10x1x128xbf16>
    tpu.vector_store %arg9[%c0_84, %c0_85, %c0_86, %c0_87], %61 {strides = array<i32>} : memref<2x10x10x128xbf16, #tpu.memory_space<vmem>>, vector<2x10x1x128xbf16>,
    %c0_88 = arith.constant 0 : index
    %c0_89 = arith.constant 0 : index
    %c9_90 = arith.constant 9 : index
    %c0_91 = arith.constant 0 : index
    %65 = vector.load %arg9[%c0_88, %c0_89, %c9_90, %c0_91] : memref<2x10x10x128xbf16, #tpu.memory_space<vmem>>, vector<2x10x1x128xbf16>
    tpu.vector_store %arg9[%c0_88, %c0_89, %c9_90, %c0_91], %61 {strides = array<i32>} : memref<2x10x10x128xbf16, #tpu.memory_space<vmem>>, vector<2x10x1x128xbf16>,
    %66 = arith.truncf %59 : vector<128x128xf32> to vector<128x128xbf16>
    %67 = vector.shape_cast %66 : vector<128x128xbf16> to vector<2x8x8x128xbf16>
    %c0_92 = arith.constant 0 : index
    %c1_93 = arith.constant 1 : index
    %c1_94 = arith.constant 1 : index
    %c0_95 = arith.constant 0 : index
    %68 = vector.load %arg9[%c0_92, %c1_93, %c1_94, %c0_95] : memref<2x10x10x128xbf16, #tpu.memory_space<vmem>>, vector<2x8x8x128xbf16>
    tpu.vector_store %arg9[%c0_92, %c1_93, %c1_94, %c0_95], %67 {strides = array<i32>} : memref<2x10x10x128xbf16, #tpu.memory_space<vmem>>, vector<2x8x8x128xbf16>,
    %cst_96 = arith.constant 0.000000e+00 : f32
    %69 = vector.broadcast %cst_96 : f32 to vector<128x128xf32>
    %c0_97 = arith.constant 0 : index
    %c0_98 = arith.constant 0 : index
    %c0_99 = arith.constant 0 : index
    %c0_100 = arith.constant 0 : index
    %70 = vector.load %arg9[%c0_97, %c0_98, %c0_99, %c0_100] : memref<2x10x10x128xbf16, #tpu.memory_space<vmem>>, vector<2x8x8x128xbf16>
    %71 = vector.shape_cast %70 : vector<2x8x8x128xbf16> to vector<128x128xbf16>
    %c0_101 = arith.constant 0 : index
    %c0_102 = arith.constant 0 : index
    %c0_103 = arith.constant 0 : index
    %72 = vector.load %arg4[%c0_101, %c0_102, %c0_103] : memref<9x128x128xbf16, #tpu.memory_space<vmem>>, vector<1x128x128xbf16>
    %73 = vector.shape_cast %72 : vector<1x128x128xbf16> to vector<128x128xbf16>
    %cst_104 = arith.constant dense<0.000000e+00> : vector<128x128xf32>
    %74 = tpu.matmul %71, %73, %cst_104 {dimension_numbers = #tpu.dot_dimension_numbers<[1], [0], [0], [1], [0, 0, 1, 1], [], []>} : vector<128x128xbf16>, vector<128x128xbf16>, vector<128x128xf32> -> vector<128x128xf32>
    %75 = arith.addf %69, %74 : vector<128x128xf32>
    %c0_105 = arith.constant 0 : index
    %c0_106 = arith.constant 0 : index
    %c1_107 = arith.constant 1 : index
    %c0_108 = arith.constant 0 : index
    %76 = vector.load %arg9[%c0_105, %c0_106, %c1_107, %c0_108] : memref<2x10x10x128xbf16, #tpu.memory_space<vmem>>, vector<2x8x8x128xbf16>
    %77 = vector.shape_cast %76 : vector<2x8x8x128xbf16> to vector<128x128xbf16>
    %c1_109 = arith.constant 1 : index
    %c0_110 = arith.constant 0 : index
    %c0_111 = arith.constant 0 : index
    %78 = vector.load %arg4[%c1_109, %c0_110, %c0_111] : memref<9x128x128xbf16, #tpu.memory_space<vmem>>, vector<1x128x128xbf16>
    %79 = vector.shape_cast %78 : vector<1x128x128xbf16> to vector<128x128xbf16>
    %cst_112 = arith.constant dense<0.000000e+00> : vector<128x128xf32>
    %80 = tpu.matmul %77, %79, %cst_112 {dimension_numbers = #tpu.dot_dimension_numbers<[1], [0], [0], [1], [0, 0, 1, 1], [], []>} : vector<128x128xbf16>, vector<128x128xbf16>, vector<128x128xf32> -> vector<128x128xf32>
    %81 = arith.addf %75, %80 : vector<128x128xf32>
    %c0_113 = arith.constant 0 : index
    %c0_114 = arith.constant 0 : index
    %c2_115 = arith.constant 2 : index
    %c0_116 = arith.constant 0 : index
    %82 = vector.load %arg9[%c0_113, %c0_114, %c2_115, %c0_116] : memref<2x10x10x128xbf16, #tpu.memory_space<vmem>>, vector<2x8x8x128xbf16>
    %83 = vector.shape_cast %82 : vector<2x8x8x128xbf16> to vector<128x128xbf16>
    %c2_117 = arith.constant 2 : index
    %c0_118 = arith.constant 0 : index
    %c0_119 = arith.constant 0 : index
    %84 = vector.load %arg4[%c2_117, %c0_118, %c0_119] : memref<9x128x128xbf16, #tpu.memory_space<vmem>>, vector<1x128x128xbf16>
    %85 = vector.shape_cast %84 : vector<1x128x128xbf16> to vector<128x128xbf16>
    %cst_120 = arith.constant dense<0.000000e+00> : vector<128x128xf32>
    %86 = tpu.matmul %83, %85, %cst_120 {dimension_numbers = #tpu.dot_dimension_numbers<[1], [0], [0], [1], [0, 0, 1, 1], [], []>} : vector<128x128xbf16>, vector<128x128xbf16>, vector<128x128xf32> -> vector<128x128xf32>
    %87 = arith.addf %81, %86 : vector<128x128xf32>
    %c0_121 = arith.constant 0 : index
    %c1_122 = arith.constant 1 : index
    %c0_123 = arith.constant 0 : index
    %c0_124 = arith.constant 0 : index
    %88 = vector.load %arg9[%c0_121, %c1_122, %c0_123, %c0_124] : memref<2x10x10x128xbf16, #tpu.memory_space<vmem>>, vector<2x8x8x128xbf16>
    %89 = vector.shape_cast %88 : vector<2x8x8x128xbf16> to vector<128x128xbf16>
    %c3_125 = arith.constant 3 : index
    %c0_126 = arith.constant 0 : index
    %c0_127 = arith.constant 0 : index
    %90 = vector.load %arg4[%c3_125, %c0_126, %c0_127] : memref<9x128x128xbf16, #tpu.memory_space<vmem>>, vector<1x128x128xbf16>
    %91 = vector.shape_cast %90 : vector<1x128x128xbf16> to vector<128x128xbf16>
    %cst_128 = arith.constant dense<0.000000e+00> : vector<128x128xf32>
    %92 = tpu.matmul %89, %91, %cst_128 {dimension_numbers = #tpu.dot_dimension_numbers<[1], [0], [0], [1], [0, 0, 1, 1], [], []>} : vector<128x128xbf16>, vector<128x128xbf16>, vector<128x128xf32> -> vector<128x128xf32>
    %93 = arith.addf %87, %92 : vector<128x128xf32>
    %c0_129 = arith.constant 0 : index
    %c1_130 = arith.constant 1 : index
    %c1_131 = arith.constant 1 : index
    %c0_132 = arith.constant 0 : index
    %94 = vector.load %arg9[%c0_129, %c1_130, %c1_131, %c0_132] : memref<2x10x10x128xbf16, #tpu.memory_space<vmem>>, vector<2x8x8x128xbf16>
    %95 = vector.shape_cast %94 : vector<2x8x8x128xbf16> to vector<128x128xbf16>
    %c4_133 = arith.constant 4 : index
    %c0_134 = arith.constant 0 : index
    %c0_135 = arith.constant 0 : index
    %96 = vector.load %arg4[%c4_133, %c0_134, %c0_135] : memref<9x128x128xbf16, #tpu.memory_space<vmem>>, vector<1x128x128xbf16>
    %97 = vector.shape_cast %96 : vector<1x128x128xbf16> to vector<128x128xbf16>
    %cst_136 = arith.constant dense<0.000000e+00> : vector<128x128xf32>
    %98 = tpu.matmul %95, %97, %cst_136 {dimension_numbers = #tpu.dot_dimension_numbers<[1], [0], [0], [1], [0, 0, 1, 1], [], []>} : vector<128x128xbf16>, vector<128x128xbf16>, vector<128x128xf32> -> vector<128x128xf32>
    %99 = arith.addf %93, %98 : vector<128x128xf32>
    %c0_137 = arith.constant 0 : index
    %c1_138 = arith.constant 1 : index
    %c2_139 = arith.constant 2 : index
    %c0_140 = arith.constant 0 : index
    %100 = vector.load %arg9[%c0_137, %c1_138, %c2_139, %c0_140] : memref<2x10x10x128xbf16, #tpu.memory_space<vmem>>, vector<2x8x8x128xbf16>
    %101 = vector.shape_cast %100 : vector<2x8x8x128xbf16> to vector<128x128xbf16>
    %c5_141 = arith.constant 5 : index
    %c0_142 = arith.constant 0 : index
    %c0_143 = arith.constant 0 : index
    %102 = vector.load %arg4[%c5_141, %c0_142, %c0_143] : memref<9x128x128xbf16, #tpu.memory_space<vmem>>, vector<1x128x128xbf16>
    %103 = vector.shape_cast %102 : vector<1x128x128xbf16> to vector<128x128xbf16>
    %cst_144 = arith.constant dense<0.000000e+00> : vector<128x128xf32>
    %104 = tpu.matmul %101, %103, %cst_144 {dimension_numbers = #tpu.dot_dimension_numbers<[1], [0], [0], [1], [0, 0, 1, 1], [], []>} : vector<128x128xbf16>, vector<128x128xbf16>, vector<128x128xf32> -> vector<128x128xf32>
    %105 = arith.addf %99, %104 : vector<128x128xf32>
    %c0_145 = arith.constant 0 : index
    %c2_146 = arith.constant 2 : index
    %c0_147 = arith.constant 0 : index
    %c0_148 = arith.constant 0 : index
    %106 = vector.load %arg9[%c0_145, %c2_146, %c0_147, %c0_148] : memref<2x10x10x128xbf16, #tpu.memory_space<vmem>>, vector<2x8x8x128xbf16>
    %107 = vector.shape_cast %106 : vector<2x8x8x128xbf16> to vector<128x128xbf16>
    %c6_149 = arith.constant 6 : index
    %c0_150 = arith.constant 0 : index
    %c0_151 = arith.constant 0 : index
    %108 = vector.load %arg4[%c6_149, %c0_150, %c0_151] : memref<9x128x128xbf16, #tpu.memory_space<vmem>>, vector<1x128x128xbf16>
    %109 = vector.shape_cast %108 : vector<1x128x128xbf16> to vector<128x128xbf16>
    %cst_152 = arith.constant dense<0.000000e+00> : vector<128x128xf32>
    %110 = tpu.matmul %107, %109, %cst_152 {dimension_numbers = #tpu.dot_dimension_numbers<[1], [0], [0], [1], [0, 0, 1, 1], [], []>} : vector<128x128xbf16>, vector<128x128xbf16>, vector<128x128xf32> -> vector<128x128xf32>
    %111 = arith.addf %105, %110 : vector<128x128xf32>
    %c0_153 = arith.constant 0 : index
    %c2_154 = arith.constant 2 : index
    %c1_155 = arith.constant 1 : index
    %c0_156 = arith.constant 0 : index
    %112 = vector.load %arg9[%c0_153, %c2_154, %c1_155, %c0_156] : memref<2x10x10x128xbf16, #tpu.memory_space<vmem>>, vector<2x8x8x128xbf16>
    %113 = vector.shape_cast %112 : vector<2x8x8x128xbf16> to vector<128x128xbf16>
    %c7_157 = arith.constant 7 : index
    %c0_158 = arith.constant 0 : index
    %c0_159 = arith.constant 0 : index
    %114 = vector.load %arg4[%c7_157, %c0_158, %c0_159] : memref<9x128x128xbf16, #tpu.memory_space<vmem>>, vector<1x128x128xbf16>
    %115 = vector.shape_cast %114 : vector<1x128x128xbf16> to vector<128x128xbf16>
    %cst_160 = arith.constant dense<0.000000e+00> : vector<128x128xf32>
    %116 = tpu.matmul %113, %115, %cst_160 {dimension_numbers = #tpu.dot_dimension_numbers<[1], [0], [0], [1], [0, 0, 1, 1], [], []>} : vector<128x128xbf16>, vector<128x128xbf16>, vector<128x128xf32> -> vector<128x128xf32>
    %117 = arith.addf %111, %116 : vector<128x128xf32>
    %c0_161 = arith.constant 0 : index
    %c2_162 = arith.constant 2 : index
    %c2_163 = arith.constant 2 : index
    %c0_164 = arith.constant 0 : index
    %118 = vector.load %arg9[%c0_161, %c2_162, %c2_163, %c0_164] : memref<2x10x10x128xbf16, #tpu.memory_space<vmem>>, vector<2x8x8x128xbf16>
    %119 = vector.shape_cast %118 : vector<2x8x8x128xbf16> to vector<128x128xbf16>
    %c8_165 = arith.constant 8 : index
    %c0_166 = arith.constant 0 : index
    %c0_167 = arith.constant 0 : index
    %120 = vector.load %arg4[%c8_165, %c0_166, %c0_167] : memref<9x128x128xbf16, #tpu.memory_space<vmem>>, vector<1x128x128xbf16>
    %121 = vector.shape_cast %120 : vector<1x128x128xbf16> to vector<128x128xbf16>
    %cst_168 = arith.constant dense<0.000000e+00> : vector<128x128xf32>
    %122 = tpu.matmul %119, %121, %cst_168 {dimension_numbers = #tpu.dot_dimension_numbers<[1], [0], [0], [1], [0, 0, 1, 1], [], []>} : vector<128x128xbf16>, vector<128x128xbf16>, vector<128x128xf32> -> vector<128x128xf32>
    %123 = arith.addf %117, %122 : vector<128x128xf32>
    %c0_169 = arith.constant 0 : index
    %c0_170 = arith.constant 0 : index
    %124 = vector.load %arg5[%c0_169, %c0_170] : memref<1x128xf32, #tpu.memory_space<vmem>>, vector<1x128xf32>
    %125 = vector.broadcast %124 : vector<1x128xf32> to vector<128x128xf32>
    %126 = arith.addf %123, %125 : vector<128x128xf32>
    %c0_171 = arith.constant 0 : index
    %c3_172 = arith.constant 3 : index
    %c0_173 = arith.constant 0 : index
    %c0_174 = arith.constant 0 : index
    %c0_175 = arith.constant 0 : index
    %127 = vector.load %arg1[%c0_171, %c3_172, %c0_173, %c0_174, %c0_175] : memref<2x4x9x9x128xbf16, #tpu.memory_space<vmem>>, vector<2x1x8x8x128xbf16>
    %128 = vector.shape_cast %127 : vector<2x1x8x8x128xbf16> to vector<128x128xbf16>
    %c0_176 = arith.constant 0 : index
    %c0_177 = arith.constant 0 : index
    %129 = vector.load %arg6[%c0_176, %c0_177] : memref<128x128xbf16, #tpu.memory_space<vmem>>, vector<128x128xbf16>
    %cst_178 = arith.constant dense<0.000000e+00> : vector<128x128xf32>
    %130 = tpu.matmul %128, %129, %cst_178 {dimension_numbers = #tpu.dot_dimension_numbers<[1], [0], [0], [1], [0, 0, 1, 1], [], []>} : vector<128x128xbf16>, vector<128x128xbf16>, vector<128x128xf32> -> vector<128x128xf32>
    %c0_179 = arith.constant 0 : index
    %c0_180 = arith.constant 0 : index
    %131 = vector.load %arg7[%c0_179, %c0_180] : memref<1x128xf32, #tpu.memory_space<vmem>>, vector<1x128xf32>
    %132 = vector.broadcast %131 : vector<1x128xf32> to vector<128x128xf32>
    %133 = arith.addf %130, %132 : vector<128x128xf32>
    %134 = arith.addf %126, %133 : vector<128x128xf32>
    %cst_181 = arith.constant 0.000000e+00 : f32
    %135 = vector.broadcast %cst_181 : f32 to vector<128x128xf32>
    %136 = arith.maximumf %134, %135 : vector<128x128xf32>
    %137 = vector.shape_cast %136 : vector<128x128xf32> to vector<2x8x8x128xf32>
    %c0_182 = arith.constant 0 : index
    %c0_183 = arith.constant 0 : index
    %c0_184 = arith.constant 0 : index
    %c0_185 = arith.constant 0 : index
    %138 = vector.load %arg8[%c0_182, %c0_183, %c0_184, %c0_185] : memref<2x8x8x128xf32, #tpu.memory_space<vmem>>, vector<2x8x8x128xf32>
    tpu.vector_store %arg8[%c0_182, %c0_183, %c0_184, %c0_185], %137 {strides = array<i32>} : memref<2x8x8x128xf32, #tpu.memory_space<vmem>>, vector<2x8x8x128xf32>,
    return
  }
  func.func @transform_0(%arg0: i32) -> (i32, i32, i32, i32, i32) {
    %c0_i32 = arith.constant 0 : i32
    %c0_i32_0 = arith.constant 0 : i32
    %c0_i32_1 = arith.constant 0 : i32
    %c0_i32_2 = arith.constant 0 : i32
    %c0_i32_3 = arith.constant 0 : i32
    return %arg0, %c0_i32, %c0_i32_0, %c0_i32_1, %c0_i32_2 : i32, i32, i32, i32, i32
  }
  func.func @transform_1(%arg0: i32) -> (i32, i32, i32) {
    %c0_i32 = arith.constant 0 : i32
    %c0_i32_0 = arith.constant 0 : i32
    %c0_i32_1 = arith.constant 0 : i32
    %c0_i32_2 = arith.constant 0 : i32
    return %c0_i32, %c0_i32_0, %c0_i32_1 : i32, i32, i32
  }
  func.func @transform_2(%arg0: i32) -> (i32, i32) {
    %c0_i32 = arith.constant 0 : i32
    %c0_i32_0 = arith.constant 0 : i32
    %c0_i32_1 = arith.constant 0 : i32
    return %c0_i32, %c0_i32_0 : i32, i32
  }
  func.func @transform_3(%arg0: i32) -> (i32, i32, i32) {
    %c0_i32 = arith.constant 0 : i32
    %c0_i32_0 = arith.constant 0 : i32
    %c0_i32_1 = arith.constant 0 : i32
    %c0_i32_2 = arith.constant 0 : i32
    return %c0_i32, %c0_i32_0, %c0_i32_1 : i32, i32, i32
  }
  func.func @transform_4(%arg0: i32) -> (i32, i32) {
    %c0_i32 = arith.constant 0 : i32
    %c0_i32_0 = arith.constant 0 : i32
    %c0_i32_1 = arith.constant 0 : i32
    return %c0_i32, %c0_i32_0 : i32, i32
  }
  func.func @transform_5(%arg0: i32) -> (i32, i32) {
    %c0_i32 = arith.constant 0 : i32
    %c0_i32_0 = arith.constant 0 : i32
    %c0_i32_1 = arith.constant 0 : i32
    return %c0_i32, %c0_i32_0 : i32, i32
  }
  func.func @transform_6(%arg0: i32) -> (i32, i32) {
    %c0_i32 = arith.constant 0 : i32
    %c0_i32_0 = arith.constant 0 : i32
    %c0_i32_1 = arith.constant 0 : i32
    return %c0_i32, %c0_i32_0 : i32, i32
  }
  func.func @transform_7(%arg0: i32) -> (i32, i32, i32, i32) {
    %c0_i32 = arith.constant 0 : i32
    %c0_i32_0 = arith.constant 0 : i32
    %c0_i32_1 = arith.constant 0 : i32
    %c0_i32_2 = arith.constant 0 : i32
    return %arg0, %c0_i32, %c0_i32_0, %c0_i32_1 : i32, i32, i32, i32
  }
}

</mosaic_0001>

<bundles_post_ra>
// kernel: _lambda_.1
= control target key start
LH: loop header
LB: loop body
LE: loop exit
PB: predicated region body
PF: predicated region fallthrough
CT: control target
= control target key end

     0   :  { %vm511_vm0 = vsmask.f32 3328  ;;  %vm512_vm1 = vsmask.f32 7440  ;;  %vm2900_vm3 = vcmask 1040384   ;;  %vm4039_vm8 = vcmask 1042432   ;;  %s11170_s1 = inlined_call_operand.vmem [shape: bf16[9,128,128], index: 1, kind: input, shape index: {}]   ;;  %s11171_s0 = inlined_call_operand.vmem [shape: bf16[2,4,9,9,128], index: 0, kind: input, shape index: {}]   ;;  %s11172_s3 = inlined_call_operand.vmem [shape: bf16[9,128,128], index: 3, kind: input, shape index: {}]   ;;  %s11173_s2 = inlined_call_operand.vmem [shape: f32[1,128], index: 2, kind: input, shape index: {}]   ;;  %s11174_s5 = inlined_call_operand.vmem [shape: bf16[128,128], index: 5, kind: input, shape index: {}]   ;;  %s11175_s4 = inlined_call_operand.vmem [shape: f32[1,128], index: 4, kind: input, shape index: {}]   ;;  %s11176_s6 = inlined_call_operand.vmem [shape: f32[1,128], index: 6, kind: input, shape index: {}]   ;;  %s11177_s7 = inlined_call_operand.vmem [shape: f32[2,8,8,128], index: 7, kind: output, shape index: {}]  }
   0x1   :  { %v8416_v0 = vld [vmem:[%s11170_s1 + $0x78] sm:$0xff]   ;;  %v8418_v2 = vld [vmem:[%s11170_s1 + $0x70] sm:$0xff]   ;;  %v8420_v4 = vld [vmem:[%s11170_s1 + $0x68] sm:$0xff]   ;;  %vm2901_vm4 = vsmask.f32 256  ;;  %vm4040_vm9 = vcmask 1046532  }
   0x2   :  { %v8417_v1 = vld [vmem:[%s11170_s1 + $0x38] sm:$0xff]   ;;  %7791 = vmatprep.subr.bf16.mxu0 %v8416_v0  ;;  %v8419_v3 = vld [vmem:[%s11170_s1 + $0x30] sm:$0xff]   ;;  %v8421_v5 = vld [vmem:[%s11170_s1 + $0x28] sm:$0xff]   ;;  %vm2963_vm6 = vsmask.f32 7938  ;;  %vm3234_vm11 = vcmask 1043456  }
   0x3   :  { %7823 = vmatprep.subr.bf16.mxu1 %v8417_v1  ;;  %7792 = vmatpush3.bf16.msra.mxu0 %v8416_v0  ;;  %v8422_v6 = vld [vmem:[%s11170_s1 + $0x60] sm:$0xff]   ;;  %v8424_v8 = vld [vmem:[%s11170_s1 + $0x58] sm:$0xff]   ;;  %v8426_v10 = vld [vmem:[%s11170_s1 + $0x50] sm:$0xff]  }
   0x4   :  { %7824 = vmatpush3.bf16.msra.mxu1 %v8417_v1  ;;  %7793 = vmatprep.subr.bf16.mxu0 %v8418_v2  ;;  %v8423_v7 = vld [vmem:[%s11170_s1 + $0x20] sm:$0xff]   ;;  %v8425_v9 = vld [vmem:[%s11170_s1 + $0x18] sm:$0xff]   ;;  %v8427_v11 = vld [vmem:[%s11170_s1 + $0x10] sm:$0xff]  }
   0x5   :  { %7825 = vmatprep.subr.bf16.mxu1 %v8419_v3  ;;  %v8432_v12 = vld [vmem:[%s11171_s0 + $0x48] ss:$8 sps:$4 sm:$0xff]   ;;  %v8430_v16 = vld [vmem:[%s11170_s1 + $0x40] sm:$0xff]   ;;  %v8436_v19 = vld [vmem:[%s11170_s1 + $0xb8] sm:$0xff]  }
   0x6   :  { %v8433_v13 = vld [vmem:[%s11171_s0] ss:$8 sps:$4 sm:$0xff]   ;;  %7807 = vmatprep.mubr.bf16.mxu0 %v8432_v12  ;;  %v8437_v20 = vld [vmem:[%s11170_s1 + $0xf8] sm:$0xff]   ;;  %v8438_v22 = vld [vmem:[%s11170_s1 + $0xb0] sm:$0xff]  }
   0x7   :  { %7794 = vmatpush3.bf16.msra.mxu0 %v8418_v2  ;;  %7839 = vmatprep.mubr.bf16.mxu1 %v8433_v13  ;;  %v8428_v14 = vld [vmem:[%s11170_s1 + $0x48] sm:$0xff]   ;;  %v8431_v17 = vld [vmem:[%s11170_s1] sm:$0xff]   ;;  %v8435_v21 = vld [vmem:[%s11171_s0 + $0x10] ss:$8 sps:$4 sm:$0xff]  }
   0x8   :  { %7826 = vmatpush3.bf16.msra.mxu1 %v8419_v3  ;;  %7795 = vmatprep.subr.bf16.mxu0 %v8420_v4  ;;  %v8429_v15 = vld [vmem:[%s11170_s1 + $0x8] sm:$0xff]   ;;  %v8434_v18 = vld [vmem:[%s11171_s0 + $0x58] ss:$8 sps:$4 sm:$0xff]   ;;  %v8439_v23 = vld [vmem:[%s11170_s1 + $0xf0] sm:$0xff]  }
   0x9   :  { %7827 = vmatprep.subr.bf16.mxu1 %v8421_v5  ;;  %v8440_v24 = vld [vmem:[%s11171_s0 + $0x68] ss:$8 sps:$4 sm:$0xff]   ;;  %v8442_v26 = vld [vmem:[%s11171_s0 + $0x78] ss:$8 sps:$4 sm:$0xff]   ;;  %v480_v43 = vld [vmem:[%s11171_s0 + $0x4] sm:$0x1] }
   0xa   :  { %v8441_v25 = vld [vmem:[%s11171_s0 + $0x20] ss:$8 sps:$4 sm:$0xff]   ;;  %v8443_v29 = vld [vmem:[%s11171_s0 + $0x30] ss:$8 sps:$4 sm:$0xff]   ;;  %v482_v45 = vld [vmem:[%s11171_s0 + $0xc] sm:$0x1] }
   0xb   :  { %7796 = vmatpush3.bf16.msra.mxu0 %v8420_v4  ;;  %v8444_v27 = vld [vmem:[%s11170_s1 + $0xa8] sm:$0xff]   ;;  %v8446_v30 = vld [vmem:[%s11170_s1 + $0xa0] sm:$0xff]   ;;  %v8452_v35 = vld [vmem:[%s11170_s1 + $0x98] sm:$0xff]   ;;  %v524_v48 = vshll.u32 %v480_v43, 16  ;;  %v538_v52 = vshll.u32 %v482_v45, 16 }
   0xc   :  { %7828 = vmatpush3.bf16.msra.mxu1 %v8421_v5  ;;  %7797 = vmatprep.subr.bf16.mxu0 %v8422_v6  ;;  %v8445_v28 = vld [vmem:[%s11170_s1 + $0xe8] sm:$0xff]   ;;  %v8447_v31 = vld [vmem:[%s11170_s1 + $0xe0] sm:$0xff]   ;;  %v8451_v36 = vld [vmem:[%s11171_s0 + $0x130] ss:$8 sps:$4 sm:$0xff]  }
   0xd   :  { %7829 = vmatprep.subr.bf16.mxu1 %v8423_v7  ;;  %v8448_v32 = vld [vmem:[%s11171_s0 + $0x168] ss:$8 sps:$4 sm:$0xff]   ;;  %v8450_v34 = vld [vmem:[%s11171_s0 + $0x178] ss:$8 sps:$4 sm:$0xff]   ;;  %v484_v54 = vld [vmem:[%s11171_s0 + $0x14] sm:$0x1] }
   0xe   :  { %v8449_v33 = vld [vmem:[%s11171_s0 + $0x120] ss:$8 sps:$4 sm:$0xff]   ;;  %v8453_v37 = vld [vmem:[%s11170_s1 + $0xd8] sm:$0xff]   ;;  %v8454_v38 = vld [vmem:[%s11170_s1 + $0x90] sm:$0xff]   ;;  %v526_v57 = vrot.slane %v524_v48, 5  ;;  %v540_v62 = vrot.slane %v538_v52, 5 }
   0xf   :  { %7798 = vmatpush3.bf16.msra.mxu0 %v8422_v6  ;;  %v8455_v39 = vld [vmem:[%s11170_s1 + $0xd0] sm:$0xff]   ;;  %v8457_v41 = vld [vmem:[%s11171_s0 + $0x140] ss:$8 sps:$4 sm:$0xff]   ;;  %v485_v59 = vld [vmem:[%s11171_s0 + $0x18] sm:$0xf]  ;;  %v552_v5 = vshll.u32 %v484_v54, 16 }
  0x10   :  { %7830 = vmatpush3.bf16.msra.mxu1 %v8423_v7  ;;  %7799 = vmatprep.subr.bf16.mxu0 %v8424_v8  ;;  %v8456_v40 = vld [vmem:[%s11171_s0 + $0x188] ss:$8 sps:$4 sm:$0xff]   ;;  %v479_v42 = vld [vmem:[%s11171_s0] sm:$0xf]  ;;  %v486_v63 = vld [vmem:[%s11171_s0 + $0x1c] sm:$0x1] }
  0x11   :  { %7831 = vmatprep.subr.bf16.mxu1 %v8425_v9  ;;  %v481_v44 = vld [vmem:[%s11171_s0 + $0x8] sm:$0xf]  ;;  %v515_v46 = vshrl.u32 %v479_v42, 16  ;;  %v518_v47 = vshll.u32 %v479_v42, 16  ;;  %v483_v53 = vld [vmem:[%s11171_s0 + $0x10] sm:$0xf]  ;;  %vm8855_vm2 = vmor %vm511_vm0, %vm512_vm1 }
  0x12   :  { %v529_v49 = vshrl.u32 %v481_v44, 16  ;;  %v8460_v50 = vld [vmem:[%s11170_s1 + $0x88] sm:$0xff]   ;;  %v532_v51 = vshll.u32 %v481_v44, 16  ;;  %v8458_v60 = vld [vmem:[%s11171_s0 + $0x198] ss:$8 sps:$4 sm:$0xff]   ;;  %v543_v0 = vshrl.u32 %v483_v53, 16  ;;  %vm9502_vm5 = vmand %vm2900_vm3, %vm2901_vm4 }
  0x13   :  { %7800 = vmatpush3.bf16.msra.mxu0 %v8424_v8  ;;  %v517_v55 = vrot.slane %v515_v46, 4  ;;  %v520_v56 = vrot.slane %v518_v47, 5  ;;  %v546_v1 = vshll.u32 %v483_v53, 16  ;;  %v8459_v2 = vld [vmem:[%s11171_s0 + $0x150] ss:$8 sps:$4 sm:$0xff]   ;;  %v8461_v3 = vld [vmem:[%s11170_s1 + $0xc8] sm:$0xff]   ;;  %vm9509_vm7 = vmand %vm2900_vm3, %vm2963_vm6 }
  0x14   :  { %7832 = vmatpush3.bf16.msra.mxu1 %v8425_v9  ;;  %7801 = vmatprep.subr.bf16.mxu0 %v8426_v10  ;;  %v531_v58 = vrot.slane %v529_v49, 4  ;;  %v534_v61 = vrot.slane %v532_v51, 5  ;;  %v557_v6 = vshrl.u32 %v485_v59, 16  ;;  %v560_v7 = vshll.u32 %v485_v59, 16  ;;  %v8462_v13 = vld [vmem:[%s11170_s1 + $0x80] sm:$0xff]   ;;  %v8469_v44 = vld [vmem:[%s11170_s1 + $0x170] sm:$0xff]   ;;  %vm9869_vm10 = vmor %vm4039_vm8, %vm4040_vm9 }
  0x15   :  { %7833 = vmatprep.subr.bf16.mxu1 %v8427_v11  ;;  %v521_v4 = vor.u32 %v520_v56, %v517_v55  ;;  %v566_v12 = vshll.u32 %v486_v63, 16  ;;  %v491_v43 = vld [vmem:[%s11171_s0 + $0x30] sm:$0xf]  ;;  %v492_v48 = vld [vmem:[%s11171_s0 + $0x34] sm:$0x1]  ;;  %vm9953_vm12 = vmand %vm3234_vm11, %vm2963_vm6 }
  0x16   :  { %v535_v9 = vor.u32 %v534_v61, %v531_v58  ;;  %v599_v49 = vshrl.u32 %v491_v43, 16  ;;  %v493_v53 = vld [vmem:[%s11171_s0 + $0x38] sm:$0xf]  ;;  %v602_v54 = vshll.u32 %v491_v43, 16  ;;  %v494_v58 = vld [vmem:[%s11171_s0 + $0x3c] sm:$0x1] }
  0x17   :  { %7802 = vmatpush3.bf16.msra.mxu0 %v8426_v10  ;;  %v545_v10 = vrot.slane %v543_v0, 4  ;;  %v613_v63 = vshrl.u32 %v493_v53, 16  ;;  %v501_v43 = vld [vmem:[%s11171_s0 + $0x138] sm:$0xf] }
  0x18   :  { %7834 = vmatpush3.bf16.msra.mxu1 %v8427_v11  ;;  %7803 = vmatprep.subr.bf16.mxu0 %v8428_v14  ;;  %v548_v11 = vrot.slane %v546_v1, 5  ;;  %v601_v59 = vrot.slane %v599_v49, 4  ;;  %v604_v61 = vrot.slane %v602_v54, 5  ;;  %v616_v1 = vshll.u32 %v493_v53, 16 }
  0x19   :  { %7835 = vmatprep.subr.bf16.mxu1 %v8429_v15  ;;  %v669_v53 = vshrl.u32 %v501_v43, 16 }
  0x1b   :  { %7804 = vmatpush3.bf16.msra.mxu0 %v8428_v14  ;;  %v522_v14 = vrot.slane %v521_v4, 4  ;;  %v605_v4 = vor.u32 %v604_v61, %v601_v59  ;;  %v8481_v61 = vld [vmem:[%s11170_s1 + $0x150] sm:$0xff]  }
  0x1c   :  { %7836 = vmatpush3.bf16.msra.mxu1 %v8429_v15  ;;  %7805 = vmatprep.subr.bf16.mxu0 %v8430_v16  ;;  %v559_v15 = vrot.slane %v557_v6, 4  ;;  %v8470_v6 = vld [vmem:[%s11170_s1 + $0x128] sm:$0xff]  }
  0x1d   :  { %7837 = vmatprep.subr.bf16.mxu1 %v8431_v17 }
  0x1f   :  { %7806 = vmatpush3.bf16.msra.mxu0 %v8430_v16  ;;  %v562_v16 = vrot.slane %v560_v7, 5 }
  0x20   :  { %7838 = vmatpush3.bf16.msra.mxu1 %v8431_v17  ;;  %7855 = vmatprep.subr.bf16.mxu0 %v8436_v19  ;;  %v8463_v17 = vld [vmem:[%s11170_s1 + $0xc0] sm:$0xff]  }
  0x21   :  { %7887 = vmatprep.subr.bf16.mxu1 %v8437_v20 }
  0x22   :  { %7808 = vmatmul.mubr.bf16.vlgmr.msra.gmra.mxu0 %v8434_v18  ;;  %v536_v18 = vrot.slane %v535_v9, 4 }
  0x23   :  { %7840 = vmatmul.mubr.bf16.vlgmr.msra.gmra.mxu1 %v8435_v21  ;;  %7856 = vmatpush3.bf16.msra.mxu0 %v8436_v19  ;;  %v549_v19 = vor.u32 %v548_v11, %v545_v10  ;;  %v568_v21 = vrot.slane %v566_v12, 5  ;;  %v618_v10 = vrot.slane %v616_v1, 5  ;;  %v8471_v11 = vld [vmem:[%s11171_s0 + $0xb0] ss:$8 sps:$4 sm:$0xff]   ;;  %v8473_v12 = vld [vmem:[%s11170_s1 + $0x168] sm:$0xff]  }
  0x24   :  { %7888 = vmatpush3.bf16.msra.mxu1 %v8437_v20  ;;  %7857 = vmatprep.subr.bf16.mxu0 %v8438_v22  ;;  %v554_v20 = vrot.slane %v552_v5, 5  ;;  %v615_v5 = vrot.slane %v613_v63, 4 }
  0x25   :  { %7889 = vmatprep.subr.bf16.mxu1 %v8439_v23  ;;  %7811 = vmatprep.mubr.bf16.mxu0 %v8440_v24  ;;  %v8465_v24 = vld [vmem:[%s11171_s0 + $0x90] ss:$8 sps:$4 sm:$0xff]  }
  0x26   :  { %7843 = vmatprep.mubr.bf16.mxu1 %v8441_v25  ;;  %v541_v25 = vsel %vm8855_vm2, %v536_v18, %v540_v62  ;;  %v608_v62 = vshll.u32 %v492_v48, 16  ;;  %v619_v18 = vor.u32 %v618_v10, %v615_v5  ;;  %v502_v48 = vld [vmem:[%s11171_s0 + $0x13c] sm:$0x1]  ;;  %v8485_v5 = vld [vmem:[%s11170_s1 + $0x148] sm:$0xff]  }
  0x27   :  { %7858 = vmatpush3.bf16.msra.mxu0 %v8438_v22  ;;  %v527_v22 = vsel %vm8855_vm2, %v522_v14, %v526_v57  ;;  %v606_v14 = vrot.slane %v605_v4, 4  ;;  %v8477_v4 = vld [vmem:[%s11171_s0 + $0x1b0] ss:$8 sps:$4 sm:$0xff]  }
  0x28   :  { %7890 = vmatpush3.bf16.msra.mxu1 %v8439_v23  ;;  %7859 = vmatprep.subr.bf16.mxu0 %v8444_v27  ;;  %v563_v23 = vor.u32 %v562_v16, %v559_v15  ;;  %v610_v9 = vrot.slane %v608_v62, 5  ;;  %v8474_v16 = vld [vmem:[%s11170_s1 + $0x120] sm:$0xff]  }
  0x29   :  { %7891 = vmatprep.subr.bf16.mxu1 %v8445_v28 }
  0x2a   :  { %7812 = vmatmul.mubr.bf16.gmra.mxu0 %v8442_v26  ;;  %v550_v26 = vrot.slane %v549_v19, 4  ;;  %v8472_v19 = vld [vmem:[%s11171_s0 + $0xc0] ss:$8 sps:$4 sm:$0xff]  }
  0x2b   :  { %7844 = vmatmul.mubr.bf16.gmra.mxu1 %v8443_v29  ;;  %7860 = vmatpush3.bf16.msra.mxu0 %v8444_v27  ;;  %v8464_v27 = vld [vmem:[%s11170_s1 + $0x138] sm:$0xff]   ;;  %v564_v29 = vrot.slane %v563_v23, 4  ;;  %v8475_v23 = vld [vmem:[%s11170_s1 + $0x160] sm:$0xff]  }
  0x2c   :  { %7892 = vmatpush3.bf16.msra.mxu1 %v8445_v28  ;;  %7861 = vmatprep.subr.bf16.mxu0 %v8446_v30  ;;  %v6764_v28 = vcombine.low %v527_v22, %v541_v25  ;;  %v620_v22 = vrot.slane %v619_v18, 4  ;;  %v496_v25 = vld [vmem:[%s11171_s0 + $0x124] sm:$0x1] }
  0x2d   :  { %7893 = vmatprep.subr.bf16.mxu1 %v8447_v31  ;;  %7815 = vmatprep.mubr.bf16.mxu0 %v8448_v32  ;;  %v487_v32 = vld [vmem:[%s11171_s0 + $0x20] sm:$0xf] }
  0x2e   :  { %7847 = vmatprep.mubr.bf16.mxu1 %v8449_v33  ;;  %v569_v33 = vsel %vm8855_vm2, %v564_v29, %v568_v21  ;;  %v611_v21 = vsel %vm8855_vm2, %v606_v14, %v610_v9 }
  0x2f   :  { %7862 = vmatpush3.bf16.msra.mxu0 %v8446_v30  ;;  %v8467_v30 = vld [vmem:[%s11170_s1 + $0x178] sm:$0xff]  }
  0x30   :  { %7894 = vmatpush3.bf16.msra.mxu1 %v8447_v31  ;;  %7863 = vmatprep.subr.bf16.mxu0 %v8452_v35  ;;  %v555_v31 = vsel %vm8855_vm2, %v550_v26, %v554_v20  ;;  %v497_v26 = vld [vmem:[%s11171_s0 + $0x128] sm:$0xf] }
  0x31   :  { %7895 = vmatprep.subr.bf16.mxu1 %v8453_v37 }
  0x32   :  { %7816 = vmatmul.mubr.bf16.gmra.mxu0 %v8450_v34  ;;  %v8466_v34 = vld [vmem:[%s11171_s0 + $0xa0] ss:$8 sps:$4 sm:$0xff]  }
  0x33   :  { %7848 = vmatmul.mubr.bf16.gmra.mxu1 %v8451_v36  ;;  %7864 = vmatpush3.bf16.msra.mxu0 %v8452_v35  ;;  %v488_v35 = vld [vmem:[%s11171_s0 + $0x24] sm:$0x1]  ;;  %v489_v36 = vld [vmem:[%s11171_s0 + $0x28] sm:$0xf] }
  0x34   :  { %7896 = vmatpush3.bf16.msra.mxu1 %v8453_v37  ;;  %7865 = vmatprep.subr.bf16.mxu0 %v8454_v38  ;;  %v490_v37 = vld [vmem:[%s11171_s0 + $0x2c] sm:$0x1]  ;;  %v580_v42 = vshll.u32 %v488_v35, 16  ;;  %v585_v45 = vshrl.u32 %v489_v36, 16  ;;  %v588_v46 = vshll.u32 %v489_v36, 16  ;;  %v641_v35 = vshrl.u32 %v497_v26, 16 }
  0x35   :  { %7897 = vmatprep.subr.bf16.mxu1 %v8455_v39  ;;  %7819 = vmatprep.mubr.bf16.mxu0 %v8456_v40  ;;  %v571_v40 = vshrl.u32 %v487_v32, 16  ;;  %v594_v47 = vshll.u32 %v490_v37, 16  ;;  %v644_v36 = vshll.u32 %v497_v26, 16 }
  0x36   :  { %7851 = vmatprep.mubr.bf16.mxu1 %v8457_v41  ;;  %v574_v41 = vshll.u32 %v487_v32, 16  ;;  %v582_v52 = vrot.slane %v580_v42, 5  ;;  %v587_v55 = vrot.slane %v585_v45, 4  ;;  %v590_v56 = vrot.slane %v588_v46, 5  ;;  %v499_v32 = vld [vmem:[%s11171_s0 + $0x130] sm:$0xf] }
  0x37   :  { %7866 = vmatpush3.bf16.msra.mxu0 %v8454_v38  ;;  %v6765_v38 = vcombine.low %v555_v31, %v569_v33  ;;  %v596_v57 = vrot.slane %v594_v47, 5  ;;  %v636_v31 = vshll.u32 %v496_v25, 16  ;;  %v8476_v33 = vld [vmem:[%s11170_s1 + $0x118] sm:$0xff]   ;;  %v643_v45 = vrot.slane %v641_v35, 4 }
  0x38   :  { %7898 = vmatpush3.bf16.msra.mxu1 %v8455_v39  ;;  %7867 = vmatprep.subr.bf16.mxu0 %v8460_v50  ;;  %v8468_v39 = vld [vmem:[%s11170_s1 + $0x130] sm:$0xff]   ;;  %v576_v51 = vrot.slane %v574_v41, 5  ;;  %v591_v0 = vor.u32 %v590_v56, %v587_v55  ;;  %v646_v46 = vrot.slane %v644_v36, 5  ;;  %v658_v49 = vshll.u32 %v499_v32, 16 }
  0x39   :  { %7899 = vmatprep.subr.bf16.mxu1 %v8461_v3  ;;  %v638_v42 = vrot.slane %v636_v31, 5  ;;  %v672_v56 = vshll.u32 %v501_v43, 16 }
  0x3a   :  { %7820 = vmatmul.mubr.bf16.gmra.mxu0 %v8458_v60  ;;  %v592_v7 = vrot.slane %v591_v0, 4  ;;  %v647_v54 = vor.u32 %v646_v46, %v643_v45  ;;  %v660_v55 = vrot.slane %v658_v49, 5  ;;  %v9030_v45 = vld [vmem:[%s11170_s1 + $0x1b8] sm:$0xff]  }
  0x3b   :  { %7852 = vmatmul.mubr.bf16.gmra.mxu1 %v8459_v2  ;;  %7868 = vmatpush3.bf16.msra.mxu0 %v8460_v50  ;;  %v573_v50 = vrot.slane %v571_v40, 4  ;;  %v622_v2 = vshll.u32 %v494_v58, 16  ;;  %v8480_v58 = vld [vmem:[%s11170_s1 + $0x110] sm:$0xff]   ;;  %v674_v1 = vrot.slane %v672_v56, 5 }
  0x3c   :  { %7900 = vmatpush3.bf16.msra.mxu1 %v8461_v3  ;;  %7869 = vmatprep.subr.bf16.mxu0 %v8462_v13  ;;  %v648_v62 = vrot.slane %v647_v54, 4 }
  0x3d   :  { %7901 = vmatprep.subr.bf16.mxu1 %v8463_v17  ;;  %7871 = vmatprep.mubr.bf16.mxu0 %v6764_v28  ;;  %v577_v60 = vor.u32 %v576_v51, %v573_v50  ;;  %v624_v15 = vrot.slane %v622_v2, 5  ;;  %v8482_v2 = vld [vmem:[%s11170_s1 + $0x108] sm:$0xff]  }
  0x3e   :  { %7903 = vmatprep.mubr.bf16.mxu1 %v8465_v24  ;;  %v495_v24 = vld [vmem:[%s11171_s0 + $0x120] sm:$0xf] }
  0x3f   :  { %7870 = vmatpush3.bf16.msra.mxu0 %v8462_v13  ;;  %v578_v3 = vrot.slane %v577_v60, 4  ;;  %v625_v28 = vsel %vm8855_vm2, %v620_v22, %v624_v15  ;;  %v627_v29 = vshrl.u32 %v495_v24, 16  ;;  %v671_v60 = vrot.slane %v669_v53, 4  ;;  %v503_v15 = vld [vmem:[%s11171_s0 + $0x140] sm:$0xf] }
  0x40   :  { %7902 = vmatpush3.bf16.msra.mxu1 %v8463_v17  ;;  %7919 = vmatprep.subr.bf16.mxu0 %v8464_v27  ;;  %v597_v17 = vsel %vm8855_vm2, %v592_v7, %v596_v57  ;;  %v678_v57 = vshll.u32 %v502_v48, 16 }
  0x41   :  { %7951 = vmatprep.subr.bf16.mxu1 %v8467_v30  ;;  %v583_v13 = vsel %vm8855_vm2, %v578_v3, %v582_v52  ;;  %v629_v40 = vrot.slane %v627_v29, 4  ;;  %v675_v9 = vor.u32 %v674_v1, %v671_v60  ;;  %v8487_v29 = vld [vmem:[%s11170_s1 + $0x140] sm:$0xff]  }
  0x42   :  { %7872 = vmatmul.mubr.bf16.vlgmr.msra.gmra.mxu0 %v6765_v38  ;;  %v6766_v20 = vcombine.low %v583_v13, %v597_v17  ;;  %v500_v38 = vld [vmem:[%s11171_s0 + $0x134] sm:$0x1]  ;;  %v680_v10 = vrot.slane %v678_v57, 5  ;;  %v505_v17 = vld [vmem:[%s11171_s0 + $0x148] sm:$0xf] }
  0x43   :  { %7920 = vmatpush3.bf16.msra.mxu0 %v8464_v27  ;;  %7904 = vmatmul.mubr.bf16.vlgmr.msra.gmra.mxu1 %v8466_v34  ;;  %v498_v27 = vld [vmem:[%s11171_s0 + $0x12c] sm:$0x1]  ;;  %v6767_v34 = vcombine.low %v611_v21, %v625_v28  ;;  %v664_v52 = vshll.u32 %v500_v38, 16  ;;  %v676_v14 = vrot.slane %v675_v9, 4  ;;  %v686_v21 = vshll.u32 %v503_v15, 16 }
  0x44   :  { %7952 = vmatpush3.bf16.msra.mxu1 %v8467_v30  ;;  %7921 = vmatprep.subr.bf16.mxu0 %v8468_v39  ;;  %v630_v30 = vshll.u32 %v495_v24, 16  ;;  %v650_v37 = vshll.u32 %v498_v27, 16  ;;  %v697_v25 = vshrl.u32 %v505_v17, 16  ;;  %v700_v26 = vshll.u32 %v505_v17, 16  ;;  %v507_v28 = vld [vmem:[%s11171_s0 + $0x150] sm:$0xf] }
  0x45   :  { %7953 = vmatprep.subr.bf16.mxu1 %v8469_v44  ;;  %7907 = vmatprep.mubr.bf16.mxu1 %v8471_v11  ;;  %v666_v0 = vrot.slane %v664_v52, 5  ;;  %v8478_v11 = vld [vmem:[%s11171_s0 + $0x1c0] ss:$8 sps:$4 sm:$0xff]   ;;  %v681_v18 = vsel %vm8855_vm2, %v676_v14, %v680_v10  ;;  %v688_v31 = vrot.slane %v686_v21, 5  ;;  %v509_v38 = vld [vmem:[%s11171_s0 + $0x158] sm:$0xf] }
  0x46   :  { %7875 = vmatprep.mubr.bf16.mxu0 %v6766_v20  ;;  %v632_v41 = vrot.slane %v630_v30, 5  ;;  %v652_v47 = vrot.slane %v650_v37, 5  ;;  %v683_v20 = vshrl.u32 %v503_v15, 16  ;;  %v699_v35 = vrot.slane %v697_v25, 4  ;;  %v6878_v9 = vld [vmem:[%s11171_s0 + $0x98] sm:$0xf] }
  0x47   :  { %7922 = vmatpush3.bf16.msra.mxu0 %v8468_v39  ;;  %v8479_v39 = vld [vmem:[%s11170_s1 + $0x158] sm:$0xff]   ;;  %v702_v36 = vrot.slane %v700_v26, 5  ;;  %v728_v48 = vshll.u32 %v509_v38, 16  ;;  %v1481_v14 = vshrl.u32 %v6878_v9, 16  ;;  %v1484_v15 = vshll.u32 %v6878_v9, 16 }
  0x48   :  { %7954 = vmatpush3.bf16.msra.mxu1 %v8469_v44  ;;  %7923 = vmatprep.subr.bf16.mxu0 %v8470_v6  ;;  %v655_v44 = vshrl.u32 %v499_v32, 16  ;;  %v633_v50 = vor.u32 %v632_v41, %v629_v40  ;;  %v685_v30 = vrot.slane %v683_v20, 4  ;;  %v510_v41 = vld [vmem:[%s11171_s0 + $0x15c] sm:$0x1]  ;;  %v6880_v17 = vld [vmem:[%s11171_s0 + $0xa0] sm:$0xf] }
  0x49   :  { %7955 = vmatprep.subr.bf16.mxu1 %v8473_v12  ;;  %v703_v46 = vor.u32 %v702_v36, %v699_v35  ;;  %v734_v49 = vshll.u32 %v510_v41, 16  ;;  %v730_v56 = vrot.slane %v728_v48, 5  ;;  %v6879_v10 = vld [vmem:[%s11171_s0 + $0x9c] sm:$0x1]  ;;  %v1486_v25 = vrot.slane %v1484_v15, 5 }
  0x4a   :  { %7876 = vmatmul.mubr.bf16.gmra.mxu0 %v6767_v34  ;;  %v657_v51 = vrot.slane %v655_v44, 4  ;;  %v634_v59 = vrot.slane %v633_v50, 4  ;;  %v711_v34 = vshrl.u32 %v507_v28, 16  ;;  %v689_v40 = vor.u32 %v688_v31, %v685_v30  ;;  %v9035_v50 = vld [vmem:[%s11170_s1 + $0x1f8] sm:$0xff]   ;;  %v6889_v9 = vld [vmem:[%s11171_s0 + $0xc4] sm:$0x1] }
  0x4b   :  { %7924 = vmatpush3.bf16.msra.mxu0 %v8470_v6  ;;  %7908 = vmatmul.mubr.bf16.gmra.mxu1 %v8472_v19  ;;  %v653_v6 = vsel %vm8855_vm2, %v648_v62, %v652_v47  ;;  %v506_v19 = vld [vmem:[%s11171_s0 + $0x14c] sm:$0x1]  ;;  %v725_v44 = vshrl.u32 %v509_v38, 16  ;;  %v704_v53 = vrot.slane %v703_v46, 4  ;;  %v736_v62 = vrot.slane %v734_v49, 5  ;;  %v8492_v38 = vld [vmem:[%s11170_s1 + $0x1b0] sm:$0xff]  }
  0x4c   :  { %7956 = vmatpush3.bf16.msra.mxu1 %v8473_v12  ;;  %7925 = vmatprep.subr.bf16.mxu0 %v8474_v16  ;;  %v661_v63 = vor.u32 %v660_v55, %v657_v51  ;;  %v639_v3 = vsel %vm8855_vm2, %v634_v59, %v638_v42  ;;  %v706_v27 = vshll.u32 %v506_v19, 16  ;;  %v713_v42 = vrot.slane %v711_v34, 4  ;;  %v8489_v19 = vld [vmem:[%s11171_s0 + $0xe8] ss:$8 sps:$4 sm:$0xff]  }
  0x4d   :  { %7957 = vmatprep.subr.bf16.mxu1 %v8475_v23  ;;  %v6768_v12 = vcombine.low %v639_v3, %v653_v6  ;;  %7911 = vmatprep.mubr.bf16.mxu1 %v8477_v4  ;;  %v690_v51 = vrot.slane %v689_v40, 4  ;;  %v727_v52 = vrot.slane %v725_v44, 4  ;;  %v8488_v4 = vld [vmem:[%s11171_s0 + $0xd8] ss:$8 sps:$4 sm:$0xff]   ;;  %v6876_v6 = vld [vmem:[%s11171_s0 + $0x90] sm:$0xf] }
  0x4e   :  { %v662_v7 = vrot.slane %v661_v63, 4  ;;  %v708_v37 = vrot.slane %v706_v27, 5  ;;  %v8484_v63 = vld [vmem:[%s11171_s0 + $0x1e0] ss:$8 sps:$4 sm:$0xff]   ;;  %v6883_v27 = vld [vmem:[%s11171_s0 + $0xac] sm:$0x1] }
  0x4f   :  { %7926 = vmatpush3.bf16.msra.mxu0 %v8474_v16  ;;  %7879 = vmatprep.mubr.bf16.mxu0 %v6768_v12  ;;  %v504_v16 = vld [vmem:[%s11171_s0 + $0x144] sm:$0x1]  ;;  %v1470_v12 = vshll.u32 %v6876_v6, 16 }
  0x50   :  { %7958 = vmatpush3.bf16.msra.mxu1 %v8475_v23  ;;  %7927 = vmatprep.subr.bf16.mxu0 %v8476_v33  ;;  %v667_v13 = vsel %vm8855_vm2, %v662_v7, %v666_v0  ;;  %v692_v22 = vshll.u32 %v504_v16, 16  ;;  %v8486_v23 = vld [vmem:[%s11170_s1 + $0x100] sm:$0xff]   ;;  %v709_v59 = vsel %vm8855_vm2, %v704_v53, %v708_v37  ;;  %v6877_v7 = vld [vmem:[%s11171_s0 + $0x94] sm:$0x1]  ;;  %v1490_v16 = vshll.u32 %v6879_v10, 16 }
  0x51   :  { %7959 = vmatprep.subr.bf16.mxu1 %v8479_v39  ;;  %v6769_v24 = vcombine.low %v667_v13, %v681_v18  ;;  %v1476_v13 = vshll.u32 %v6877_v7, 16  ;;  %v6881_v18 = vld [vmem:[%s11171_s0 + $0xa4] sm:$0x1]  ;;  %v1472_v21 = vrot.slane %v1470_v12, 5  ;;  %v1518_v37 = vshll.u32 %v6883_v27, 16 }
  0x52   :  { %v694_v32 = vrot.slane %v692_v22, 5  ;;  %v1492_v26 = vrot.slane %v1490_v16, 5  ;;  %v1504_v31 = vshll.u32 %v6881_v18, 16  ;;  %v8497_v16 = vld [vmem:[%s11170_s1 + $0x1e8] sm:$0xff]  }
  0x53   :  { %7928 = vmatpush3.bf16.msra.mxu0 %v8476_v33  ;;  %7912 = vmatmul.mubr.bf16.gmra.mxu1 %v8478_v11  ;;  %v508_v33 = vld [vmem:[%s11171_s0 + $0x154] sm:$0x1]  ;;  %v1467_v11 = vshrl.u32 %v6876_v6, 16  ;;  %v1478_v22 = vrot.slane %v1476_v13, 5  ;;  %v1520_v46 = vrot.slane %v1518_v37, 5 }
  0x54   :  { %7960 = vmatpush3.bf16.msra.mxu1 %v8479_v39  ;;  %7929 = vmatprep.subr.bf16.mxu0 %v8480_v58  ;;  %v714_v39 = vshll.u32 %v507_v28, 16  ;;  %v720_v43 = vshll.u32 %v508_v33, 16  ;;  %v695_v57 = vsel %vm8855_vm2, %v690_v51, %v694_v32  ;;  %v1495_v28 = vshrl.u32 %v6880_v17, 16 }
  0x55   :  { %7961 = vmatprep.subr.bf16.mxu1 %v8481_v61  ;;  %7880 = vmatmul.mubr.bf16.gmra.mxu0 %v6769_v24  ;;  %v6770_v0 = vcombine.low %v695_v57, %v709_v59  ;;  %v1469_v20 = vrot.slane %v1467_v11, 4  ;;  %v6882_v24 = vld [vmem:[%s11171_s0 + $0xa8] sm:$0xf]  ;;  %v1506_v40 = vrot.slane %v1504_v31, 5 }
  0x56   :  { %v716_v47 = vrot.slane %v714_v39, 5  ;;  %v722_v55 = vrot.slane %v720_v43, 5  ;;  %v1509_v32 = vshrl.u32 %v6882_v24, 16  ;;  %v1512_v33 = vshll.u32 %v6882_v24, 16 }
  0x57   :  { %7930 = vmatpush3.bf16.msra.mxu0 %v8480_v58  ;;  %v8483_v58 = vld [vmem:[%s11171_s0 + $0x1d0] ss:$8 sps:$4 sm:$0xff]   ;;  %7883 = vmatprep.mubr.bf16.mxu0 %v6770_v0  ;;  %v1473_v30 = vor.u32 %v1472_v21, %v1469_v20  ;;  %v1497_v35 = vrot.slane %v1495_v28, 4  ;;  %v6891_v20 = vld [vmem:[%s11171_s0 + $0xcc] sm:$0x1]  ;;  %v1560_v24 = vshll.u32 %v6889_v9, 16 }
  0x58   :  { %7962 = vmatpush3.bf16.msra.mxu1 %v8481_v61  ;;  %7931 = vmatprep.subr.bf16.mxu0 %v8482_v2  ;;  %v717_v54 = vor.u32 %v716_v47, %v713_v42  ;;  %v731_v61 = vor.u32 %v730_v56, %v727_v52  ;;  %v1511_v41 = vrot.slane %v1509_v32, 4  ;;  %v1514_v42 = vrot.slane %v1512_v33, 5  ;;  %v8494_v52 = vld [vmem:[%s11171_s0 + $0xf8] ss:$8 sps:$4 sm:$0xff]   ;;  %v8496_v56 = vld [vmem:[%s11170_s1 + $0x1a8] sm:$0xff]  }
  0x59   :  { %7963 = vmatprep.subr.bf16.mxu1 %v8485_v5  ;;  %7915 = vmatprep.mubr.bf16.mxu1 %v8483_v58  ;;  %v1474_v39 = vrot.slane %v1473_v30, 4  ;;  %v6884_v58 = vld [vmem:[%s11171_s0 + $0xb0] sm:$0xf]  ;;  %v1574_v28 = vshll.u32 %v6891_v20, 16  ;;  %v1562_v33 = vrot.slane %v1560_v24, 5 }
  0x5a   :  { %v718_v60 = vrot.slane %v717_v54, 4  ;;  %v1515_v48 = vor.u32 %v1514_v42, %v1511_v41  ;;  %v1523_v0 = vshrl.u32 %v6884_v58, 16  ;;  %v8500_v41 = vld [vmem:[%s11171_s0 + $0x1f8] ss:$8 sps:$4 sm:$0xff]  }
  0x5b   :  { %7932 = vmatpush3.bf16.msra.mxu0 %v8482_v2  ;;  %v732_v2 = vrot.slane %v731_v61, 4  ;;  %7916 = vmatmul.mubr.bf16.gmra.mxu1 %v8484_v63  ;;  %v1479_v47 = vsel %vm8855_vm2, %v1474_v39, %v1478_v22  ;;  %v6886_v61 = vld [vmem:[%s11171_s0 + $0xb8] sm:$0xf] }
  0x5c   :  { %7964 = vmatpush3.bf16.msra.mxu1 %v8485_v5  ;;  %7933 = vmatprep.subr.bf16.mxu0 %v8486_v23  ;;  %v723_v1 = vsel %vm8855_vm2, %v718_v60, %v722_v55  ;;  %v1516_v54 = vrot.slane %v1515_v48, 4  ;;  %v8495_v55 = vld [vmem:[%s11171_s0 + $0x108] ss:$8 sps:$4 sm:$0xff]   ;;  %v6885_v60 = vld [vmem:[%s11171_s0 + $0xb4] sm:$0x1]  ;;  %v1540_v6 = vshll.u32 %v6886_v61, 16 }
  0x5d   :  { %7965 = vmatprep.subr.bf16.mxu1 %v8487_v29  ;;  %v737_v3 = vsel %vm8855_vm2, %v732_v2, %v736_v62  ;;  %v6887_v62 = vld [vmem:[%s11171_s0 + $0xbc] sm:$0x1]  ;;  %v1532_v2 = vshll.u32 %v6885_v60, 16  ;;  %v1525_v11 = vrot.slane %v1523_v0, 4  ;;  %v6892_v48 = vld [vmem:[%s11171_s0 + $0x1b0] sm:$0xf] }
  0x5e   :  { %v6771_v5 = vcombine.low %v723_v1, %v737_v3  ;;  %v1521_v59 = vsel %vm8855_vm2, %v1516_v54, %v1520_v46  ;;  %v1526_v1 = vshll.u32 %v6884_v58, 16  ;;  %v6888_v3 = vld [vmem:[%s11171_s0 + $0xc0] sm:$0xf]  ;;  %v1546_v7 = vshll.u32 %v6887_v62, 16  ;;  %v6897_v62 = vld [vmem:[%s11171_s0 + $0x1c4] sm:$0x1] }
  0x5f   :  { %7934 = vmatpush3.bf16.msra.mxu0 %v8486_v23  ;;  %v1483_v23 = vrot.slane %v1481_v14, 4  ;;  %v1551_v10 = vshrl.u32 %v6888_v3, 16  ;;  %v1534_v13 = vrot.slane %v1532_v2, 5  ;;  %v6890_v14 = vld [vmem:[%s11171_s0 + $0xc8] sm:$0xf]  ;;  %v1554_v15 = vshll.u32 %v6888_v3, 16 }
  0x60   :  { %7966 = vmatpush3.bf16.msra.mxu1 %v8487_v29  ;;  %7983 = vmatprep.subr.bf16.mxu0 %v9030_v45  ;;  %v1498_v29 = vshll.u32 %v6880_v17, 16  ;;  %v1528_v12 = vrot.slane %v1526_v1, 5  ;;  %v1542_v18 = vrot.slane %v1540_v6, 5  ;;  %v1568_v27 = vshll.u32 %v6890_v14, 16  ;;  %v8508_v0 = vld [vmem:[%s11170_s1 + $0x188] sm:$0xff]  }
  0x61   :  { %8015 = vmatprep.subr.bf16.mxu1 %v9035_v50  ;;  %7884 = vmatmul.mubr.bf16.gmra.mxu0 %v6771_v5  ;;  %v1487_v34 = vor.u32 %v1486_v25, %v1483_v23  ;;  %v1537_v5 = vshrl.u32 %v6886_v61, 16  ;;  %v1553_v21 = vrot.slane %v1551_v10, 4  ;;  %v1556_v23 = vrot.slane %v1554_v15, 5  ;;  %v6899_v10 = vld [vmem:[%s11171_s0 + $0x1cc] sm:$0x1] }
  0x62   :  { %7935 = vmatprep.mubr.bf16.mxu0 %v8488_v4  ;;  %v1500_v36 = vrot.slane %v1498_v29, 5  ;;  %v8498_v4 = vld [vmem:[%s11170_s1 + $0x1a0] sm:$0xff]   ;;  %v1529_v22 = vor.u32 %v1528_v12, %v1525_v11  ;;  %v1565_v25 = vshrl.u32 %v6890_v14, 16  ;;  %v1616_v14 = vshll.u32 %v6897_v62, 16 }
  0x63   :  { %v1488_v43 = vrot.slane %v1487_v34, 4  ;;  %v1539_v17 = vrot.slane %v1537_v5, 4  ;;  %v1557_v30 = vor.u32 %v1556_v23, %v1553_v21  ;;  %v1570_v34 = vrot.slane %v1568_v27, 5 }
  0x64   :  { %v1501_v44 = vor.u32 %v1500_v36, %v1497_v35  ;;  %v1530_v29 = vrot.slane %v1529_v22, 4  ;;  %v1567_v31 = vrot.slane %v1565_v25, 4  ;;  %v8499_v35 = vld [vmem:[%s11170_s1 + $0x1e0] sm:$0xff]   ;;  %v1618_v25 = vrot.slane %v1616_v14, 5 }
  0x65   :  { %v1493_v49 = vsel %vm8855_vm2, %v1488_v43, %v1492_v26  ;;  %v8502_v26 = vld [vmem:[%s11170_s1 + $0x198] sm:$0xff]   ;;  %v1558_v37 = vrot.slane %v1557_v30, 4  ;;  %v8501_v43 = vld [vmem:[%s11171_s0 + $0x208] ss:$8 sps:$4 sm:$0xff]   ;;  %v8510_v22 = vld [vmem:[%s11170_s1 + $0x180] sm:$0xff]  }
  0x66   :  { %v1502_v51 = vrot.slane %v1501_v44, 4  ;;  %v6924_v53 = vcombine.low %v1479_v47, %v1493_v49  ;;  %v1535_v36 = vsel %vm8855_vm2, %v1530_v29, %v1534_v13  ;;  %v8503_v44 = vld [vmem:[%s11170_s1 + $0x1d8] sm:$0xff]   ;;  %v8504_v49 = vld [vmem:[%s11170_s1 + $0x190] sm:$0xff]  }
  0x67   :  { %v1563_v46 = vsel %vm8855_vm2, %v1558_v37, %v1562_v33  ;;  %v8506_v33 = vld [vmem:[%s11171_s0 + $0x218] ss:$8 sps:$4 sm:$0xff]  }
  0x68   :  { %v1507_v57 = vsel %vm8855_vm2, %v1502_v51, %v1506_v40  ;;  %7967 = vmatprep.mubr.bf16.mxu1 %v6924_v53  ;;  %v1571_v40 = vor.u32 %v1570_v34, %v1567_v31  ;;  %v6893_v51 = vld [vmem:[%s11171_s0 + $0x1b4] sm:$0x1]  ;;  %v6895_v53 = vld [vmem:[%s11171_s0 + $0x1bc] sm:$0x1] }
  0x69   :  { %7936 = vmatmul.mubr.bf16.vlgmr.msra.gmra.mxu0 %v8489_v19  ;;  %v6925_v63 = vcombine.low %v1507_v57, %v1521_v59  ;;  %v1548_v19 = vrot.slane %v1546_v7, 5  ;;  %v1588_v57 = vshll.u32 %v6893_v51, 16  ;;  %v1602_v61 = vshll.u32 %v6895_v53, 16  ;;  %v6904_v53 = vld [vmem:[%s11171_s0 + $0x1e0] sm:$0xf] }
  0x6a   :  { %7984 = vmatpush3.bf16.msra.mxu0 %v9030_v45  ;;  %v8493_v45 = vld [vmem:[%s11170_s1 + $0x1f0] sm:$0xff]   ;;  %7939 = vmatprep.mubr.bf16.mxu0 %v8494_v52  ;;  %v1572_v47 = vrot.slane %v1571_v40, 4  ;;  %v6894_v52 = vld [vmem:[%s11171_s0 + $0x1b8] sm:$0xf]  ;;  %v1666_v62 = vshll.u32 %v6904_v53, 16 }
  0x6b   :  { %7985 = vmatprep.subr.bf16.mxu0 %v8492_v38  ;;  %7968 = vmatmul.mubr.bf16.vlgmr.msra.gmra.mxu1 %v6925_v63  ;;  %v1593_v59 = vshrl.u32 %v6894_v52, 16  ;;  %v1596_v60 = vshll.u32 %v6894_v52, 16  ;;  %v8505_v63 = vld [vmem:[%s11170_s1 + $0x1d0] sm:$0xff]   ;;  %v1590_v3 = vrot.slane %v1588_v57, 5  ;;  %v1604_v9 = vrot.slane %v1602_v61, 5 }
  0x6c   :  { %8016 = vmatpush3.bf16.msra.mxu1 %v9035_v50  ;;  %v1543_v50 = vor.u32 %v1542_v18, %v1539_v17  ;;  %v6901_v40 = vld [vmem:[%s11171_s0 + $0x1d4] sm:$0x1]  ;;  %v6905_v57 = vld [vmem:[%s11171_s0 + $0x1e4] sm:$0x1]  ;;  %v6906_v61 = vld [vmem:[%s11171_s0 + $0x1e8] sm:$0xf] }
  0x6d   :  { %8017 = vmatprep.subr.bf16.mxu1 %v8493_v45  ;;  %v1595_v6 = vrot.slane %v1593_v59, 4  ;;  %v1598_v7 = vrot.slane %v1596_v60, 5 }
  0x6e   :  { %7986 = vmatpush3.bf16.msra.mxu0 %v8492_v38  ;;  %v1544_v32 = vrot.slane %v1543_v50, 4  ;;  %v1576_v38 = vrot.slane %v1574_v28, 5  ;;  %v8509_v50 = vld [vmem:[%s11170_s1 + $0x1c8] sm:$0xff]   ;;  %v9205_v28 = vld [vmem:[%s11170_s1 + $0x238] sm:$0xff]  }
  0x6f   :  { %7987 = vmatprep.subr.bf16.mxu0 %v8496_v56 }
  0x70   :  { %8018 = vmatpush3.bf16.msra.mxu1 %v8493_v45  ;;  %v1549_v39 = vsel %vm8855_vm2, %v1544_v32, %v1548_v19  ;;  %v1577_v54 = vsel %vm8855_vm2, %v1572_v47, %v1576_v38  ;;  %v6896_v45 = vld [vmem:[%s11171_s0 + $0x1c0] sm:$0xf]  ;;  %v1630_v19 = vshll.u32 %v6899_v10, 16  ;;  %v1644_v47 = vshll.u32 %v6901_v40, 16  ;;  %v8527_v40 = vld [vmem:[%s11171_s0 + $0x170] ss:$8 sps:$4 sm:$0xff]  }
  0x71   :  { %7940 = vmatmul.mubr.bf16.gmra.mxu0 %v8495_v55  ;;  %8019 = vmatprep.subr.bf16.mxu1 %v8497_v16  ;;  %v6926_v42 = vcombine.low %v1535_v36, %v1549_v39  ;;  %v1579_v55 = vshrl.u32 %v6892_v48, 16  ;;  %v6927_v58 = vcombine.low %v1563_v46, %v1577_v54  ;;  %v1607_v5 = vshrl.u32 %v6896_v45, 16  ;;  %v8511_v38 = vld [vmem:[%s11170_s1 + $0x1c0] sm:$0xff]   ;;  %v6900_v39 = vld [vmem:[%s11171_s0 + $0x1d0] sm:$0xf] }
  0x72   :  { %7988 = vmatpush3.bf16.msra.mxu0 %v8496_v56  ;;  %7943 = vmatprep.mubr.bf16.mxu0 %v8500_v41  ;;  %v1582_v56 = vshll.u32 %v6892_v48, 16  ;;  %v1610_v11 = vshll.u32 %v6896_v45, 16  ;;  %v1632_v32 = vrot.slane %v1630_v19, 5  ;;  %v6902_v41 = vld [vmem:[%s11171_s0 + $0x1d8] sm:$0xf]  ;;  %v1638_v46 = vshll.u32 %v6900_v39, 16 }
  0x73   :  { %7989 = vmatprep.subr.bf16.mxu0 %v8498_v4  ;;  %7971 = vmatprep.mubr.bf16.mxu1 %v6926_v42  ;;  %v1581_v1 = vrot.slane %v1579_v55, 4  ;;  %v1609_v13 = vrot.slane %v1607_v5, 4  ;;  %v1652_v51 = vshll.u32 %v6902_v41, 16  ;;  %v1663_v45 = vshrl.u32 %v6904_v53, 16  ;;  %v8535_v53 = vld [vmem:[%s11170_s1 + $0x200] sm:$0xff]  }
  0x74   :  { %8020 = vmatpush3.bf16.msra.mxu1 %v8497_v16  ;;  %v1584_v2 = vrot.slane %v1582_v56, 5  ;;  %v1599_v16 = vor.u32 %v1598_v7, %v1595_v6  ;;  %v1612_v17 = vrot.slane %v1610_v11, 5  ;;  %v1640_v55 = vrot.slane %v1638_v46, 5  ;;  %v7038_v46 = vld [vmem:[%s11171_s0 + $0x10] sm:$0xf] }
  0x75   :  { %8021 = vmatprep.subr.bf16.mxu1 %v8499_v35  ;;  %7972 = vmatmul.mubr.bf16.gmra.mxu1 %v6927_v58  ;;  %v1646_v56 = vrot.slane %v1644_v47, 5  ;;  %v1654_v59 = vrot.slane %v1652_v51, 5  ;;  %v1668_v5 = vrot.slane %v1666_v62, 5  ;;  %v1680_v6 = vshll.u32 %v6906_v61, 16  ;;  %v7039_v47 = vld [vmem:[%s11171_s0 + $0x14] sm:$0x1] }
  0x76   :  { %7990 = vmatpush3.bf16.msra.mxu0 %v8498_v4  ;;  %v6898_v4 = vld [vmem:[%s11171_s0 + $0x1c8] sm:$0xf]  ;;  %v1585_v12 = vor.u32 %v1584_v2, %v1581_v1  ;;  %v1600_v23 = vrot.slane %v1599_v16, 4  ;;  %v1613_v24 = vor.u32 %v1612_v17, %v1609_v13  ;;  %v1665_v1 = vrot.slane %v1663_v45, 4  ;;  %v7042_v62 = vld [vmem:[%s11171_s0 + $0x20] sm:$0xf] }
  0x77   :  { %7991 = vmatprep.subr.bf16.mxu0 %v8502_v26  ;;  %v1621_v15 = vshrl.u32 %v6898_v4, 16  ;;  %v1624_v18 = vshll.u32 %v6898_v4, 16  ;;  %v1672_v2 = vshll.u32 %v6905_v57, 16  ;;  %v1682_v14 = vrot.slane %v1680_v6, 5  ;;  %v7041_v57 = vld [vmem:[%s11171_s0 + $0x1c] sm:$0x1] }
  0x78   :  { %8022 = vmatpush3.bf16.msra.mxu1 %v8499_v35  ;;  %v1586_v20 = vrot.slane %v1585_v12, 4  ;;  %v1605_v29 = vsel %vm8855_vm2, %v1600_v23, %v1604_v9  ;;  %v1614_v30 = vrot.slane %v1613_v24, 4  ;;  %v8507_v35 = vld [vmem:[%s11171_s0 + $0x228] ss:$8 sps:$4 sm:$0xff]   ;;  %v1669_v12 = vor.u32 %v1668_v5, %v1665_v1  ;;  %v8513_v24 = vld [vmem:[%s11171_s0 + $0x18] ss:$8 sps:$4 sm:$0xff]  }
  0x79   :  { %7944 = vmatmul.mubr.bf16.gmra.mxu0 %v8501_v43  ;;  %8023 = vmatprep.subr.bf16.mxu1 %v8503_v44  ;;  %v1623_v21 = vrot.slane %v1621_v15, 4  ;;  %v6903_v43 = vld [vmem:[%s11171_s0 + $0x1dc] sm:$0x1]  ;;  %v1674_v13 = vrot.slane %v1672_v2, 5  ;;  %v8528_v45 = vld [vmem:[%s11171_s0 + $0x180] ss:$8 sps:$4 sm:$0xff]  }
  0x7a   :  { %7992 = vmatpush3.bf16.msra.mxu0 %v8502_v26  ;;  %v1626_v26 = vrot.slane %v1624_v18, 5  ;;  %v1591_v27 = vsel %vm8855_vm2, %v1586_v20, %v1590_v3  ;;  %v1619_v36 = vsel %vm8855_vm2, %v1614_v30, %v1618_v25  ;;  %7947 = vmatprep.mubr.bf16.mxu0 %v8506_v33  ;;  %v1658_v52 = vshll.u32 %v6903_v43, 16  ;;  %v8517_v25 = vld [vmem:[%s11170_s1 + $0x230] sm:$0xff]   ;;  %v7036_v43 = vld [vmem:[%s11171_s0 + $0x8] sm:$0xf] }
  0x7b   :  { %7993 = vmatprep.subr.bf16.mxu0 %v8504_v49  ;;  %v6928_v34 = vcombine.low %v1591_v27, %v1605_v29  ;;  %v1677_v3 = vshrl.u32 %v6906_v61, 16  ;;  %v1670_v17 = vrot.slane %v1669_v12, 4  ;;  %v8520_v29 = vld [vmem:[%s11170_s1 + $0x228] sm:$0xff]   ;;  %v8521_v33 = vld [vmem:[%s11171_s0 + $0x70] ss:$8 sps:$4 sm:$0xff]   ;;  %v2456_v6 = vshll.u32 %v7041_v57, 16 }
  0x7c   :  { %8024 = vmatpush3.bf16.msra.mxu1 %v8503_v44  ;;  %v1627_v31 = vor.u32 %v1626_v26, %v1623_v21  ;;  %v1635_v44 = vshrl.u32 %v6900_v39, 16  ;;  %v1660_v60 = vrot.slane %v1658_v52, 5  ;;  %v8512_v21 = vld [vmem:[%s11171_s0 + $0x8] ss:$8 sps:$4 sm:$0xff]   ;;  %v2433_v52 = vshrl.u32 %v7038_v46, 16 }
  0x7d   :  { %8025 = vmatprep.subr.bf16.mxu1 %v8505_v63  ;;  %7975 = vmatprep.mubr.bf16.mxu1 %v6928_v34  ;;  %v1679_v10 = vrot.slane %v1677_v3, 4  ;;  %v8518_v30 = vld [vmem:[%s11171_s0 + $0x28] ss:$8 sps:$4 sm:$0xff]   ;;  %v7043_v2 = vld [vmem:[%s11171_s0 + $0x24] sm:$0x1] }
  0x7e   :  { %7994 = vmatpush3.bf16.msra.mxu0 %v8504_v49  ;;  %v1628_v37 = vrot.slane %v1627_v31, 4  ;;  %v1649_v49 = vshrl.u32 %v6902_v41, 16  ;;  %v1637_v54 = vrot.slane %v1635_v44, 4  ;;  %v8519_v31 = vld [vmem:[%s11171_s0 + $0x38] ss:$8 sps:$4 sm:$0xff]   ;;  %v8532_v41 = vld [vmem:[%s11170_s1 + $0x208] sm:$0xff]  }
  0x7f   :  { %7995 = vmatprep.subr.bf16.mxu0 %v8508_v0  ;;  %v1683_v18 = vor.u32 %v1682_v14, %v1679_v10  ;;  %v8524_v34 = vld [vmem:[%s11171_s0 + $0x128] ss:$8 sps:$4 sm:$0xff]   ;;  %v7037_v44 = vld [vmem:[%s11171_s0 + $0xc] sm:$0x1]  ;;  %v2435_v61 = vrot.slane %v2433_v52, 4  ;;  %v2470_v14 = vshll.u32 %v7043_v2, 16 }
  0x80   :  { %8026 = vmatpush3.bf16.msra.mxu1 %v8505_v63  ;;  %v1633_v42 = vsel %vm8855_vm2, %v1628_v37, %v1632_v32  ;;  %v1651_v58 = vrot.slane %v1649_v49, 4  ;;  %v1641_v63 = vor.u32 %v1640_v55, %v1637_v54  ;;  %v8516_v32 = vld [vmem:[%s11171_s0 + $0x60] ss:$8 sps:$4 sm:$0xff]   ;;  %v8529_v37 = vld [vmem:[%s11170_s1 + $0x210] sm:$0xff]   ;;  %v2422_v49 = vshll.u32 %v7036_v43, 16 }
  0x81   :  { %8027 = vmatprep.subr.bf16.mxu1 %v8509_v50  ;;  %7948 = vmatmul.mubr.bf16.gmra.mxu0 %v8507_v35  ;;  %v6929_v48 = vcombine.low %v1619_v36, %v1633_v42  ;;  %v1684_v23 = vrot.slane %v1683_v18, 4  ;;  %v8526_v35 = vld [vmem:[%s11170_s1 + $0x218] sm:$0xff]   ;;  %v8522_v39 = vld [vmem:[%s11171_s0 + $0x80] ss:$8 sps:$4 sm:$0xff]   ;;  %v2428_v51 = vshll.u32 %v7037_v44, 16  ;;  %v2436_v54 = vshll.u32 %v7038_v46, 16 }
  0x82   :  { %7996 = vmatpush3.bf16.msra.mxu0 %v8508_v0  ;;  %v6907_v0 = vld [vmem:[%s11171_s0 + $0x1ec] sm:$0x1]  ;;  %v1655_v4 = vor.u32 %v1654_v59, %v1651_v58  ;;  %v1642_v9 = vrot.slane %v1641_v63, 4  ;;  %7999 = vmatprep.mubr.bf16.mxu0 %v8512_v21  ;;  %v8525_v36 = vld [vmem:[%s11171_s0 + $0x138] ss:$8 sps:$4 sm:$0xff]   ;;  %v2442_v55 = vshll.u32 %v7039_v47, 16 }
  0x83   :  { %7997 = vmatprep.subr.bf16.mxu0 %v8510_v22  ;;  %7976 = vmatmul.mubr.bf16.gmra.mxu1 %v6929_v48  ;;  %v1686_v7 = vshll.u32 %v6907_v0, 16  ;;  %v8531_v42 = vld [vmem:[%s11171_s0 + $0x158] ss:$8 sps:$4 sm:$0xff]   ;;  %v2419_v48 = vshrl.u32 %v7036_v43, 16  ;;  %v2424_v59 = vrot.slane %v2422_v49, 5  ;;  %v2438_v0 = vrot.slane %v2436_v54, 5 }
  0x84   :  { %8028 = vmatpush3.bf16.msra.mxu1 %v8509_v50  ;;  %v1656_v11 = vrot.slane %v1655_v4, 4  ;;  %v1647_v15 = vsel %vm8855_vm2, %v1642_v9, %v1646_v56  ;;  %v8515_v50 = vld [vmem:[%s11171_s0 + $0x50] ss:$8 sps:$4 sm:$0xff]   ;;  %v2444_v1 = vrot.slane %v2442_v55, 5  ;;  %v2464_v9 = vshll.u32 %v7042_v62, 16 }
  0x85   :  { %8029 = vmatprep.subr.bf16.mxu1 %v8511_v38  ;;  %v1688_v19 = vrot.slane %v1686_v7, 5  ;;  %v7040_v56 = vld [vmem:[%s11171_s0 + $0x18] sm:$0xf]  ;;  %v2421_v58 = vrot.slane %v2419_v48, 4  ;;  %v2461_v7 = vshrl.u32 %v7042_v62, 16 }
  0x86   :  { %7998 = vmatpush3.bf16.msra.mxu0 %v8510_v22  ;;  %v1661_v16 = vsel %vm8855_vm2, %v1656_v11, %v1660_v60  ;;  %v1675_v22 = vsel %vm8855_vm2, %v1670_v17, %v1674_v13  ;;  %v2430_v60 = vrot.slane %v2428_v51, 5  ;;  %v8533_v63 = vld [vmem:[%s11171_s0 + $0x190] ss:$8 sps:$4 sm:$0xff]   ;;  %v2447_v3 = vshrl.u32 %v7040_v56, 16  ;;  %v7044_v10 = vld [vmem:[%s11171_s0 + $0x28] sm:$0xf] }
  0x87   :  { %8047 = vmatprep.subr.bf16.mxu0 %v9205_v28  ;;  %v6930_v20 = vcombine.low %v1647_v15, %v1661_v16  ;;  %v1689_v26 = vsel %vm8855_vm2, %v1684_v23, %v1688_v19  ;;  %v2450_v4 = vshll.u32 %v7040_v56, 16  ;;  %v2425_v5 = vor.u32 %v2424_v59, %v2421_v58  ;;  %v7045_v15 = vld [vmem:[%s11171_s0 + $0x2c] sm:$0x1]  ;;  %v7050_v43 = vld [vmem:[%s11171_s0 + $0x40] sm:$0xf] }
  0x88   :  { %8030 = vmatpush3.bf16.msra.mxu1 %v8511_v38  ;;  %v6931_v27 = vcombine.low %v1675_v22, %v1689_v26  ;;  %v8530_v38 = vld [vmem:[%s11171_s0 + $0x148] ss:$8 sps:$4 sm:$0xff]   ;;  %v2439_v11 = vor.u32 %v2438_v0, %v2435_v61  ;;  %v2449_v12 = vrot.slane %v2447_v3, 4  ;;  %v2458_v17 = vrot.slane %v2456_v6, 5  ;;  %v7051_v48 = vld [vmem:[%s11171_s0 + $0x44] sm:$0x1] }
  0x89   :  { %7979 = vmatprep.mubr.bf16.mxu1 %v6930_v20  ;;  %8000 = vmatmul.mubr.bf16.vlgmr.msra.gmra.mxu0 %v8513_v24  ;;  %v2452_v13 = vrot.slane %v2450_v4, 5  ;;  %v2426_v16 = vrot.slane %v2425_v5, 4  ;;  %v2463_v18 = vrot.slane %v2461_v7, 4  ;;  %v2466_v19 = vrot.slane %v2464_v9, 5  ;;  %v7046_v20 = vld [vmem:[%s11171_s0 + $0x30] sm:$0xf] }
  0x8a   :  { %8048 = vmatpush3.bf16.msra.mxu0 %v9205_v28  ;;  %8003 = vmatprep.mubr.bf16.mxu0 %v8518_v30  ;;  %v8523_v28 = vld [vmem:[%s11170_s1 + $0x220] sm:$0xff]   ;;  %v2440_v21 = vrot.slane %v2439_v11, 4  ;;  %v2472_v23 = vrot.slane %v2470_v14, 5  ;;  %v2475_v24 = vshrl.u32 %v7044_v10, 16  ;;  %v7052_v56 = vld [vmem:[%s11171_s0 + $0x128] sm:$0xf] }
  0x8b   :  { %8049 = vmatprep.subr.bf16.mxu0 %v8517_v25  ;;  %7980 = vmatmul.mubr.bf16.gmra.mxu1 %v6931_v27  ;;  %v2453_v22 = vor.u32 %v2452_v13, %v2449_v12  ;;  %v2467_v26 = vor.u32 %v2466_v19, %v2463_v18  ;;  %v2478_v27 = vshll.u32 %v7044_v10, 16  ;;  %v8534_v44 = vld [vmem:[%s11171_s0 + $0x1a0] ss:$8 sps:$4 sm:$0xff]   ;;  %v2517_v59 = vshrl.u32 %v7050_v43, 16  ;;  %v7055_v10 = vld [vmem:[%s11171_s0 + $0x134] sm:$0x1] }
  0x8c   :  { %8031 = vmatprep.mubr.bf16.mxu1 %v8515_v50  ;;  %v7047_v50 = vld [vmem:[%s11171_s0 + $0x34] sm:$0x1]  ;;  %v2445_v30 = vsel %vm8855_vm2, %v2440_v21, %v2444_v1  ;;  %v2526_v0 = vshll.u32 %v7051_v48, 16  ;;  %v7054_v1 = vld [vmem:[%s11171_s0 + $0x130] sm:$0xf]  ;;  %v2531_v5 = vshrl.u32 %v7052_v56, 16 }
  0x8d   :  { %v2519_v4 = vrot.slane %v2517_v59, 4  ;;  %v2534_v11 = vshll.u32 %v7052_v56, 16  ;;  %v7057_v21 = vld [vmem:[%s11171_s0 + $0x13c] sm:$0x1] }
  0x8e   :  { %8050 = vmatpush3.bf16.msra.mxu0 %v8517_v25  ;;  %v2431_v25 = vsel %vm8855_vm2, %v2426_v16, %v2430_v60  ;;  %v7053_v60 = vld [vmem:[%s11171_s0 + $0x12c] sm:$0x1]  ;;  %v2528_v9 = vrot.slane %v2526_v0, 5  ;;  %v2533_v13 = vrot.slane %v2531_v5, 4  ;;  %v7056_v16 = vld [vmem:[%s11171_s0 + $0x138] sm:$0xf] }
  0x8f   :  { %8051 = vmatprep.subr.bf16.mxu0 %v8520_v29  ;;  %v2540_v14 = vshll.u32 %v7053_v60, 16  ;;  %v2536_v19 = vrot.slane %v2534_v11, 5 }
  0x91   :  { %8004 = vmatmul.mubr.bf16.gmra.mxu0 %v8519_v31  ;;  %v2454_v31 = vrot.slane %v2453_v22, 4  ;;  %v7058_v22 = vld [vmem:[%s11171_s0 + $0x140] sm:$0xf] }
  0x92   :  { %8052 = vmatpush3.bf16.msra.mxu0 %v8520_v29  ;;  %8007 = vmatprep.mubr.bf16.mxu0 %v8524_v34  ;;  %v2484_v29 = vshll.u32 %v7045_v15, 16  ;;  %v7084_v34 = vcombine.low %v2431_v25, %v2445_v30  ;;  %v2545_v15 = vshrl.u32 %v7054_v1, 16  ;;  %v2542_v25 = vrot.slane %v2540_v14, 5  ;;  %v7067_v14 = vld [vmem:[%s11171_s0 + $0x164] sm:$0x1] }
  0x93   :  { %8053 = vmatprep.subr.bf16.mxu0 %v8523_v28  ;;  %8032 = vmatmul.mubr.bf16.vlgmr.msra.gmra.mxu1 %v8516_v32  ;;  %v2489_v32 = vshrl.u32 %v7046_v20, 16  ;;  %v2554_v30 = vshll.u32 %v7055_v10, 16 }
  0x94   :  { %8035 = vmatprep.mubr.bf16.mxu1 %v8521_v33  ;;  %v7048_v33 = vld [vmem:[%s11171_s0 + $0x38] sm:$0xf] }
  0x95   :  { %v2503_v49 = vshrl.u32 %v7048_v33, 16  ;;  %v2506_v51 = vshll.u32 %v7048_v33, 16  ;;  %v2562_v33 = vshll.u32 %v7056_v16, 16 }
  0x96   :  { %8054 = vmatpush3.bf16.msra.mxu0 %v8523_v28  ;;  %v2477_v28 = vrot.slane %v2475_v24, 4 }
  0x97   :  { %8055 = vmatprep.subr.bf16.mxu0 %v8526_v35  ;;  %v2508_v58 = vrot.slane %v2506_v51, 5  ;;  %v2576_v51 = vshll.u32 %v7058_v22, 16 }
  0x99   :  { %8008 = vmatmul.mubr.bf16.gmra.mxu0 %v8525_v36  ;;  %v2480_v36 = vrot.slane %v2478_v27, 5  ;;  %v2537_v27 = vor.u32 %v2536_v19, %v2533_v13 }
  0x9a   :  { %8056 = vmatpush3.bf16.msra.mxu0 %v8526_v35  ;;  %8011 = vmatprep.mubr.bf16.mxu0 %v8530_v38  ;;  %v2468_v35 = vrot.slane %v2467_v26, 4  ;;  %v7049_v38 = vld [vmem:[%s11171_s0 + $0x3c] sm:$0x1]  ;;  %v2547_v26 = vrot.slane %v2545_v15, 4 }
  0x9b   :  { %8057 = vmatprep.subr.bf16.mxu0 %v8529_v37  ;;  %8036 = vmatmul.mubr.bf16.gmra.mxu1 %v8522_v39  ;;  %v2459_v39 = vsel %vm8855_vm2, %v2454_v31, %v2458_v17  ;;  %v2481_v47 = vor.u32 %v2480_v36, %v2477_v28  ;;  %v2512_v55 = vshll.u32 %v7049_v38, 16  ;;  %v7059_v31 = vld [vmem:[%s11171_s0 + $0x144] sm:$0x1]  ;;  %v7060_v28 = vld [vmem:[%s11171_s0 + $0x148] sm:$0xf] }
  0x9c   :  { %8039 = vmatprep.mubr.bf16.mxu1 %v8527_v40  ;;  %v2491_v40 = vrot.slane %v2489_v32, 4  ;;  %v2473_v46 = vsel %vm8855_vm2, %v2468_v35, %v2472_v23  ;;  %v2559_v32 = vshrl.u32 %v7056_v16, 16  ;;  %v2573_v35 = vshrl.u32 %v7058_v22, 16  ;;  %v7061_v36 = vld [vmem:[%s11171_s0 + $0x14c] sm:$0x1] }
  0x9d   :  { %v7085_v52 = vcombine.low %v2459_v39, %v2473_v46  ;;  %v2482_v57 = vrot.slane %v2481_v47, 4  ;;  %v2514_v62 = vrot.slane %v2512_v55, 5  ;;  %v2538_v39 = vrot.slane %v2537_v27, 4 }
  0x9e   :  { %8058 = vmatpush3.bf16.msra.mxu0 %v8529_v37  ;;  %v2486_v37 = vrot.slane %v2484_v29, 5  ;;  %v2582_v55 = vshll.u32 %v7059_v31, 16  ;;  %v2587_v56 = vshrl.u32 %v7060_v28, 16  ;;  %v2596_v59 = vshll.u32 %v7061_v36, 16 }
  0x9f   :  { %8059 = vmatprep.subr.bf16.mxu0 %v8532_v41  ;;  %v2543_v47 = vsel %vm8855_vm2, %v2538_v39, %v2542_v25 }
  0xa0   :  { %v2487_v2 = vsel %vm8855_vm2, %v2482_v57, %v2486_v37  ;;  %v7062_v37 = vld [vmem:[%s11171_s0 + $0x150] sm:$0xf]  ;;  %v2590_v57 = vshll.u32 %v7060_v28, 16  ;;  %v2589_v0 = vrot.slane %v2587_v56, 4  ;;  %v2598_v5 = vrot.slane %v2596_v59, 5 }
  0xa1   :  { %8012 = vmatmul.mubr.bf16.gmra.mxu0 %v8531_v42  ;;  %v2498_v42 = vshll.u32 %v7047_v50, 16  ;;  %v2601_v60 = vshrl.u32 %v7062_v37, 16 }
  0xa2   :  { %8060 = vmatpush3.bf16.msra.mxu0 %v8532_v41  ;;  %v2492_v41 = vshll.u32 %v7046_v20, 16  ;;  %8063 = vmatprep.mubr.bf16.mxu0 %v7084_v34  ;;  %v2548_v20 = vshll.u32 %v7054_v1, 16  ;;  %v2568_v34 = vshll.u32 %v7057_v21, 16  ;;  %v7066_v1 = vld [vmem:[%s11171_s0 + $0x160] sm:$0xf] }
  0xa3   :  { %8061 = vmatprep.subr.bf16.mxu0 %v8535_v53  ;;  %8040 = vmatmul.mubr.bf16.gmra.mxu1 %v8528_v45  ;;  %v2500_v54 = vrot.slane %v2498_v42, 5  ;;  %v2505_v45 = vrot.slane %v2503_v49, 4  ;;  %v2575_v49 = vrot.slane %v2573_v35, 4  ;;  %v2629_v19 = vshrl.u32 %v7066_v1, 16 }
  0xa4   :  { %8043 = vmatprep.mubr.bf16.mxu1 %v8533_v63  ;;  %v2520_v63 = vshll.u32 %v7050_v43, 16  ;;  %v2550_v29 = vrot.slane %v2548_v20, 5  ;;  %v2561_v43 = vrot.slane %v2559_v32, 4  ;;  %v2570_v46 = vrot.slane %v2568_v34, 5 }
  0xa5   :  { %v2509_v3 = vor.u32 %v2508_v58, %v2505_v45  ;;  %v2578_v58 = vrot.slane %v2576_v51, 5 }
  0xa6   :  { %8062 = vmatpush3.bf16.msra.mxu0 %v8535_v53  ;;  %v2494_v53 = vrot.slane %v2492_v41, 5  ;;  %v2522_v7 = vrot.slane %v2520_v63, 5  ;;  %v2556_v41 = vrot.slane %v2554_v30, 5 }
  0xa7   :  { %v2510_v12 = vrot.slane %v2509_v3, 4  ;;  %v2584_v3 = vrot.slane %v2582_v55, 5 }
  0xa8   :  { %v2495_v61 = vor.u32 %v2494_v53, %v2491_v40  ;;  %v2523_v18 = vor.u32 %v2522_v7, %v2519_v4  ;;  %v2551_v40 = vor.u32 %v2550_v29, %v2547_v26  ;;  %v7064_v53 = vld [vmem:[%s11171_s0 + $0x158] sm:$0xf]  ;;  %v2592_v4 = vrot.slane %v2590_v57, 5 }
  0xa9   :  { %8064 = vmatmul.mubr.bf16.vlgmr.msra.gmra.mxu0 %v7085_v52  ;;  %v2515_v24 = vsel %vm8855_vm2, %v2510_v12, %v2514_v62  ;;  %v7063_v52 = vld [vmem:[%s11171_s0 + $0x154] sm:$0x1]  ;;  %v2604_v7 = vshll.u32 %v7062_v37, 16  ;;  %v2615_v10 = vshrl.u32 %v7064_v53, 16  ;;  %v2618_v15 = vshll.u32 %v7064_v53, 16 }
  0xaa   :  { %v2496_v6 = vrot.slane %v2495_v61, 4  ;;  %v2524_v50 = vrot.slane %v2523_v18, 4  ;;  %v2552_v48 = vrot.slane %v2551_v40, 4  ;;  %v7065_v61 = vld [vmem:[%s11171_s0 + $0x15c] sm:$0x1]  ;;  %v2593_v13 = vor.u32 %v2592_v4, %v2589_v0 }
  0xab   :  { %8044 = vmatmul.mubr.bf16.gmra.mxu1 %v8534_v44  ;;  %v2564_v44 = vrot.slane %v2562_v33, 5  ;;  %v2606_v16 = vrot.slane %v2604_v7, 5  ;;  %v2624_v18 = vshll.u32 %v7065_v61, 16  ;;  %v2631_v26 = vrot.slane %v2629_v19, 4 }
  0xac   :  { %v2501_v17 = vsel %vm8855_vm2, %v2496_v6, %v2500_v54  ;;  %v2529_v38 = vsel %vm8855_vm2, %v2524_v50, %v2528_v9  ;;  %v2557_v45 = vsel %vm8855_vm2, %v2552_v48, %v2556_v41  ;;  %v2603_v6 = vrot.slane %v2601_v60, 4 }
  0xad   :  { %v7086_v23 = vcombine.low %v2487_v2, %v2501_v17  ;;  %v7087_v42 = vcombine.low %v2515_v24, %v2529_v38  ;;  %v2565_v54 = vor.u32 %v2564_v44, %v2561_v43  ;;  %v7088_v62 = vcombine.low %v2543_v47, %v2557_v45 }
  0xae   :  { %v2579_v2 = vor.u32 %v2578_v58, %v2575_v49  ;;  %v2610_v9 = vshll.u32 %v7063_v52, 16  ;;  %v2617_v17 = vrot.slane %v2615_v10, 4  ;;  %v2594_v21 = vrot.slane %v2593_v13, 4 }
  0xaf   :  { %8067 = vmatprep.mubr.bf16.mxu0 %v7086_v23  ;;  %v2566_v63 = vrot.slane %v2565_v54, 4  ;;  %v2620_v23 = vrot.slane %v2618_v15, 5  ;;  %v2607_v25 = vor.u32 %v2606_v16, %v2603_v6  ;;  %v2632_v50 = vshll.u32 %v7066_v1, 16 }
  0xb0   :  { %v2580_v12 = vrot.slane %v2579_v2, 4  ;;  %v2612_v22 = vrot.slane %v2610_v9, 5  ;;  %v2638_v29 = vshll.u32 %v7067_v14, 16  ;;  %v2599_v30 = vsel %vm8855_vm2, %v2594_v21, %v2598_v5 }
  0xb1   :  { %8068 = vmatmul.mubr.bf16.gmra.mxu0 %v7087_v42  ;;  %v2571_v11 = vsel %vm8855_vm2, %v2566_v63, %v2570_v46  ;;  %v2621_v27 = vor.u32 %v2620_v23, %v2617_v17  ;;  %v2608_v31 = vrot.slane %v2607_v25, 4  ;;  %v2626_v28 = vrot.slane %v2624_v18, 5 }
  0xb2   :  { %8071 = vmatprep.mubr.bf16.mxu0 %v7088_v62  ;;  %v2585_v20 = vsel %vm8855_vm2, %v2580_v12, %v2584_v3  ;;  %v2634_v32 = vrot.slane %v2632_v50, 5  ;;  %v2640_v36 = vrot.slane %v2638_v29, 5  ;;  %v8536_v50 = vld [vmem:[%s11172_s3 + $0x38] sm:$0xff]  }
  0xb3   :  { %v7089_v24 = vcombine.low %v2571_v11, %v2585_v20  ;;  %v2622_v33 = vrot.slane %v2621_v27, 4  ;;  %v2613_v34 = vsel %vm8855_vm2, %v2608_v31, %v2612_v22  ;;  %8111 = vmatprep.subr.bf16.mxu0 %v8536_v50 }
  0xb4   :  { %v2635_v35 = vor.u32 %v2634_v32, %v2631_v26  ;;  %v7090_v37 = vcombine.low %v2599_v30, %v2613_v34  ;;  %8112 = vmatpush3.bf16.msra.mxu0 %v8536_v50  ;;  %v11185_v34 = vmov 0  ;;  %v8542_v50 = vld [vmem:[%s11172_s3 + $0x18] sm:$0xff]  }
  0xb5   :  { %v2627_v38 = vsel %vm8855_vm2, %v2622_v33, %v2626_v28  ;;  %v2912_v28 = vld [vmem:[#allocation2 + $0x18] sm:$0x1]  ;;  %v11186_v34 = vsel %vm9502_vm5, 4294967295, %v11185_v34 }
  0xb6   :  { %v2636_v39 = vrot.slane %v2635_v35, 4  ;;  %11187 = vst [vmem:[#allocation3_spill] sm:$0xff] %v11186_v34  ;;  %v2974_v35 = vld [vmem:[#allocation2 + $0x1c] sm:$0x1] }
  0xb8   :  { %v2641_v40 = vsel %vm8855_vm2, %v2636_v39, %v2640_v36  ;;  %v2913_v36 = vsel %vm9502_vm5, 0, %v2912_v28 }
  0xb9   :  { %8072 = vmatmul.mubr.bf16.gmra.mxu0 %v7089_v24  ;;  %v7091_v41 = vcombine.low %v2627_v38, %v2641_v40  ;;  %v8537_v38 = vld [vmem:[%s11172_s3 + $0x30] sm:$0xff]   ;;  %2914 = vst [vmem:[#allocation2 + $0x18] sm:$0x1] %v2913_v36  ;;  %v2975_v40 = vsel %vm9509_vm7, 0, %v2974_v35  ;;  %v8650_v36 = vmov 0  }
  0xba   :  { %8075 = vmatprep.mubr.bf16.mxu0 %v7090_v37  ;;  %v11188_v37 = vmov 0  ;;  %2976 = vst [vmem:[#allocation2 + $0x1c] sm:$0x1] %v2975_v40  ;;  %8113 = vmatprep.subr.bf16.mxu0 %v8537_v38  ;;  %2891 = vst [vmem:[#allocation2] sm:$0xf] %v8650_v36 }
  0xbb   :  { %v11189_v37 = vsel %vm9509_vm7, 4294967295, %v11188_v37  ;;  %8114 = vmatpush3.bf16.msra.mxu0 %v8537_v38  ;;  %2892 = vst [vmem:[#allocation2 + $0x4] sm:$0x1] %v8650_v36  ;;  %2893 = vst [vmem:[#allocation2 + $0x50] sm:$0xf] %v8650_v36 }
  0xbc   :  { %11190 = vst [vmem:[#allocation4_spill] sm:$0xff] %v11189_v37  ;;  %2894 = vst [vmem:[#allocation2 + $0x54] sm:$0x1] %v8650_v36  ;;  %v2927_v40 = vld [vmem:[#allocation2 + $0x40] sm:$0x1] }
  0xbd   :  { %2896 = vst [vmem:[#allocation2 + $0x48] sm:$0xf] %v8650_v36  ;;  %2897 = vst [vmem:[#allocation2 + $0x4c] sm:$0x1] %v8650_v36 }
  0xbe   :  { %2898 = vst [vmem:[#allocation2 + $0x98] sm:$0xf] %v8650_v36  ;;  %2899 = vst [vmem:[#allocation2 + $0x9c] sm:$0x1] %v8650_v36  ;;  %v3007_v36 = vld [vmem:[#allocation2 + $0x74] sm:$0x1] }
  0xc1   :  { %8076 = vmatmul.mubr.bf16.gmra.mxu0 %v7091_v41 }
  0xe2   :  { %v7809_v42 = vpop.f32.mrf.mxu0 }
  0xe3   :  { %v7841_v43 = vpop.f32.mrf.mxu1 }
  0xe4   :  { %v425_v44 = vadd.f32 %v7841_v43, %v7809_v42  ;;  %v223_v46 = vpop.f32.mrf.mxu0  ;;  %v8538_v43 = vld [vmem:[%s11172_s3 + $0x28] sm:$0xff]  }
  0xe5   :  { %v416_v47 = vpop.f32.mrf.mxu1  ;;  %8115 = vmatprep.subr.bf16.mxu0 %v8538_v43 }
  0xe6   :  { %v417_v48 = vadd.f32 %v416_v47, %v223_v46  ;;  %v7810_v49 = vpop.f32.mrf.mxu0  ;;  %v2968_v46 = vld [vmem:[#allocation2 + $0xc] sm:$0x1]  ;;  %8116 = vmatpush3.bf16.msra.mxu0 %v8538_v43  ;;  %v2989_v43 = vld [vmem:[#allocation2 + $0x44] sm:$0x1] }
  0xe7   :  { %v7842_v51 = vpop.f32.mrf.mxu1 }
  0xe8   :  { %v428_v52 = vadd.f32 %v7842_v51, %v7810_v49  ;;  %v9453_v53 = vpop.f32.mrf.mxu0  ;;  %v2969_v49 = vsel %vm9509_vm7, 0, %v2968_v46  ;;  %v8539_v51 = vld [vmem:[%s11172_s3 + $0x78] sm:$0xff]   ;;  %v2928_v46 = vsel %vm9502_vm5, 0, %v2927_v40  ;;  %v3008_v40 = vsel %vm9509_vm7, 0, %v3007_v36 }
  0xe9   :  { %v9455_v54 = vpop.f32.mrf.mxu1  ;;  %2970 = vst [vmem:[#allocation2 + $0xc] sm:$0x1] %v2969_v49  ;;  %8079 = vmatprep.subr.bf16.mxu1 %v8539_v51  ;;  %2929 = vst [vmem:[#allocation2 + $0x40] sm:$0x1] %v2928_v46  ;;  %v3001_v46 = vld [vmem:[#allocation2 + $0x64] sm:$0x1] }
  0xea   :  { %v7813_v55 = vpop.f32.mrf.mxu0  ;;  %8080 = vmatpush3.bf16.msra.mxu1 %v8539_v51  ;;  %v2921_v51 = vld [vmem:[#allocation2 + $0x30] sm:$0x1]  ;;  %3009 = vst [vmem:[#allocation2 + $0x74] sm:$0x1] %v3008_v40 }
  0xeb   :  { %v7845_v56 = vpop.f32.mrf.mxu1 }
  0xec   :  { %v9457_v57 = vadd.f32 %v7845_v56, %v7813_v55  ;;  %v239_v45 = vpop.f32.mrf.mxu0  ;;  %v2915_v55 = vld [vmem:[#allocation2 + $0x20] sm:$0x1]  ;;  %v2977_v56 = vld [vmem:[#allocation2 + $0x24] sm:$0x1] }
  0xed   :  { %v432_v58 = vpop.f32.mrf.mxu1 }
  0xee   :  { %v9459_v59 = vadd.f32 %v432_v58, %v239_v45  ;;  %v7814_v60 = vpop.f32.mrf.mxu0 }
  0xef   :  { %v7846_v61 = vpop.f32.mrf.mxu1 }
  0xf0   :  { %v9461_v62 = vadd.f32 %v7846_v61, %v7814_v60  ;;  %v9463_v63 = vpop.f32.mrf.mxu0  ;;  %v2916_v60 = vsel %vm9502_vm5, 0, %v2915_v55  ;;  %v2978_v61 = vsel %vm9509_vm7, 0, %v2977_v56  ;;  %v2922_v55 = vsel %vm9502_vm5, 0, %v2921_v51 }
  0xf1   :  { %v9465_v0 = vpop.f32.mrf.mxu1  ;;  %2917 = vst [vmem:[#allocation2 + $0x20] sm:$0x1] %v2916_v60  ;;  %2979 = vst [vmem:[#allocation2 + $0x24] sm:$0x1] %v2978_v61  ;;  %v2942_v60 = vld [vmem:[#allocation2 + $0x68] sm:$0x1] }
  0xf2   :  { %v7817_v1 = vpop.f32.mrf.mxu0  ;;  %2923 = vst [vmem:[#allocation2 + $0x30] sm:$0x1] %v2922_v55  ;;  %v3004_v61 = vld [vmem:[#allocation2 + $0x6c] sm:$0x1] }
  0xf3   :  { %v7849_v2 = vpop.f32.mrf.mxu1 }
  0xf4   :  { %v9467_v3 = vadd.f32 %v7849_v2, %v7817_v1  ;;  %v255_v4 = vpop.f32.mrf.mxu0  ;;  %v8540_v1 = vld [vmem:[%s11172_s3 + $0x20] sm:$0xff]  }
  0xf5   :  { %v448_v5 = vpop.f32.mrf.mxu1  ;;  %8117 = vmatprep.subr.bf16.mxu0 %v8540_v1 }
  0xf6   :  { %v9469_v6 = vadd.f32 %v448_v5, %v255_v4  ;;  %v7818_v7 = vpop.f32.mrf.mxu0  ;;  %v2909_v4 = vld [vmem:[#allocation2 + $0x10] sm:$0x1]  ;;  %8118 = vmatpush3.bf16.msra.mxu0 %v8540_v1 }
  0xf7   :  { %v7850_v9 = vpop.f32.mrf.mxu1  ;;  %8119 = vmatprep.subr.bf16.mxu0 %v8542_v50  ;;  %v8544_v1 = vld [vmem:[%s11172_s3 + $0x10] sm:$0xff]  }
  0xf8   :  { %v9471_v10 = vadd.f32 %v7850_v9, %v7818_v7  ;;  %v9473_v11 = vpop.f32.mrf.mxu0  ;;  %v2910_v7 = vsel %vm9502_vm5, 0, %v2909_v4  ;;  %v2943_v4 = vsel %vm9502_vm5, 0, %v2942_v60  ;;  %v2954_v60 = vld [vmem:[#allocation2 + $0x88] sm:$0x1] }
  0xf9   :  { %v9475_v12 = vpop.f32.mrf.mxu1  ;;  %2911 = vst [vmem:[#allocation2 + $0x10] sm:$0x1] %v2910_v7  ;;  %2944 = vst [vmem:[#allocation2 + $0x68] sm:$0x1] %v2943_v4 }
  0xfa   :  { %v7821_v13 = vpop.f32.mrf.mxu0  ;;  %8120 = vmatpush3.bf16.msra.mxu0 %v8542_v50  ;;  %v8546_v50 = vld [vmem:[%s11172_s3 + $0x8] sm:$0xff]  }
  0xfb   :  { %v7853_v14 = vpop.f32.mrf.mxu1  ;;  %8121 = vmatprep.subr.bf16.mxu0 %v8544_v1 }
  0xfc   :  { %v9477_v15 = vadd.f32 %v7853_v14, %v7821_v13  ;;  %v271_v16 = vpop.f32.mrf.mxu0  ;;  %v8541_v13 = vld [vmem:[%s11172_s3 + $0x70] sm:$0xff]  }
  0xfd   :  { %v464_v17 = vpop.f32.mrf.mxu1  ;;  %8081 = vmatprep.subr.bf16.mxu1 %v8541_v13 }
  0xfe   :  { %v9479_v18 = vadd.f32 %v464_v17, %v271_v16  ;;  %v7822_v19 = vpop.f32.mrf.mxu0  ;;  %v2924_v17 = vld [vmem:[#allocation2 + $0x38] sm:$0x1]  ;;  %8082 = vmatpush3.bf16.msra.mxu1 %v8541_v13  ;;  %8122 = vmatpush3.bf16.msra.mxu0 %v8544_v1  ;;  %v2903_v1 = vld [vmem:[#allocation2] sm:$0x1] }
  0xff   :  { %v7854_v20 = vpop.f32.mrf.mxu1  ;;  %v2936_v13 = vld [vmem:[#allocation2 + $0x58] sm:$0x1]  ;;  %8123 = vmatprep.subr.bf16.mxu0 %v8546_v50 }
 0x100   :  { %v9481_v21 = vadd.f32 %v7854_v20, %v7822_v19  ;;  %v9483_v22 = vpop.f32.mrf.mxu0  ;;  %v2986_v19 = vld [vmem:[#allocation2 + $0x3c] sm:$0x1]  ;;  %v2925_v20 = vsel %vm9502_vm5, 0, %v2924_v17  ;;  %v8545_v17 = vld [vmem:[%s11172_s3 + $0x60] sm:$0xff]  }
 0x101   :  { %v9485_v23 = vpop.f32.mrf.mxu1  ;;  %2926 = vst [vmem:[#allocation2 + $0x38] sm:$0x1] %v2925_v20  ;;  %v2937_v20 = vsel %vm9502_vm5, 0, %v2936_v13  ;;  %v3010_v13 = vld [vmem:[#allocation2 + $0x7c] sm:$0x1] }
 0x102   :  { %v7873_v24 = vpop.f32.mrf.mxu0  ;;  %2938 = vst [vmem:[#allocation2 + $0x58] sm:$0x1] %v2937_v20  ;;  %8124 = vmatpush3.bf16.msra.mxu0 %v8546_v50  ;;  %v3011_v20 = vsel %vm9509_vm7, 0, %v3010_v13  ;;  %v2957_v50 = vld [vmem:[#allocation2 + $0x90] sm:$0x1] }
 0x103   :  { %v9487_v25 = vadd.f32 %v7873_v24, %v425_v44  ;;  %v9489_v26 = vpop.f32.mrf.mxu1  ;;  %v2906_v44 = vld [vmem:[#allocation2 + $0x8] sm:$0x1]  ;;  %v2987_v24 = vsel %vm9509_vm7, 0, %v2986_v19  ;;  %3012 = vst [vmem:[#allocation2 + $0x7c] sm:$0x1] %v3011_v20 }
 0x104   :  { %v869_v27 = vpop.f32.mrf.mxu0  ;;  %2988 = vst [vmem:[#allocation2 + $0x3c] sm:$0x1] %v2987_v24 }
 0x105   :  { %v9494_v29 = vadd.f32 %v869_v27, %v417_v48  ;;  %v9496_v30 = vpop.f32.mrf.mxu1  ;;  %v2907_v48 = vsel %vm9502_vm5, 0, %v2906_v44  ;;  %v2918_v27 = vld [vmem:[#allocation2 + $0x28] sm:$0x1] }
 0x106   :  { %v7874_v31 = vpop.f32.mrf.mxu0  ;;  %2908 = vst [vmem:[#allocation2 + $0x8] sm:$0x1] %v2907_v48  ;;  %v2919_v28 = vsel %vm9502_vm5, 0, %v2918_v27  ;;  %v2990_v48 = vsel %vm9509_vm7, 0, %v2989_v43 }
 0x107   :  { %v9498_v32 = vadd.f32 %v7874_v31, %v428_v52  ;;  %v9500_v33 = vpop.f32.mrf.mxu1  ;;  %v2980_v31 = vld [vmem:[#allocation2 + $0x2c] sm:$0x1]  ;;  %2920 = vst [vmem:[#allocation2 + $0x28] sm:$0x1] %v2919_v28  ;;  %2991 = vst [vmem:[#allocation2 + $0x44] sm:$0x1] %v2990_v48 }
 0x108   :  { %v9520_v41 = vpop.f32.mrf.mxu0  ;;  %v2981_v35 = vsel %vm9509_vm7, 0, %v2980_v31  ;;  %v2945_v31 = vld [vmem:[#allocation2 + $0x70] sm:$0x1]  ;;  %v8548_v48 = vld [vmem:[%s11172_s3] sm:$0xff]  }
 0x109   :  { %v9516_v39 = vpop.f32.mrf.mxu1  ;;  %2982 = vst [vmem:[#allocation2 + $0x2c] sm:$0x1] %v2981_v35  ;;  %v2946_v35 = vsel %vm9502_vm5, 0, %v2945_v31  ;;  %8125 = vmatprep.subr.bf16.mxu0 %v8548_v48 }
 0x10a   :  { %v7877_v52 = vpop.f32.mrf.mxu0  ;;  %2947 = vst [vmem:[#allocation2 + $0x70] sm:$0x1] %v2946_v35  ;;  %8126 = vmatpush3.bf16.msra.mxu0 %v8548_v48  ;;  %v2965_v48 = vld [vmem:[#allocation2 + $0x4] sm:$0x1] }
 0x10b   :  { %v9522_v42 = vpop.f32.mrf.mxu1  ;;  %v9537_v45 = vadd.f32 %v7877_v52, %v9457_v57  ;;  %v2971_v57 = vld [vmem:[#allocation2 + $0x14] sm:$0x1] }
 0x10c   :  { %v885_v2 = vpop.f32.mrf.mxu0  ;;  %v2972_v9 = vsel %vm9509_vm7, 0, %v2971_v57  ;;  %v2983_v52 = vld [vmem:[#allocation2 + $0x34] sm:$0x1]  ;;  %v3005_v57 = vsel %vm9509_vm7, 0, %v3004_v61  ;;  %v3016_v61 = vld [vmem:[#allocation2 + $0x8c] sm:$0x1] }
 0x10d   :  { %v9527_v47 = vpop.f32.mrf.mxu1  ;;  %v9549_v5 = vadd.f32 %v885_v2, %v9459_v59  ;;  %2973 = vst [vmem:[#allocation2 + $0x14] sm:$0x1] %v2972_v9  ;;  %v2984_v56 = vsel %vm9509_vm7, 0, %v2983_v52  ;;  %3006 = vst [vmem:[#allocation2 + $0x6c] sm:$0x1] %v3005_v57  ;;  %v3002_v52 = vsel %vm9509_vm7, 0, %v3001_v46 }
 0x10e   :  { %v7878_v14 = vpop.f32.mrf.mxu0  ;;  %2985 = vst [vmem:[#allocation2 + $0x34] sm:$0x1] %v2984_v56  ;;  %3003 = vst [vmem:[#allocation2 + $0x64] sm:$0x1] %v3002_v52  ;;  %v3017_v4 = vsel %vm9509_vm7, 0, %v3016_v61  ;;  %v2904_v57 = vsel %vm9502_vm5, 0, %v2903_v1 }
 0x10f   :  { %v9539_v58 = vpop.f32.mrf.mxu1  ;;  %v9561_v59 = vadd.f32 %v7878_v14, %v9461_v62  ;;  %v8543_v62 = vld [vmem:[%s11172_s3 + $0x68] sm:$0xff]   ;;  %v2998_v14 = vld [vmem:[#allocation2 + $0x5c] sm:$0x1]  ;;  %3018 = vst [vmem:[#allocation2 + $0x8c] sm:$0x1] %v3017_v4  ;;  %v2966_v52 = vsel %vm9509_vm7, 0, %v2965_v48 }
 0x110   :  { %8083 = vmatprep.subr.bf16.mxu1 %v8543_v62  ;;  %v9579_v44 = vpop.f32.mrf.mxu0  ;;  %v2999_v24 = vsel %vm9509_vm7, 0, %v2998_v14  ;;  %2905 = vst [vmem:[#allocation2] sm:$0x1] %v2904_v57  ;;  %v8550_v61 = vld [vmem:[%s11172_s3 + $0x50] sm:$0xff]   ;;  %2967 = vst [vmem:[#allocation2 + $0x4] sm:$0x1] %v2966_v52 }
 0x111   :  { %v9558_v16 = vpop.f32.mrf.mxu1  ;;  %8084 = vmatpush3.bf16.msra.mxu1 %v8543_v62  ;;  %3000 = vst [vmem:[#allocation2 + $0x5c] sm:$0x1] %v2999_v24  ;;  %v2951_v1 = vld [vmem:[#allocation2 + $0x80] sm:$0x1]  ;;  %v2933_v48 = vld [vmem:[#allocation2 + $0x50] sm:$0x1] }
 0x112   :  { %8085 = vmatprep.subr.bf16.mxu1 %v8545_v17  ;;  %v2952_v57 = vsel %vm9502_vm5, 0, %v2951_v1  ;;  %v2995_v1 = vld [vmem:[#allocation2 + $0x54] sm:$0x1] }
 0x113   :  { %v9577_v38 = vpop.f32.mrf.mxu1  ;;  %2953 = vst [vmem:[#allocation2 + $0x80] sm:$0x1] %v2952_v57  ;;  %v2996_v57 = vsel %vm9509_vm7, 0, %v2995_v1 }
 0x114   :  { %2997 = vst [vmem:[#allocation2 + $0x54] sm:$0x1] %v2996_v57 }
 0x115   :  { %v9585_v49 = vpop.f32.mrf.mxu1  ;;  %v7881_v2 = vpop.f32.mrf.mxu0  ;;  %8086 = vmatpush3.bf16.msra.mxu1 %v8545_v17 }
 0x116   :  { %v9599_v7 = vadd.f32 %v7881_v2, %v9467_v3  ;;  %v2955_v2 = vsel %vm9502_vm5, 0, %v2954_v60 }
 0x117   :  { %v7914_v9 = vpop.f32.mrf.mxu1  ;;  %v901_v19 = vpop.f32.mrf.mxu0  ;;  %2956 = vst [vmem:[#allocation2 + $0x88] sm:$0x1] %v2955_v2  ;;  %v3013_v2 = vld [vmem:[#allocation2 + $0x84] sm:$0x1] }
 0x118   :  { %v9609_v3 = vadd.f32 %v901_v19, %v9469_v6  ;;  %v8547_v6 = vld [vmem:[%s11172_s3 + $0x58] sm:$0xff]  }
 0x119   :  { %v7882_v27 = vpop.f32.mrf.mxu0  ;;  %v9615_v28 = vpop.f32.mrf.mxu1  ;;  %8087 = vmatprep.subr.bf16.mxu1 %v8547_v6 }
 0x11a   :  { %v943_v62 = vadd.f32 %v7882_v27, %v9471_v10  ;;  %v2939_v10 = vld [vmem:[#allocation2 + $0x60] sm:$0x1]  ;;  %8088 = vmatpush3.bf16.msra.mxu1 %v8547_v6  ;;  %v3019_v27 = vld [vmem:[#allocation2 + $0x94] sm:$0x1] }
 0x11b   :  { %v2940_v51 = vsel %vm9502_vm5, 0, %v2939_v10  ;;  %v9633_v55 = vpop.f32.mrf.mxu0  ;;  %v7917_v56 = vpop.f32.mrf.mxu1  ;;  %v3020_v35 = vsel %vm9509_vm7, 0, %v3019_v27  ;;  %8089 = vmatprep.subr.bf16.mxu1 %v8550_v61 }
 0x11c   :  { %v9624_v43 = vadd.f32 %v7914_v9, %v943_v62  ;;  %2941 = vst [vmem:[#allocation2 + $0x60] sm:$0x1] %v2940_v51  ;;  %v2948_v9 = vld [vmem:[#allocation2 + $0x78] sm:$0x1]  ;;  %v2958_v62 = vsel %vm9502_vm5, 0, %v2957_v50 }
 0x11d   :  { %v1160_v17 = vpop.f32.mrf.mxu1  ;;  %v2949_v19 = vsel %vm9502_vm5, 0, %v2948_v9  ;;  %2959 = vst [vmem:[#allocation2 + $0x90] sm:$0x1] %v2958_v62  ;;  %3021 = vst [vmem:[#allocation2 + $0x94] sm:$0x1] %v3020_v35  ;;  %v3014_v9 = vsel %vm9509_vm7, 0, %v3013_v2 }
 0x11e   :  { %2950 = vst [vmem:[#allocation2 + $0x78] sm:$0x1] %v2949_v19  ;;  %8090 = vmatpush3.bf16.msra.mxu1 %v8550_v61  ;;  %3015 = vst [vmem:[#allocation2 + $0x84] sm:$0x1] %v3014_v9  ;;  %v8552_v19 = vld [vmem:[%s11172_s3 + $0xf8] sm:$0xff]   ;;  %v8556_v62 = vld [vmem:[%s11172_s3 + $0x40] sm:$0xff]  }
 0x11f   :  { %v7918_v10 = vpop.f32.mrf.mxu1  ;;  %8175 = vmatprep.subr.bf16.mxu0 %v8552_v19  ;;  %v2934_v61 = vsel %vm9502_vm5, 0, %v2933_v48 }
 0x120   :  { %2935 = vst [vmem:[#allocation2 + $0x50] sm:$0x1] %v2934_v61 }
 0x121   :  { %v7885_v14 = vpop.f32.mrf.mxu0 }
 0x122   :  { %v946_v24 = vadd.f32 %v7885_v14, %v9477_v15 }
 0x123   :  { %v917_v31 = vpop.f32.mrf.mxu0 }
 0x124   :  { %v944_v36 = vadd.f32 %v917_v31, %v9479_v18  ;;  %v1189_v6 = vadd.f32 %v7917_v56, %v946_v24  ;;  %v8553_v24 = vld [vmem:[%s11172_s3 + $0x48] sm:$0xff]  }
 0x125   :  { %v7886_v40 = vpop.f32.mrf.mxu0  ;;  %8091 = vmatprep.subr.bf16.mxu1 %v8553_v24 }
 0x126   :  { %v947_v15 = vadd.f32 %v7886_v40, %v9481_v21  ;;  %v1187_v46 = vadd.f32 %v1160_v17, %v944_v36  ;;  %v9663_v21 = vpop.f32.mrf.mxu1  ;;  %8092 = vmatpush3.bf16.msra.mxu1 %v8553_v24 }
 0x127   :  { %v9652_v51 = vpop.f32.mrf.mxu0  ;;  %8093 = vmatprep.subr.bf16.mxu1 %v8556_v62 }
 0x128   :  { %v1190_v60 = vadd.f32 %v7918_v10, %v947_v15  ;;  %v8559_v10 = vld [vmem:[%s11172_s3 + $0xb8] sm:$0xff]  }
 0x129   :  { %v9659_v18 = vpop.f32.mrf.mxu0 }
 0x12a   :  { %8094 = vmatpush3.bf16.msra.mxu1 %v8556_v62 }
 0x12b   :  { %v9661_v56 = vpop.f32.mrf.mxu0  ;;  %v9673_v14 = vpop.f32.mrf.mxu1  ;;  %8143 = vmatprep.subr.bf16.mxu1 %v8559_v10 }
 0x12d   :  { %v9665_v4 = vpop.f32.mrf.mxu0  ;;  %v9680_v20 = vpop.f32.mrf.mxu1 }
 0x12f   :  { %v9671_v13 = vpop.f32.mrf.mxu0  ;;  %v9689_v31 = vpop.f32.mrf.mxu1 }
 0x131   :  { %v9675_v17 = vpop.f32.mrf.mxu0  ;;  %v9696_v36 = vpop.f32.mrf.mxu1 }
 0x133   :  { %v9685_v50 = vpop.f32.mrf.mxu0 }
 0x135   :  { %v9687_v27 = vpop.f32.mrf.mxu0  ;;  %v9705_v52 = vpop.f32.mrf.mxu1 }
 0x136   :  { %11191 = vst [vmem:[#allocation5_spill] sm:$0xff] %v9705_v52 }
 0x137   :  { %v9694_v35 = vpop.f32.mrf.mxu0  ;;  %v9711_v9 = vpop.f32.mrf.mxu1 }
 0x138   :  { %11192 = vst [vmem:[#allocation6_spill] sm:$0xff] %v9711_v9 }
 0x139   :  { %v9698_v40 = vpop.f32.mrf.mxu0  ;;  %v9716_v24 = vpop.f32.mrf.mxu1 }
 0x13b   :  { %v9703_v15 = vpop.f32.mrf.mxu0  ;;  %v9720_v10 = vpop.f32.mrf.mxu1 }
 0x13c   :  { %11194 = vst [vmem:[#allocation8_spill] sm:$0xff] %v9720_v10 }
 0x13d   :  { %v7946_v2 = vpop.f32.mrf.mxu0 }
 0x13e   :  { %v9714_v19 = vadd.f32 %v7946_v2, %v9624_v43 }
 0x13f   :  { %v9718_v62 = vpop.f32.mrf.mxu0 }
 0x140   :  { %11193 = vst [vmem:[#allocation7_spill] sm:$0xff] %v9714_v19 }
 0x141   :  { %v7949_v34 = vpop.f32.mrf.mxu0 }
 0x142   :  { %v9722_v48 = vadd.f32 %v7949_v34, %v1189_v6 }
 0x143   :  { %v1403_v52 = vpop.f32.mrf.mxu0  ;;  %v9726_v37 = vpop.f32.mrf.mxu1 }
 0x144   :  { %11195 = vst [vmem:[#allocation9_spill] sm:$0xff] %v9722_v48  ;;  %v9724_v61 = vadd.f32 %v1403_v52, %v1187_v46 }
 0x145   :  { %v7950_v1 = vpop.f32.mrf.mxu0  ;;  %v9730_v43 = vpop.f32.mrf.mxu1 }
 0x146   :  { %11196 = vst [vmem:[#allocation10_spill] sm:$0xff] %v9724_v61  ;;  %v9728_v9 = vadd.f32 %v7950_v1, %v1190_v60  ;;  %11198 = vst [vmem:[#allocation12_spill] sm:$0xff] %v9730_v43 }
 0x147   :  { %v9732_v2 = vpop.f32.mrf.mxu1  ;;  %v9734_v57 = vpop.f32.mrf.mxu0 }
 0x148   :  { %11197 = vst [vmem:[#allocation11_spill] sm:$0xff] %v9728_v9  ;;  %11199 = vst [vmem:[#allocation13_spill] sm:$0xff] %v9732_v2 }
 0x149   :  { %v9736_v19 = vpop.f32.mrf.mxu1  ;;  %v9738_v10 = vpop.f32.mrf.mxu0 }
 0x14a   :  { %11200 = vst [vmem:[#allocation14_spill] sm:$0xff] %v9736_v19  ;;  %v9758_v19 = vld [vmem:[#allocation2] sm:$0xf] }
 0x14b   :  { %v9740_v34 = vpop.f32.mrf.mxu0  ;;  %v9742_v6 = vpop.f32.mrf.mxu1  ;;  %11210 = vst [vmem:[#allocation24_spill] sm:$0xff] %v9758_v19 }
 0x14c   :  { %11201 = vst [vmem:[#allocation15_spill] sm:$0xff] %v9740_v34  ;;  %11202 = vst [vmem:[#allocation16_spill] sm:$0xff] %v9742_v6 }
 0x14d   :  { %v9744_v46 = vpop.f32.mrf.mxu0  ;;  %v9746_v52 = vpop.f32.mrf.mxu1 }
 0x14e   :  { %11203 = vst [vmem:[#allocation17_spill] sm:$0xff] %v9744_v46  ;;  %11204 = vst [vmem:[#allocation18_spill] sm:$0xff] %v9746_v52  ;;  %v3381_v52 = vshrl.u32 %v9758_v19, 16  ;;  %v9768_v46 = vld [vmem:[#allocation2 + $0x50] sm:$0xf] }
 0x14f   :  { %v9748_v60 = vpop.f32.mrf.mxu0  ;;  %v9750_v1 = vpop.f32.mrf.mxu1  ;;  %v3496_v34 = vshll.u32 %v9768_v46, 16 }
 0x150   :  { %11205 = vst [vmem:[#allocation19_spill] sm:$0xff] %v9748_v60  ;;  %11206 = vst [vmem:[#allocation20_spill] sm:$0xff] %v9750_v1  ;;  %v3384_v60 = vshll.u32 %v9758_v19, 16  ;;  %v3493_v19 = vshrl.u32 %v9768_v46, 16 }
 0x151   :  { %v9752_v9 = vpop.f32.mrf.mxu0  ;;  %v9754_v61 = vpop.f32.mrf.mxu1 }
 0x152   :  { %11207 = vst [vmem:[#allocation21_spill] sm:$0xff] %v9752_v9  ;;  %11208 = vst [vmem:[#allocation22_spill] sm:$0xff] %v9754_v61  ;;  %v420_v9 = vadd.f32 %v9455_v54, %v9453_v53  ;;  %v468_v53 = vadd.f32 %v9485_v23, %v9483_v22 }
 0x153   :  { %v9756_v48 = vpop.f32.mrf.mxu0  ;;  %v9760_v2 = vpop.f32.mrf.mxu1 }
 0x154   :  { %11209 = vst [vmem:[#allocation23_spill] sm:$0xff] %v9756_v48  ;;  %11211 = vst [vmem:[#allocation25_spill] sm:$0xff] %v9760_v2  ;;  %v436_v48 = vadd.f32 %v9465_v0, %v9463_v63  ;;  %v3386_v63 = vrot.slane %v3384_v60, 5  ;;  %v945_v22 = vadd.f32 %v9652_v51, %v468_v53 }
 0x155   :  { %v9762_v43 = vpop.f32.mrf.mxu0  ;;  %v9764_v6 = vpop.f32.mrf.mxu1 }
 0x156   :  { %11212 = vst [vmem:[#allocation26_spill] sm:$0xff] %v9762_v43  ;;  %11213 = vst [vmem:[#allocation27_spill] sm:$0xff] %v9764_v6  ;;  %v452_v43 = vadd.f32 %v9475_v12, %v9473_v11  ;;  %v933_v6 = vadd.f32 %v9520_v41, %v420_v9  ;;  %v937_v0 = vadd.f32 %v9579_v44, %v436_v48  ;;  %v3364_v48 = vld [vmem:[#allocation2 + $0x4] sm:$0x1] }
 0x157   :  { %v9772_v61 = vpop.f32.mrf.mxu0  ;;  %v9776_v1 = vpop.f32.mrf.mxu1  ;;  %v1177_v12 = vadd.f32 %v9489_v26, %v9487_v25  ;;  %v1175_v41 = vadd.f32 %v9496_v30, %v9494_v29  ;;  %v1178_v9 = vadd.f32 %v9500_v33, %v9498_v32  ;;  %v1181_v44 = vadd.f32 %v9522_v42, %v9537_v45 }
 0x158   :  { %11214 = vst [vmem:[#allocation28_spill] sm:$0xff] %v9772_v61  ;;  %11215 = vst [vmem:[#allocation29_spill] sm:$0xff] %v9776_v1  ;;  %v3383_v61 = vrot.slane %v3381_v52, 4  ;;  %v941_v1 = vadd.f32 %v9633_v55, %v452_v43  ;;  %v1176_v52 = vadd.f32 %v9516_v39, %v933_v6  ;;  %v3495_v43 = vrot.slane %v3493_v19, 4 }
 0x159   :  { %v9781_v2 = vpop.f32.mrf.mxu0  ;;  %v9787_v54 = vpop.f32.mrf.mxu1  ;;  %v3498_v25 = vrot.slane %v3496_v34, 5  ;;  %v1179_v26 = vadd.f32 %v9527_v47, %v9549_v5  ;;  %v1182_v29 = vadd.f32 %v9539_v58, %v9561_v59  ;;  %v3390_v33 = vshll.u32 %v3364_v48, 16 }
 0x15a   :  { %v3387_v32 = vor.u32 %v3386_v63, %v3383_v61  ;;  %v1180_v39 = vadd.f32 %v9558_v16, %v937_v0  ;;  %v1185_v42 = vadd.f32 %v9577_v38, %v9599_v7  ;;  %v1183_v45 = vadd.f32 %v9585_v49, %v9609_v3  ;;  %v9827_v16 = vld [vmem:[#allocation2 + $0x54] sm:$0x1]  ;;  %v3991_v38 = vld [vmem:[#allocation2] sm:$0xe] }
 0x15b   :  { %v9791_v11 = vpop.f32.mrf.mxu0  ;;  %v9800_v23 = vpop.f32.mrf.mxu1  ;;  %v1184_v51 = vadd.f32 %v9615_v28, %v941_v1  ;;  %v1188_v47 = vadd.f32 %v9663_v21, %v945_v22  ;;  %v1420_v58 = vadd.f32 %v9659_v18, %v1177_v12  ;;  %v1418_v5 = vadd.f32 %v9661_v56, %v1175_v41 }
 0x15c   :  { %v1421_v59 = vadd.f32 %v9665_v4, %v1178_v9  ;;  %v1419_v7 = vadd.f32 %v9671_v13, %v1176_v52  ;;  %v1424_v49 = vadd.f32 %v9675_v17, %v1181_v44  ;;  %v3499_v28 = vor.u32 %v3498_v25, %v3495_v43  ;;  %v11220_v25 = vld [vmem:[#allocation8_spill] sm:$0xff] }
 0x15d   :  { %v9805_v55 = vpop.f32.mrf.mxu0  ;;  %v9811_v30 = vpop.f32.mrf.mxu1  ;;  %v3502_v21 = vshll.u32 %v9827_v16, 16  ;;  %v1422_v18 = vadd.f32 %v9685_v50, %v1179_v26  ;;  %v1425_v56 = vadd.f32 %v9687_v27, %v1182_v29  ;;  %v9838_v4 = vrot.slane %v3387_v32, 4 }
 0x15e   :  { %v9840_v6 = vrot.slane %v3390_v33, 5  ;;  %v7165_v13 = vrot.slane %v3991_v38, 9  ;;  %v4044_v17 = vrot.slane %v3364_v48, 5  ;;  %v1886_v1 = vadd.f32 %v9673_v14, %v1420_v58  ;;  %v11221_v33 = vld [vmem:[#allocation15_spill] sm:$0xff] }
 0x15f   :  { %v9819_v19 = vpop.f32.mrf.mxu0  ;;  %v9825_v61 = vpop.f32.mrf.mxu1  ;;  %v1884_v53 = vadd.f32 %v9680_v20, %v1418_v5  ;;  %v1423_v50 = vadd.f32 %v9694_v35, %v1180_v39  ;;  %v1428_v27 = vadd.f32 %v9698_v40, %v1185_v42  ;;  %v1887_v0 = vadd.f32 %v9689_v31, %v1421_v59  ;;  %v11223_v58 = vld [vmem:[#allocation7_spill] sm:$0xff]  ;;  %v11224_v5 = vld [vmem:[#allocation13_spill] sm:$0xff] }
 0x160   :  { %v1426_v12 = vadd.f32 %v9703_v15, %v1183_v45  ;;  %v9854_v9 = vrot.slane %v3499_v28, 4  ;;  %v9856_v22 = vrot.slane %v3502_v21, 5  ;;  %v1885_v14 = vadd.f32 %v9696_v36, %v1419_v7  ;;  %v11218_v15 = vld [vmem:[#allocation5_spill] sm:$0xff]  ;;  %v11219_v36 = vld [vmem:[#allocation6_spill] sm:$0xff]  ;;  %v11222_v45 = vld [vmem:[#allocation12_spill] sm:$0xff] }
 0x161   :  { %v9831_v3 = vpop.f32.mrf.mxu0  ;;  %v9836_v34 = vpop.f32.mrf.mxu1  ;;  %v1427_v20 = vadd.f32 %v9718_v62, %v1184_v51  ;;  %v2129_v35 = vadd.f32 %v9738_v10, %v1886_v1  ;;  %v3393_v31 = vsel %vm8855_vm2, %v9838_v4, %v9840_v6  ;;  %v1890_v44 = vadd.f32 %v11218_v15, %v1424_v49  ;;  %v9892_v49 = vld [vmem:[#allocation2 + $0x50] sm:$0xe] }
 0x162   :  { %v1888_v48 = vadd.f32 %v11219_v36, %v1422_v18  ;;  %v1891_v62 = vadd.f32 %v9716_v24, %v1425_v56  ;;  %v9878_v43 = vsel %vm9869_vm10, %v7165_v13, %v4044_v17  ;;  %v1889_v26 = vadd.f32 %v11220_v25, %v1423_v50  ;;  %v11225_v24 = vld [vmem:[#allocation17_spill] sm:$0xff]  ;;  %v11230_v13 = vld [vmem:[#allocation19_spill] sm:$0xff]  ;;  %v11232_v50 = vld [vmem:[#allocation18_spill] sm:$0xff] }
 0x163   :  { %v9842_v60 = vpop.f32.mrf.mxu0  ;;  %v9848_v63 = vpop.f32.mrf.mxu1  ;;  %v1894_v29 = vadd.f32 %v9726_v37, %v1428_v27  ;;  %v1431_v32 = vadd.f32 %v9734_v57, %v1188_v47  ;;  %v2127_v39 = vadd.f32 %v11221_v33, %v1884_v53  ;;  %v1892_v51 = vadd.f32 %v11222_v45, %v1426_v12  ;;  %v11226_v37 = vld [vmem:[#allocation14_spill] sm:$0xff]  ;;  %v11227_v57 = vld [vmem:[#allocation9_spill] sm:$0xff]  ;;  %v11228_v47 = vld [vmem:[#allocation16_spill] sm:$0xff] }
 0x164   :  { %v1895_v59 = vadd.f32 %v11224_v5, %v11223_v58  ;;  %v2130_v38 = vadd.f32 %v11225_v24, %v1887_v0  ;;  %v3505_v7 = vsel %vm8855_vm2, %v9854_v9, %v9856_v22  ;;  %v1893_v28 = vadd.f32 %v11226_v37, %v1427_v20  ;;  %v11229_v18 = vld [vmem:[#allocation25_spill] sm:$0xff]  ;;  %v11231_v53 = vld [vmem:[#allocation10_spill] sm:$0xff]  ;;  %v11233_v0 = vld [vmem:[#allocation11_spill] sm:$0xff] }
 0x165   :  { %v9852_v41 = vpop.f32.mrf.mxu0  ;;  %v9861_v52 = vpop.f32.mrf.mxu1  ;;  %v1898_v21 = vadd.f32 %v11228_v47, %v11227_v57  ;;  %v2372_v56 = vadd.f32 %v11229_v18, %v2129_v35  ;;  %v2128_v17 = vadd.f32 %v11230_v13, %v1885_v14  ;;  %v1896_v27 = vadd.f32 %v11232_v50, %v11231_v53  ;;  %v11234_v12 = vld [vmem:[#allocation20_spill] sm:$0xff]  ;;  %v11235_v36 = vld [vmem:[#allocation21_spill] sm:$0xff]  ;;  %v11236_v33 = vld [vmem:[#allocation23_spill] sm:$0xff] }
 0x166   :  { %v1899_v15 = vadd.f32 %v11234_v12, %v11233_v0  ;;  %v2133_v25 = vadd.f32 %v11235_v36, %v1890_v44  ;;  %v2131_v45 = vadd.f32 %v11236_v33, %v1888_v48  ;;  %v9908_v20 = vld [vmem:[%s11173_s2] ss:$0 sm:$0xff]  ;;  %v11237_v35 = vld [vmem:[#allocation22_spill] sm:$0xff]  ;;  %v7173_v47 = vrot.slane %v9892_v49, 9  ;;  %v11239_v18 = vld [vmem:[#allocation29_spill] sm:$0xff] }
 0x167   :  { %v2115_v10 = vpop.f32.mrf.mxu0  ;;  %v8042_v42 = vpop.f32.mrf.mxu1  ;;  %v1897_v5 = vadd.f32 %v11237_v35, %v1431_v32  ;;  %v11238_v14 = vld [vmem:[#allocation27_spill] sm:$0xff]  ;;  %v2373_v13 = vadd.f32 %v11239_v18, %v2130_v38  ;;  %v11240_v44 = vld [vmem:[#allocation26_spill] sm:$0xff]  ;;  %v11241_v48 = vld [vmem:[#allocation28_spill] sm:$0xff]  ;;  %v4076_v12 = vrot.slane %v9827_v16, 5  ;;  %v2371_v36 = vadd.f32 %v9787_v54, %v2128_v17 }
 0x168   :  { %v2370_v24 = vadd.f32 %v11238_v14, %v2127_v39  ;;  %v2134_v53 = vadd.f32 %v11240_v44, %v1891_v62  ;;  %v2132_v50 = vadd.f32 %v11241_v48, %v1889_v26  ;;  %v2137_v32 = vadd.f32 %v9781_v2, %v1894_v29  ;;  %v8576_v9 = vld [vmem:[%s11172_s3 + $0x178] sm:$0xff]   ;;  %v8645_v40 = vld [vmem:[%s11171_s0 + $0x208] ss:$8 sps:$4 sm:$0xff]  }
 0x169   :  { %v2342_v1 = vpop.f32.mrf.mxu1  ;;  %v8065_v58 = vpop.f32.mrf.mxu0  ;;  %v2135_v38 = vadd.f32 %v9791_v11, %v1892_v51  ;;  %v2138_v62 = vadd.f32 %v9805_v55, %v1895_v59  ;;  %v2136_v26 = vadd.f32 %v9819_v19, %v1893_v28 }
 0x16a   :  { %v2838_v57 = vadd.f32 %v8065_v58, %v2372_v56  ;;  %v2376_v56 = vadd.f32 %v9800_v23, %v2133_v25  ;;  %v2374_v58 = vadd.f32 %v9811_v30, %v2131_v45  ;;  %v2377_v2 = vadd.f32 %v9825_v61, %v2134_v53 }
 0x16b   :  { %v8045_v37 = vpop.f32.mrf.mxu1  ;;  %v2773_v0 = vpop.f32.mrf.mxu0  ;;  %v9928_v29 = vadd.f32 %v9836_v34, %v2132_v50  ;;  %v2141_v23 = vadd.f32 %v9831_v3, %v1898_v21  ;;  %v2139_v30 = vadd.f32 %v9842_v60, %v1896_v27  ;;  %v9934_v28 = vadd.f32 %v9848_v63, %v2137_v32 }
 0x16c   :  { %v2861_v39 = vadd.f32 %v9908_v20, %v2838_v57  ;;  %v2836_v33 = vadd.f32 %v2773_v0, %v2370_v24  ;;  %v9937_v25 = vadd.f32 %v9861_v52, %v2135_v38  ;;  %v2142_v61 = vadd.f32 %v9852_v41, %v1899_v15  ;;  %v3251_v15 = vld [vmem:[#allocation2 + $0x1c] sm:$0x1]  ;;  %v3236_v38 = vld [vmem:[#allocation2 + $0x8] sm:$0xf] }
 0x16d   :  { %v8066_v35 = vpop.f32.mrf.mxu0  ;;  %v2355_v14 = vpop.f32.mrf.mxu1  ;;  %v2140_v34 = vadd.f32 %v2115_v10, %v1897_v5  ;;  %v9940_v45 = vadd.f32 %v8042_v42, %v2138_v62  ;;  %v9942_v24 = vadd.f32 %v2342_v1, %v2136_v26  ;;  %v9944_v57 = vadd.f32 %v8045_v37, %v2141_v23  ;;  %v3248_v1 = vld [vmem:[#allocation2 + $0x18] sm:$0xf]  ;;  %v3239_v62 = vld [vmem:[#allocation2 + $0xc] sm:$0x1] }
 0x16e   :  { %v2877_v18 = vmax.f32 %v2861_v39, 0.0  ;;  %v2859_v54 = vadd.f32 %v9908_v20, %v2836_v33  ;;  %v2839_v17 = vadd.f32 %v8066_v35, %v2373_v13  ;;  %v9946_v13 = vadd.f32 %v2355_v14, %v2139_v30 }
 0x16f   :  { %v2776_v11 = vpop.f32.mrf.mxu0  ;;  %v8046_v3 = vpop.f32.mrf.mxu1 }
 0x170   :  { %v7473_v51 = vpack.c.bf16 %v2877_v18, %v2877_v18  ;;  %v2875_v55 = vmax.f32 %v2859_v54, 0.0  ;;  %v2862_v59 = vadd.f32 %v9908_v20, %v2839_v17  ;;  %v2837_v19 = vadd.f32 %v2776_v11, %v2371_v36 }
 0x171   :  { %v8069_v41 = vpop.f32.mrf.mxu0  ;;  %v9949_v10 = vadd.f32 %v8046_v3, %v2142_v61 }
 0x172   :  { %v3090_v21 = vshrl.u32 %v7473_v51, 16  ;;  %v7471_v60 = vpack.c.bf16 %v2875_v55, %v2875_v55  ;;  %v2878_v27 = vmax.f32 %v2862_v59, 0.0  ;;  %v2860_v63 = vadd.f32 %v9908_v20, %v2837_v19 }
 0x173   :  { %v3093_v52 = vshll.u32 %v7473_v51, 16  ;;  %v2842_v50 = vadd.f32 %v8069_v41, %v2376_v56  ;;  %v2789_v33 = vpop.f32.mrf.mxu0  ;;  %v2358_v51 = vpop.f32.mrf.mxu1 }
 0x174   :  { %v3092_v44 = vrot.slane %v3090_v21, 7  ;;  %v3074_v53 = vshrl.u32 %v7471_v60, 16  ;;  %v7474_v48 = vpack.c.bf16 %v2878_v27, %v2878_v27  ;;  %v3077_v5 = vshll.u32 %v7471_v60, 16  ;;  %v3254_v21 = vld [vmem:[#allocation2 + $0x20] sm:$0xf] }
 0x175   :  { %v2876_v37 = vmax.f32 %v2860_v63, 0.0  ;;  %v2865_v14 = vadd.f32 %v9908_v20, %v2842_v50  ;;  %v2840_v18 = vadd.f32 %v2789_v33, %v2374_v58  ;;  %v8070_v11 = vpop.f32.mrf.mxu0  ;;  %v3257_v60 = vld [vmem:[#allocation2 + $0x24] sm:$0x1] }
 0x176   :  { %v3095_v0 = vor.u32 %v3093_v52, %v3092_v44  ;;  %v3096_v36 = vrot.slane %v3092_v44, 4  ;;  %v3076_v32 = vrot.slane %v3074_v53, 7  ;;  %v3098_v39 = vshrl.u32 %v7474_v48, 16 }
 0x177   :  { %v3101_v35 = vshll.u32 %v7474_v48, 16  ;;  %v7472_v26 = vpack.c.bf16 %v2876_v37, %v2876_v37  ;;  %v2881_v61 = vmax.f32 %v2865_v14, 0.0  ;;  %v2863_v27 = vadd.f32 %v9908_v20, %v2840_v18  ;;  %v2792_v44 = vpop.f32.mrf.mxu0  ;;  %v3272_v14 = vld [vmem:[#allocation2 + $0x38] sm:$0xf] }
 0x178   :  { %v3249_v54 = vsel %vm9953_vm12, %v3095_v0, %v3248_v1  ;;  %v3252_v23 = vsel %vm9502_vm5, %v3096_v36, %v3251_v15  ;;  %v3079_v30 = vor.u32 %v3077_v5, %v3076_v32  ;;  %v3080_v56 = vrot.slane %v3076_v32, 4  ;;  %v3242_v15 = vld [vmem:[#allocation2 + $0x10] sm:$0xf]  ;;  %v3245_v5 = vld [vmem:[#allocation2 + $0x14] sm:$0x1] }
 0x179   :  { %3250 = vst [vmem:[#allocation2 + $0x18] sm:$0xf] %v3249_v54  ;;  %3253 = vst [vmem:[#allocation2 + $0x1c] sm:$0x1] %v3252_v23  ;;  %v3100_v55 = vrot.slane %v3098_v39, 7  ;;  %v3082_v59 = vshrl.u32 %v7472_v26, 16  ;;  %v2843_v63 = vadd.f32 %v8070_v11, %v2377_v2  ;;  %v7477_v41 = vpack.c.bf16 %v2881_v61, %v2881_v61 }
 0x17a   :  { %v3085_v19 = vshll.u32 %v7472_v26, 16  ;;  %v3237_v3 = vsel %vm9953_vm12, %v3079_v30, %v3236_v38  ;;  %v3240_v58 = vsel %vm9502_vm5, %v3080_v56, %v3239_v62  ;;  %v9967_v1 = vadd.f32 %v2358_v51, %v2140_v34 }
 0x17b   :  { %3238 = vst [vmem:[#allocation2 + $0x8] sm:$0xf] %v3237_v3  ;;  %3241 = vst [vmem:[#allocation2 + $0xc] sm:$0x1] %v3240_v58  ;;  %v3103_v52 = vor.u32 %v3101_v35, %v3100_v55  ;;  %v3104_v53 = vrot.slane %v3100_v55, 4  ;;  %v3084_v48 = vrot.slane %v3082_v59, 7  ;;  %v2866_v50 = vadd.f32 %v9908_v20, %v2843_v63  ;;  %v8073_v35 = vpop.f32.mrf.mxu0 }
 0x17c   :  { %v2879_v37 = vmax.f32 %v2863_v27, 0.0  ;;  %v2841_v0 = vadd.f32 %v2792_v44, %v9928_v29  ;;  %v3122_v33 = vshrl.u32 %v7477_v41, 16  ;;  %v3125_v34 = vshll.u32 %v7477_v41, 16  ;;  %v3275_v59 = vld [vmem:[#allocation2 + $0x3c] sm:$0x1] }
 0x17d   :  { %v3255_v36 = vsel %vm9953_vm12, %v3103_v52, %v3254_v21  ;;  %v3258_v2 = vsel %vm9502_vm5, %v3104_v53, %v3257_v60  ;;  %v3087_v32 = vor.u32 %v3085_v19, %v3084_v48  ;;  %v3088_v39 = vrot.slane %v3084_v48, 4  ;;  %v2805_v51 = vpop.f32.mrf.mxu0  ;;  %v3260_v27 = vld [vmem:[#allocation2 + $0x28] sm:$0xf]  ;;  %v3263_v52 = vld [vmem:[#allocation2 + $0x2c] sm:$0x1] }
 0x17e   :  { %3256 = vst [vmem:[#allocation2 + $0x20] sm:$0xf] %v3255_v36  ;;  %3259 = vst [vmem:[#allocation2 + $0x24] sm:$0x1] %v3258_v2  ;;  %v7475_v38 = vpack.c.bf16 %v2879_v37, %v2879_v37  ;;  %v2882_v62 = vmax.f32 %v2866_v50, 0.0  ;;  %v2864_v18 = vadd.f32 %v9908_v20, %v2841_v0  ;;  %v2846_v54 = vadd.f32 %v8073_v35, %v9934_v28 }
 0x17f   :  { %v3243_v26 = vsel %vm9953_vm12, %v3087_v32, %v3242_v15  ;;  %v3246_v29 = vsel %vm9502_vm5, %v3088_v39, %v3245_v5  ;;  %v3124_v23 = vrot.slane %v3122_v33, 7  ;;  %v2844_v3 = vadd.f32 %v2805_v51, %v9937_v25  ;;  %v8074_v44 = vpop.f32.mrf.mxu0  ;;  %v3278_v2 = vld [vmem:[#allocation2 + $0x40] sm:$0xf] }
 0x180   :  { %3244 = vst [vmem:[#allocation2 + $0x10] sm:$0xf] %v3243_v26  ;;  %3247 = vst [vmem:[#allocation2 + $0x14] sm:$0x1] %v3246_v29  ;;  %v3106_v30 = vshrl.u32 %v7475_v38, 16  ;;  %v3109_v56 = vshll.u32 %v7475_v38, 16  ;;  %v7478_v11 = vpack.c.bf16 %v2882_v62, %v2882_v62  ;;  %v2869_v61 = vadd.f32 %v9908_v20, %v2846_v54 }
 0x181   :  { %v9981_v55 = vld [vmem:[#allocation2 + $0x18] sm:$0xf]  ;;  %v2880_v19 = vmax.f32 %v2864_v18, 0.0  ;;  %v3127_v21 = vor.u32 %v3125_v34, %v3124_v23  ;;  %v3128_v60 = vrot.slane %v3124_v23, 4  ;;  %v2867_v15 = vadd.f32 %v9908_v20, %v2844_v3  ;;  %v2808_v0 = vpop.f32.mrf.mxu0  ;;  %v3281_v62 = vld [vmem:[#allocation2 + $0x44] sm:$0x1] }
 0x182   :  { %v3423_v58 = vshrl.u32 %v9981_v55, 16  ;;  %v3108_v28 = vrot.slane %v3106_v30, 7  ;;  %v3130_v63 = vshrl.u32 %v7478_v11, 16  ;;  %v3133_v53 = vshll.u32 %v7478_v11, 16  ;;  %v3266_v54 = vld [vmem:[#allocation2 + $0x30] sm:$0xf] }
 0x183   :  { %v7476_v48 = vpack.c.bf16 %v2880_v19, %v2880_v19  ;;  %v2885_v41 = vmax.f32 %v2869_v61, 0.0  ;;  %v3273_v5 = vsel %vm9953_vm12, %v3127_v21, %v3272_v14  ;;  %v3276_v25 = vsel %vm9502_vm5, %v3128_v60, %v3275_v59  ;;  %v8077_v30 = vpop.f32.mrf.mxu0  ;;  %v3992_v22 = vld [vmem:[#allocation2 + $0x8] sm:$0xe] }
 0x184   :  { %v3111_v37 = vor.u32 %v3109_v56, %v3108_v28  ;;  %v3112_v50 = vrot.slane %v3108_v28, 4  ;;  %3274 = vst [vmem:[#allocation2 + $0x38] sm:$0xf] %v3273_v5  ;;  %3277 = vst [vmem:[#allocation2 + $0x3c] sm:$0x1] %v3276_v25  ;;  %v3132_v36 = vrot.slane %v3130_v63, 7  ;;  %v2847_v26 = vadd.f32 %v8074_v44, %v9940_v45 }
 0x185   :  { %v3114_v32 = vshrl.u32 %v7476_v48, 16  ;;  %v3117_v39 = vshll.u32 %v7476_v48, 16  ;;  %v7481_v33 = vpack.c.bf16 %v2885_v41, %v2885_v41  ;;  %v2883_v35 = vmax.f32 %v2867_v15, 0.0  ;;  %v3269_v56 = vld [vmem:[#allocation2 + $0x34] sm:$0x1]  ;;  %v2821_v60 = vpop.f32.mrf.mxu0 }
 0x186   :  { %v3261_v34 = vsel %vm9953_vm12, %v3111_v37, %v3260_v27  ;;  %v3264_v38 = vsel %vm9502_vm5, %v3112_v50, %v3263_v52  ;;  %v3135_v29 = vor.u32 %v3133_v53, %v3132_v36  ;;  %v3136_v14 = vrot.slane %v3132_v36, 4  ;;  %v3296_v53 = vld [vmem:[#allocation2 + $0x68] sm:$0xf]  ;;  %v3299_v48 = vld [vmem:[#allocation2 + $0x6c] sm:$0x1] }
 0x187   :  { %3262 = vst [vmem:[#allocation2 + $0x28] sm:$0xf] %v3261_v34  ;;  %3265 = vst [vmem:[#allocation2 + $0x2c] sm:$0x1] %v3264_v38  ;;  %v3116_v18 = vrot.slane %v3114_v32, 7  ;;  %v3154_v23 = vshrl.u32 %v7481_v33, 16  ;;  %v7479_v51 = vpack.c.bf16 %v2883_v35, %v2883_v35  ;;  %v2870_v59 = vadd.f32 %v9908_v20, %v2847_v26  ;;  %v8078_v5 = vpop.f32.mrf.mxu0 }
 0x188   :  { %v3157_v11 = vshll.u32 %v7481_v33, 16  ;;  %v2845_v19 = vadd.f32 %v2808_v0, %v9942_v24  ;;  %v3279_v61 = vsel %vm9953_vm12, %v3135_v29, %v3278_v2  ;;  %v3282_v45 = vsel %vm9502_vm5, %v3136_v14, %v3281_v62  ;;  %v3284_v0 = vld [vmem:[#allocation2 + $0x58] sm:$0xf]  ;;  %v3287_v2 = vld [vmem:[#allocation2 + $0x5c] sm:$0x1] }
 0x189   :  { %v3119_v3 = vor.u32 %v3117_v39, %v3116_v18  ;;  %v3120_v21 = vrot.slane %v3116_v18, 4  ;;  %3280 = vst [vmem:[#allocation2 + $0x40] sm:$0xf] %v3279_v61  ;;  %3283 = vst [vmem:[#allocation2 + $0x44] sm:$0x1] %v3282_v45  ;;  %v3156_v28 = vrot.slane %v3154_v23, 7  ;;  %v2850_v15 = vadd.f32 %v8077_v30, %v9944_v57 }
 0x18a   :  { %v3138_v27 = vshrl.u32 %v7479_v51, 16  ;;  %v3141_v63 = vshll.u32 %v7479_v51, 16  ;;  %v2886_v44 = vmax.f32 %v2870_v59, 0.0  ;;  %v2868_v41 = vadd.f32 %v9908_v20, %v2845_v19  ;;  %v10015_v26 = vld [vmem:[#allocation2 + $0x8] sm:$0xf] }
 0x18b   :  { %v3267_v52 = vsel %vm9953_vm12, %v3119_v3, %v3266_v54  ;;  %v3270_v24 = vsel %vm9502_vm5, %v3120_v21, %v3269_v56  ;;  %v3159_v25 = vor.u32 %v3157_v11, %v3156_v28  ;;  %v3160_v37 = vrot.slane %v3156_v28, 4  ;;  %v3302_v23 = vld [vmem:[#allocation2 + $0x70] sm:$0xf]  ;;  %v3305_v61 = vld [vmem:[#allocation2 + $0x74] sm:$0x1] }
 0x18c   :  { %3268 = vst [vmem:[#allocation2 + $0x30] sm:$0xf] %v3267_v52  ;;  %3271 = vst [vmem:[#allocation2 + $0x34] sm:$0x1] %v3270_v24  ;;  %v3140_v50 = vrot.slane %v3138_v27, 7  ;;  %v7482_v36 = vpack.c.bf16 %v2886_v44, %v2886_v44  ;;  %v2884_v32 = vmax.f32 %v2868_v41, 0.0  ;;  %v2873_v39 = vadd.f32 %v9908_v20, %v2850_v15 }
 0x18d   :  { %v2848_v33 = vadd.f32 %v2821_v60, %v9946_v13  ;;  %v2851_v34 = vadd.f32 %v8078_v5, %v9949_v10  ;;  %v3297_v38 = vsel %vm9953_vm12, %v3159_v25, %v3296_v53  ;;  %v3300_v57 = vsel %vm9502_vm5, %v3160_v37, %v3299_v48  ;;  %v3290_v44 = vld [vmem:[#allocation2 + $0x60] sm:$0xf]  ;;  %v3293_v24 = vld [vmem:[#allocation2 + $0x64] sm:$0x1] }
 0x18e   :  { %v3143_v62 = vor.u32 %v3141_v63, %v3140_v50  ;;  %v3144_v35 = vrot.slane %v3140_v50, 4  ;;  %3298 = vst [vmem:[#allocation2 + $0x68] sm:$0xf] %v3297_v38  ;;  %3301 = vst [vmem:[#allocation2 + $0x6c] sm:$0x1] %v3300_v57  ;;  %v3162_v29 = vshrl.u32 %v7482_v36, 16  ;;  %v7480_v18 = vpack.c.bf16 %v2884_v32, %v2884_v32 }
 0x18f   :  { %v3165_v14 = vshll.u32 %v7482_v36, 16  ;;  %v2889_v54 = vmax.f32 %v2873_v39, 0.0  ;;  %v2871_v30 = vadd.f32 %v9908_v20, %v2848_v33  ;;  %v2874_v56 = vadd.f32 %v9908_v20, %v2851_v34  ;;  %v2824_v33 = vpop.f32.mrf.mxu0  ;;  %v3334_v34 = vld [vmem:[#allocation2 + $0x10] sm:$0xf] }
 0x190   :  { %v3285_v13 = vsel %vm9953_vm12, %v3143_v62, %v3284_v0  ;;  %v3288_v10 = vsel %vm9502_vm5, %v3144_v35, %v3287_v2  ;;  %v3164_v11 = vrot.slane %v3162_v29, 7  ;;  %v3146_v51 = vshrl.u32 %v7480_v18, 16  ;;  %v3320_v0 = vld [vmem:[#allocation2 + $0x88] sm:$0xf]  ;;  %v3323_v62 = vld [vmem:[#allocation2 + $0x8c] sm:$0x1] }
 0x191   :  { %3286 = vst [vmem:[#allocation2 + $0x58] sm:$0xf] %v3285_v13  ;;  %3289 = vst [vmem:[#allocation2 + $0x5c] sm:$0x1] %v3288_v10  ;;  %v3149_v59 = vshll.u32 %v7480_v18, 16  ;;  %v7485_v19 = vpack.c.bf16 %v2889_v54, %v2889_v54  ;;  %v2887_v45 = vmax.f32 %v2871_v30, 0.0 }
 0x192   :  { %v2890_v3 = vmax.f32 %v2874_v56, 0.0  ;;  %v3395_v21 = vshrl.u32 %v10015_v26, 16  ;;  %v3398_v60 = vshll.u32 %v10015_v26, 16  ;;  %v3167_v28 = vor.u32 %v3165_v14, %v3164_v11  ;;  %v3308_v13 = vld [vmem:[#allocation2 + $0x78] sm:$0xf]  ;;  %v11245_v30 = vld [vmem:[#allocation24_spill] sm:$0xff] }
 0x193   :  { %v3168_v27 = vrot.slane %v3164_v11, 4  ;;  %v3148_v63 = vrot.slane %v3146_v51, 7  ;;  %v3186_v52 = vshrl.u32 %v7485_v19, 16  ;;  %v3189_v53 = vshll.u32 %v7485_v19, 16 }
 0x194   :  { %v7483_v48 = vpack.c.bf16 %v2887_v45, %v2887_v45  ;;  %v7486_v41 = vpack.c.bf16 %v2890_v3, %v2890_v3  ;;  %v10025_v15 = vrot.slane %v3395_v21, 4  ;;  %v3303_v5 = vsel %vm9953_vm12, %v3167_v28, %v3302_v23  ;;  %v3311_v23 = vld [vmem:[#allocation2 + $0x7c] sm:$0x1]  ;;  %v3326_v21 = vld [vmem:[#allocation2 + $0x90] sm:$0xf] }
 0x195   :  { %v3306_v25 = vsel %vm9502_vm5, %v3168_v27, %v3305_v61  ;;  %v3151_v37 = vor.u32 %v3149_v59, %v3148_v63  ;;  %v3152_v50 = vrot.slane %v3148_v63, 4  ;;  %3304 = vst [vmem:[#allocation2 + $0x70] sm:$0xf] %v3303_v5  ;;  %v3188_v36 = vrot.slane %v3186_v52, 7  ;;  %v3336_v63 = vld [vmem:[#allocation2 + $0x20] sm:$0xf] }
 0x196   :  { %3307 = vst [vmem:[#allocation2 + $0x74] sm:$0x1] %v3306_v25  ;;  %v3170_v2 = vshrl.u32 %v7483_v48, 16  ;;  %v3173_v32 = vshll.u32 %v7483_v48, 16  ;;  %v3194_v39 = vshrl.u32 %v7486_v41, 16  ;;  %v3197_v35 = vshll.u32 %v7486_v41, 16 }
 0x197   :  { %v3291_v38 = vsel %vm9953_vm12, %v3151_v37, %v3290_v44  ;;  %v3294_v57 = vsel %vm9502_vm5, %v3152_v50, %v3293_v24  ;;  %v10035_v29 = vrot.slane %v3398_v60, 5  ;;  %v3191_v14 = vor.u32 %v3189_v53, %v3188_v36  ;;  %v3329_v60 = vld [vmem:[#allocation2 + $0x94] sm:$0x1]  ;;  %v3337_v44 = vld [vmem:[#allocation2 + $0x28] sm:$0xf] }
 0x198   :  { %3292 = vst [vmem:[#allocation2 + $0x60] sm:$0xf] %v3291_v38  ;;  %3295 = vst [vmem:[#allocation2 + $0x64] sm:$0x1] %v3294_v57  ;;  %v3192_v18 = vrot.slane %v3188_v36, 4  ;;  %v3172_v54 = vrot.slane %v3170_v2, 7  ;;  %v7149_v56 = vcombine.low %v11245_v30, %v10015_v26  ;;  %v2849_v11 = vadd.f32 %v2824_v33, %v9967_v1 }
 0x199   :  { %v3196_v10 = vrot.slane %v3194_v39, 7  ;;  %v3409_v51 = vshrl.u32 %v3334_v34, 16  ;;  %v3412_v59 = vshll.u32 %v3334_v34, 16  ;;  %v3321_v19 = vsel %vm9953_vm12, %v3191_v14, %v3320_v0  ;;  %v10060_v37 = vld [vmem:[#allocation2 + $0xc] sm:$0x1]  ;;  %v8555_v2 = vld [vmem:[%s11172_s3 + $0xf0] sm:$0xff]  }
 0x19a   :  { %v3324_v61 = vsel %vm9502_vm5, %v3192_v18, %v3323_v62  ;;  %v3175_v45 = vor.u32 %v3173_v32, %v3172_v54  ;;  %v3176_v3 = vrot.slane %v3172_v54, 4  ;;  %3322 = vst [vmem:[#allocation2 + $0x88] sm:$0xf] %v3321_v19  ;;  %8127 = vmatprep.mubr.bf16.mxu0 %v7149_v56  ;;  %v2872_v26 = vadd.f32 %v9908_v20, %v2849_v11  ;;  %v3338_v57 = vld [vmem:[#allocation2 + $0x30] sm:$0xf]  ;;  %v8558_v30 = vld [vmem:[%s11172_s3 + $0xe8] sm:$0xff]  }
 0x19b   :  { %3325 = vst [vmem:[#allocation2 + $0x8c] sm:$0x1] %v3324_v61  ;;  %v3199_v28 = vor.u32 %v3197_v35, %v3196_v10  ;;  %v3200_v27 = vrot.slane %v3196_v10, 4  ;;  %v10045_v1 = vrot.slane %v3409_v51, 4  ;;  %v3414_v53 = vrot.slane %v3412_v59, 5 }
 0x19c   :  { %v3309_v52 = vsel %vm9953_vm12, %v3175_v45, %v3308_v13  ;;  %v3312_v24 = vsel %vm9502_vm5, %v3176_v3, %v3311_v23  ;;  %v10053_v48 = vrot.slane %v3423_v58, 4  ;;  %v2888_v5 = vmax.f32 %v2872_v26, 0.0  ;;  %v3339_v62 = vld [vmem:[#allocation2 + $0x38] sm:$0xf]  ;;  %v3314_v56 = vld [vmem:[#allocation2 + $0x80] sm:$0xf] }
 0x19d   :  { %3310 = vst [vmem:[#allocation2 + $0x78] sm:$0xf] %v3309_v52  ;;  %3313 = vst [vmem:[#allocation2 + $0x7c] sm:$0x1] %v3312_v24  ;;  %v3327_v20 = vsel %vm9953_vm12, %v3199_v28, %v3326_v21  ;;  %v3330_v41 = vsel %vm9502_vm5, %v3200_v27, %v3329_v60  ;;  %v3426_v25 = vshll.u32 %v9981_v55, 16  ;;  %v7150_v50 = vcombine.low %v3334_v34, %v9981_v55  ;;  %v8648_v13 = vld [vmem:[%s11172_s3 + $0xf8] sm:$0xff]  }
 0x19e   :  { %3328 = vst [vmem:[#allocation2 + $0x90] sm:$0xf] %v3327_v20  ;;  %3331 = vst [vmem:[#allocation2 + $0x94] sm:$0x1] %v3330_v41  ;;  %v3437_v0 = vshrl.u32 %v3336_v63, 16  ;;  %v3440_v58 = vshll.u32 %v3336_v63, 16  ;;  %v7484_v32 = vpack.c.bf16 %v2888_v5, %v2888_v5  ;;  %v7151_v38 = vcombine.low %v3336_v63, %v3337_v44 }
 0x19f   :  { %v3451_v36 = vshrl.u32 %v3337_v44, 16  ;;  %v3428_v39 = vrot.slane %v3426_v25, 5  ;;  %v3454_v33 = vshll.u32 %v3337_v44, 16  ;;  %8128 = vmatmul.mubr.bf16.vlgmr.msra.gmra.mxu0 %v7150_v50  ;;  %v3401_v55 = vor.u32 %v10035_v29, %v10025_v15  ;;  %v3317_v11 = vld [vmem:[#allocation2 + $0x84] sm:$0x1] }
 0x1a0   :  { %v10066_v35 = vrot.slane %v3437_v0, 4  ;;  %v10068_v14 = vrot.slane %v3440_v58, 5  ;;  %v3178_v34 = vshrl.u32 %v7484_v32, 16  ;;  %v3181_v54 = vshll.u32 %v7484_v32, 16  ;;  %8176 = vmatpush3.bf16.msra.mxu0 %v8648_v13  ;;  %8131 = vmatprep.mubr.bf16.mxu0 %v7151_v38  ;;  %v10083_v19 = vld [vmem:[#allocation2 + $0x1c] sm:$0x1] }
 0x1a1   :  { %v10070_v18 = vrot.slane %v3451_v36, 4  ;;  %v10077_v10 = vrot.slane %v3454_v33, 5  ;;  %v3404_v23 = vshll.u32 %v10060_v37, 16  ;;  %8177 = vmatprep.subr.bf16.mxu0 %v8555_v2  ;;  %v3402_v15 = vrot.slane %v3401_v55, 4  ;;  %v10085_v60 = vld [vmem:[#allocation2 + $0x14] sm:$0x1] }
 0x1a2   :  { %v3465_v29 = vshrl.u32 %v3338_v57, 16  ;;  %v3468_v51 = vshll.u32 %v3338_v57, 16  ;;  %v3479_v59 = vshrl.u32 %v3339_v62, 16  ;;  %v3180_v61 = vrot.slane %v3178_v34, 7  ;;  %v3341_v44 = vld [vmem:[#allocation2 + $0x58] sm:$0xf] }
 0x1a3   :  { %v3406_v45 = vrot.slane %v3404_v23, 5  ;;  %v3482_v3 = vshll.u32 %v3339_v62, 16  ;;  %v7152_v21 = vcombine.low %v3338_v57, %v3339_v62  ;;  %v3415_v63 = vor.u32 %v3414_v53, %v10045_v1  ;;  %v8561_v5 = vld [vmem:[%s11172_s3 + $0xe0] sm:$0xff]   ;;  %v10115_v33 = vld [vmem:[#allocation2 + $0x2c] sm:$0x1]  ;;  %v8564_v23 = vld [vmem:[%s11172_s3 + $0xd8] sm:$0xff]  }
 0x1a4   :  { %v10087_v28 = vrot.slane %v3465_v29, 4  ;;  %v10089_v27 = vrot.slane %v3468_v51, 5  ;;  %v10091_v26 = vrot.slane %v3479_v59, 4  ;;  %v3183_v52 = vor.u32 %v3181_v54, %v3180_v61  ;;  %8178 = vmatpush3.bf16.msra.mxu0 %v8555_v2  ;;  %v10101_v25 = vld [vmem:[#allocation2 + $0x24] sm:$0x1] }
 0x1a5   :  { %v3184_v24 = vrot.slane %v3180_v61, 4  ;;  %v3407_v20 = vsel %vm8855_vm2, %v3402_v15, %v3406_v45  ;;  %v10096_v41 = vrot.slane %v3482_v3, 5  ;;  %8179 = vmatprep.subr.bf16.mxu0 %v8558_v30  ;;  %v3416_v53 = vrot.slane %v3415_v63, 4  ;;  %v3343_v13 = vld [vmem:[#allocation2 + $0x68] sm:$0xf] }
 0x1a6   :  { %v7133_v1 = vcombine.low %v3393_v31, %v3407_v20  ;;  %v3418_v50 = vshll.u32 %v10085_v60, 16  ;;  %v3429_v0 = vor.u32 %v3428_v39, %v10053_v48  ;;  %v3315_v58 = vsel %vm9953_vm12, %v3183_v52, %v3314_v56  ;;  %v3342_v39 = vld [vmem:[#allocation2 + $0x60] sm:$0xf]  ;;  %v10140_v59 = vld [vmem:[#allocation2 + $0x34] sm:$0x1] }
 0x1a7   :  { %v3318_v36 = vsel %vm9502_vm5, %v3184_v24, %v3317_v11  ;;  %v3432_v2 = vshll.u32 %v10083_v19, 16  ;;  %v3507_v32 = vshrl.u32 %v3341_v44, 16  ;;  %3316 = vst [vmem:[#allocation2 + $0x80] sm:$0xf] %v3315_v58  ;;  %8132 = vmatmul.mubr.bf16.gmra.mxu0 %v7152_v21  ;;  %v3510_v31 = vshll.u32 %v3341_v44, 16 }
 0x1a8   :  { %3319 = vst [vmem:[#allocation2 + $0x84] sm:$0x1] %v3318_v36  ;;  %8095 = vmatprep.mubr.bf16.mxu1 %v7133_v1  ;;  %v3420_v4 = vrot.slane %v3418_v50, 5  ;;  %v3430_v6 = vrot.slane %v3429_v0, 4  ;;  %v7153_v48 = vcombine.low %v9768_v46, %v3341_v44  ;;  %8180 = vmatpush3.bf16.msra.mxu0 %v8558_v30  ;;  %v3443_v57 = vor.u32 %v10068_v14, %v10066_v35  ;;  %v10135_v11 = vld [vmem:[#allocation2 + $0x3c] sm:$0x1] }
 0x1a9   :  { %v3434_v42 = vrot.slane %v3432_v2, 5  ;;  %v10118_v38 = vrot.slane %v3507_v32, 4  ;;  %v3446_v62 = vshll.u32 %v10101_v25, 16  ;;  %v10125_v34 = vrot.slane %v3510_v31, 5  ;;  %8181 = vmatprep.subr.bf16.mxu0 %v8561_v5  ;;  %v3344_v63 = vld [vmem:[#allocation2 + $0x70] sm:$0xf] }
 0x1aa   :  { %v3421_v55 = vsel %vm8855_vm2, %v3416_v53, %v3420_v4  ;;  %8135 = vmatprep.mubr.bf16.mxu0 %v7153_v48  ;;  %v3457_v46 = vor.u32 %v10077_v10, %v10070_v18  ;;  %v3460_v54 = vshll.u32 %v10115_v33, 16  ;;  %v3444_v14 = vrot.slane %v3443_v57, 4  ;;  %v8562_v18 = vld [vmem:[%s11172_s3 + $0xb0] sm:$0xff]   ;;  %v3345_v1 = vld [vmem:[#allocation2 + $0x78] sm:$0xf]  ;;  %v8565_v4 = vld [vmem:[%s11172_s3 + $0xa8] sm:$0xff]  }
 0x1ab   :  { %v3435_v35 = vsel %vm8855_vm2, %v3430_v6, %v3434_v42  ;;  %v3448_v30 = vrot.slane %v3446_v62, 5  ;;  %v3521_v56 = vshrl.u32 %v3342_v39, 16  ;;  %v3524_v10 = vshll.u32 %v3342_v39, 16  ;;  %v8649_v53 = vld [vmem:[%s11172_s3 + $0xb8] sm:$0xff]   ;;  %v4001_v16 = vld [vmem:[#allocation2 + $0x60] sm:$0xe] }
 0x1ac   :  { %v7134_v15 = vcombine.low %v3421_v55, %v3435_v35  ;;  %v3458_v29 = vrot.slane %v3457_v46, 4  ;;  %v3462_v51 = vrot.slane %v3460_v54, 5  ;;  %8182 = vmatpush3.bf16.msra.mxu0 %v8561_v5  ;;  %v3535_v3 = vshrl.u32 %v3343_v13, 16  ;;  %v8567_v5 = vld [vmem:[%s11172_s3 + $0xd0] sm:$0xff]   ;;  %v10163_v2 = vld [vmem:[#allocation2 + $0x5c] sm:$0x1] }
 0x1ad   :  { %v3449_v61 = vsel %vm8855_vm2, %v3444_v14, %v3448_v30  ;;  %v10144_v45 = vrot.slane %v3521_v56, 4  ;;  %v3538_v21 = vshll.u32 %v3343_v13, 16  ;;  %v10148_v52 = vrot.slane %v3524_v10, 5  ;;  %8183 = vmatprep.subr.bf16.mxu0 %v8564_v23  ;;  %v8568_v10 = vld [vmem:[%s11172_s3 + $0xa0] sm:$0xff]  }
 0x1ae   :  { %8096 = vmatmul.mubr.bf16.vlgmr.msra.gmra.mxu1 %v7134_v15  ;;  %v3463_v44 = vsel %vm8855_vm2, %v3458_v29, %v3462_v51  ;;  %v7154_v24 = vcombine.low %v3342_v39, %v3343_v13  ;;  %v3471_v20 = vor.u32 %v10089_v27, %v10087_v28  ;;  %v10158_v0 = vrot.slane %v3535_v3, 4  ;;  %v3346_v31 = vld [vmem:[#allocation2 + $0x80] sm:$0xf]  ;;  %v10181_v51 = vld [vmem:[#allocation2 + $0x6c] sm:$0x1] }
 0x1af   :  { %8144 = vmatpush3.bf16.msra.mxu1 %v8649_v53  ;;  %v7135_v50 = vcombine.low %v3449_v61, %v3463_v44  ;;  %v10160_v58 = vrot.slane %v3538_v21, 5  ;;  %v3474_v36 = vshll.u32 %v10140_v59, 16  ;;  %v3485_v27 = vor.u32 %v10096_v41, %v10091_v26  ;;  %v3347_v26 = vld [vmem:[#allocation2 + $0x88] sm:$0xf] }
 0x1b0   :  { %8145 = vmatprep.subr.bf16.mxu1 %v8562_v18  ;;  %8136 = vmatmul.mubr.bf16.gmra.mxu0 %v7154_v24  ;;  %v3472_v28 = vrot.slane %v3471_v20, 4  ;;  %v3488_v32 = vshll.u32 %v10135_v11, 16  ;;  %v3549_v6 = vshrl.u32 %v3344_v63, 16  ;;  %v3552_v39 = vshll.u32 %v3344_v63, 16  ;;  %v8570_v41 = vld [vmem:[%s11172_s3 + $0xc8] sm:$0xff]  }
 0x1b1   :  { %8099 = vmatprep.mubr.bf16.mxu1 %v7135_v50  ;;  %v3476_v48 = vrot.slane %v3474_v36, 5  ;;  %8184 = vmatpush3.bf16.msra.mxu0 %v8564_v23  ;;  %v3563_v42 = vshrl.u32 %v3345_v1, 16  ;;  %v3566_v57 = vshll.u32 %v3345_v1, 16  ;;  %v3486_v62 = vrot.slane %v3485_v27, 4 }
 0x1b2   :  { %v3490_v55 = vrot.slane %v3488_v32, 5  ;;  %v3551_v46 = vrot.slane %v3549_v6, 4  ;;  %v7155_v54 = vcombine.low %v3344_v63, %v3345_v1  ;;  %8185 = vmatprep.subr.bf16.mxu0 %v8567_v5  ;;  %v3554_v35 = vrot.slane %v3552_v39, 5  ;;  %v10186_v63 = vld [vmem:[#allocation2 + $0x64] sm:$0x1] }
 0x1b3   :  { %8146 = vmatpush3.bf16.msra.mxu1 %v8562_v18  ;;  %v3477_v13 = vsel %vm8855_vm2, %v3472_v28, %v3476_v48  ;;  %v3565_v14 = vrot.slane %v3563_v42, 4  ;;  %v3568_v23 = vrot.slane %v3566_v57, 5  ;;  %v3513_v56 = vor.u32 %v10125_v34, %v10118_v38  ;;  %v8573_v34 = vld [vmem:[%s11172_s3 + $0xc0] sm:$0xff]   ;;  %v10191_v1 = vld [vmem:[#allocation2 + $0x74] sm:$0x1] }
 0x1b4   :  { %v3491_v30 = vsel %vm8855_vm2, %v3486_v62, %v3490_v55  ;;  %8147 = vmatprep.subr.bf16.mxu1 %v8565_v4  ;;  %8139 = vmatprep.mubr.bf16.mxu0 %v7155_v54  ;;  %v3516_v15 = vshll.u32 %v10163_v2, 16  ;;  %v3577_v29 = vshrl.u32 %v3346_v31, 16  ;;  %v3580_v61 = vshll.u32 %v3346_v31, 16  ;;  %v10205_v48 = vld [vmem:[#allocation2 + $0x7c] sm:$0x1] }
 0x1b5   :  { %v7136_v18 = vcombine.low %v3477_v13, %v3491_v30  ;;  %8186 = vmatpush3.bf16.msra.mxu0 %v8567_v5  ;;  %v3591_v3 = vshrl.u32 %v3347_v26, 16  ;;  %v3594_v21 = vshll.u32 %v3347_v26, 16  ;;  %v3514_v44 = vrot.slane %v3513_v56, 4  ;;  %v3993_v56 = vld [vmem:[#allocation2 + $0x10] sm:$0xe] }
 0x1b6   :  { %v3518_v24 = vrot.slane %v3516_v15, 5  ;;  %v3579_v20 = vrot.slane %v3577_v29, 4  ;;  %v7156_v38 = vcombine.low %v3346_v31, %v3347_v26  ;;  %8187 = vmatprep.subr.bf16.mxu0 %v8570_v41  ;;  %v3582_v53 = vrot.slane %v3580_v61, 5  ;;  %v8572_v31 = vld [vmem:[#allocation2 + $0x8] ss:$8 sps:$4 sm:$0xff]  }
 0x1b7   :  { %8100 = vmatmul.mubr.bf16.gmra.mxu1 %v7136_v18  ;;  %v10193_v50 = vrot.slane %v3591_v3, 4  ;;  %v10195_v5 = vrot.slane %v3594_v21, 5  ;;  %v3527_v36 = vor.u32 %v10148_v52, %v10144_v45  ;;  %v3530_v27 = vshll.u32 %v10186_v63, 16  ;;  %v10222_v26 = vld [vmem:[#allocation2 + $0x8c] sm:$0x1] }
 0x1b8   :  { %8148 = vmatpush3.bf16.msra.mxu1 %v8565_v4  ;;  %v3519_v28 = vsel %vm8855_vm2, %v3514_v44, %v3518_v24  ;;  %8140 = vmatmul.mubr.bf16.gmra.mxu0 %v7156_v38  ;;  %v3541_v32 = vor.u32 %v10160_v58, %v10158_v0  ;;  %v3544_v6 = vshll.u32 %v10181_v51, 16  ;;  %v8571_v4 = vld [vmem:[%s11172_s3 + $0x98] sm:$0xff]   ;;  %v3555_v39 = vor.u32 %v3554_v35, %v3551_v46  ;;  %v10216_v58 = vld [vmem:[#allocation2 + $0x84] sm:$0x1]  ;;  %v3995_v38 = vld [vmem:[#allocation2 + $0x20] sm:$0xe] }
 0x1b9   :  { %v7137_v45 = vcombine.low %v3505_v7, %v3519_v28  ;;  %8149 = vmatprep.subr.bf16.mxu1 %v8568_v10  ;;  %v3528_v52 = vrot.slane %v3527_v36, 4  ;;  %8188 = vmatpush3.bf16.msra.mxu0 %v8570_v41  ;;  %v3558_v0 = vshll.u32 %v10191_v1, 16  ;;  %v3532_v42 = vrot.slane %v3530_v27, 5  ;;  %v3994_v3 = vld [vmem:[#allocation2 + $0x18] sm:$0xe] }
 0x1ba   :  { %v3542_v57 = vrot.slane %v3541_v32, 4  ;;  %v3546_v62 = vrot.slane %v3544_v6, 5  ;;  %8191 = vmatprep.mubr.bf16.mxu0 %v8572_v31  ;;  %8189 = vmatprep.subr.bf16.mxu0 %v8573_v34  ;;  %v3569_v55 = vor.u32 %v3568_v23, %v3565_v14  ;;  %v3556_v7 = vrot.slane %v3555_v39, 4  ;;  %v8574_v23 = vld [vmem:[%s11172_s3 + $0x90] sm:$0xff]  }
 0x1bb   :  { %8103 = vmatprep.mubr.bf16.mxu1 %v7137_v45  ;;  %v3560_v54 = vrot.slane %v3558_v0, 5  ;;  %v3572_v46 = vshll.u32 %v10205_v48, 16  ;;  %v3583_v41 = vor.u32 %v3582_v53, %v3579_v20  ;;  %v3533_v13 = vsel %vm8855_vm2, %v3528_v52, %v3532_v42  ;;  %v8578_v36 = vld [vmem:[#allocation2 + $0x28] ss:$8 sps:$4 sm:$0xff]  }
 0x1bc   :  { %8150 = vmatpush3.bf16.msra.mxu1 %v8568_v10  ;;  %v3547_v35 = vsel %vm8855_vm2, %v3542_v57, %v3546_v62  ;;  %v3570_v14 = vrot.slane %v3569_v55, 4  ;;  %v3586_v30 = vshll.u32 %v10216_v58, 16  ;;  %v8575_v10 = vld [vmem:[#allocation2 + $0x18] ss:$8 sps:$4 sm:$0xff]   ;;  %v3597_v44 = vor.u32 %v10195_v5, %v10193_v50  ;;  %v3996_v45 = vld [vmem:[#allocation2 + $0x28] sm:$0xe] }
 0x1bd   :  { %v7138_v15 = vcombine.low %v3533_v13, %v3547_v35  ;;  %8151 = vmatprep.subr.bf16.mxu1 %v8571_v4  ;;  %v3561_v29 = vsel %vm8855_vm2, %v3556_v7, %v3560_v54  ;;  %v3574_v18 = vrot.slane %v3572_v46, 5  ;;  %8190 = vmatpush3.bf16.msra.mxu0 %v8573_v34  ;;  %v3584_v61 = vrot.slane %v3583_v41, 4  ;;  %v8579_v34 = vld [vmem:[%s11172_s3 + $0x170] sm:$0xff]   ;;  %v3998_v55 = vld [vmem:[#allocation2 + $0x38] sm:$0xe]  ;;  %v8582_v54 = vld [vmem:[%s11172_s3 + $0x168] sm:$0xff]  }
 0x1be   :  { %8239 = vmatprep.subr.bf16.mxu0 %v8576_v9  ;;  %v3588_v21 = vrot.slane %v3586_v30, 5  ;;  %v3600_v24 = vshll.u32 %v10222_v26, 16  ;;  %v7166_v20 = vrot.slane %v3992_v22, 9  ;;  %v4048_v28 = vrot.slane %v10060_v37, 5  ;;  %v8577_v37 = vld [vmem:[%s11172_s3 + $0x88] sm:$0xff]  }
 0x1bf   :  { %8104 = vmatmul.mubr.bf16.gmra.mxu1 %v7138_v15  ;;  %v3575_v53 = vsel %vm8855_vm2, %v3570_v14, %v3574_v18  ;;  %v7167_v27 = vrot.slane %v3993_v56, 9  ;;  %v4052_v32 = vrot.slane %v10085_v60, 5  ;;  %v3598_v6 = vrot.slane %v3597_v44, 4  ;;  %v3997_v0 = vld [vmem:[#allocation2 + $0x30] sm:$0xe] }
 0x1c0   :  { %8152 = vmatpush3.bf16.msra.mxu1 %v8571_v4  ;;  %v7139_v50 = vcombine.low %v3561_v29, %v3575_v53  ;;  %8192 = vmatmul.mubr.bf16.vlgmr.msra.gmra.mxu0 %v8575_v10  ;;  %v3589_v5 = vsel %vm8855_vm2, %v3584_v61, %v3588_v21  ;;  %v3602_v31 = vrot.slane %v3600_v24, 5  ;;  %v4049_v52 = vsel %vm9869_vm10, %v7166_v20, %v4048_v28  ;;  %v4000_v22 = vld [vmem:[#allocation2 + $0x58] sm:$0xe]  ;;  %v4002_v13 = vld [vmem:[#allocation2 + $0x68] sm:$0xe] }
 0x1c1   :  { %8153 = vmatprep.subr.bf16.mxu1 %v8574_v23  ;;  %8195 = vmatprep.mubr.bf16.mxu0 %v8578_v36  ;;  %v10253_v60 = vsel %vm9869_vm10, %v7167_v27, %v4052_v32  ;;  %v7168_v4 = vrot.slane %v3994_v3, 9  ;;  %v4056_v39 = vrot.slane %v10083_v19, 5  ;;  %v7169_v57 = vrot.slane %v3995_v38, 9  ;;  %v10279_v35 = vld [vmem:[#allocation2 + $0xc] sm:$0x1]  ;;  %v8584_v28 = vld [vmem:[%s11172_s3 + $0x138] sm:$0xff]  }
 0x1c2   :  { %8107 = vmatprep.mubr.bf16.mxu1 %v7139_v50  ;;  %v3603_v42 = vsel %vm8855_vm2, %v3598_v6, %v3602_v31  ;;  %8240 = vmatpush3.bf16.msra.mxu0 %v8576_v9  ;;  %v4060_v62 = vrot.slane %v10101_v25, 5  ;;  %v10265_v7 = vsel %vm9869_vm10, %v7173_v47, %v4076_v12  ;;  %v7170_v25 = vrot.slane %v3996_v45, 9  ;;  %v10281_v14 = vld [vmem:[#allocation2 + $0x8] sm:$0xe]  ;;  %v10291_v15 = vld [vmem:[#allocation2 + $0x14] sm:$0x1] }
 0x1c3   :  { %v7140_v19 = vcombine.low %v3589_v5, %v3603_v42  ;;  %8241 = vmatprep.subr.bf16.mxu0 %v8579_v34  ;;  %v10272_v9 = vsel %vm9869_vm10, %v7168_v4, %v4056_v39  ;;  %v4064_v46 = vrot.slane %v10115_v33, 5  ;;  %v7197_v49 = vcombine.low %v9878_v43, %v4049_v52  ;;  %v8580_v33 = vld [vmem:[%s11172_s3 + $0x80] sm:$0xff]   ;;  %v10302_v21 = vld [vmem:[#allocation2 + $0x18] sm:$0xe]  ;;  %v4003_v53 = vld [vmem:[#allocation2 + $0x70] sm:$0xe] }
 0x1c4   :  { %8154 = vmatpush3.bf16.msra.mxu1 %v8574_v23  ;;  %v7198_v47 = vcombine.low %v10253_v60, %v10272_v9  ;;  %v7171_v12 = vrot.slane %v3997_v0, 9  ;;  %v4068_v41 = vrot.slane %v10140_v59, 5  ;;  %v7172_v43 = vrot.slane %v3998_v55, 9  ;;  %v5025_v59 = vld [vmem:[#allocation2 + $0x10] sm:$0xe]  ;;  %v10330_v50 = vld [vmem:[%s11172_s3 + $0x158] sm:$0xff]  }
 0x1c5   :  { %8155 = vmatprep.subr.bf16.mxu1 %v8577_v37  ;;  %v10288_v23 = vsel %vm9869_vm10, %v7170_v25, %v4064_v46  ;;  %v4072_v30 = vrot.slane %v10135_v11, 5  ;;  %v7174_v56 = vrot.slane %v4000_v22, 9  ;;  %v8581_v29 = vld [vmem:[#allocation2 + $0x38] ss:$8 sps:$4 sm:$0xff]   ;;  %v10295_v18 = vsel %vm9869_vm10, %v7169_v57, %v4060_v62  ;;  %v4006_v62 = vld [vmem:[#allocation2 + $0x88] sm:$0xe] }
 0x1c6   :  { %8242 = vmatpush3.bf16.msra.mxu0 %v8579_v34  ;;  %v10299_v10 = vsel %vm9869_vm10, %v7171_v12, %v4068_v41  ;;  %v4080_v61 = vrot.slane %v10163_v2, 5  ;;  %v7175_v3 = vrot.slane %v4001_v16, 9  ;;  %v8585_v11 = vld [vmem:[%s11172_s3 + $0x160] sm:$0xff]   ;;  %v4084_v24 = vrot.slane %v10186_v63, 5  ;;  %v10313_v2 = vld [vmem:[#allocation2 + $0x1c] sm:$0x1] }
 0x1c7   :  { %8108 = vmatmul.mubr.bf16.gmra.mxu1 %v7140_v19  ;;  %8243 = vmatprep.subr.bf16.mxu0 %v8582_v54  ;;  %v10309_v44 = vsel %vm9869_vm10, %v7172_v43, %v4072_v30  ;;  %v7176_v20 = vrot.slane %v4002_v13, 9  ;;  %v4088_v38 = vrot.slane %v10181_v51, 5  ;;  %v8583_v36 = vld [vmem:[#allocation2 + $0x58] ss:$8 sps:$4 sm:$0xff]   ;;  %v7199_v34 = vcombine.low %v10295_v18, %v10288_v23  ;;  %v5028_v41 = vld [vmem:[#allocation2 + $0x28] sm:$0xe] }
 0x1c8   :  { %8156 = vmatpush3.bf16.msra.mxu1 %v8577_v37  ;;  %8159 = vmatprep.mubr.bf16.mxu1 %v7197_v49  ;;  %v7200_v27 = vcombine.low %v10299_v10, %v10309_v44  ;;  %v10324_v63 = vsel %vm9869_vm10, %v7174_v56, %v4080_v61  ;;  %v7277_v51 = vrot.slane %v10281_v14, 9  ;;  %v4004_v32 = vld [vmem:[#allocation2 + $0x78] sm:$0xe]  ;;  %v10334_v5 = vsel %vm9869_vm10, %v7175_v3, %v4084_v24  ;;  %v10341_v37 = vld [vmem:[#allocation2 + $0x24] sm:$0x1]  ;;  %v8590_v60 = vld [vmem:[%s11172_s3 + $0x128] sm:$0xff]  }
 0x1c9   :  { %8157 = vmatprep.subr.bf16.mxu1 %v8580_v33  ;;  %8196 = vmatmul.mubr.bf16.gmra.mxu0 %v8581_v29  ;;  %v10338_v6 = vsel %vm9869_vm10, %v7176_v20, %v4088_v38  ;;  %v5074_v31 = vrot.slane %v10279_v35, 5  ;;  %v7278_v45 = vrot.slane %v5025_v59, 9  ;;  %v5027_v52 = vld [vmem:[#allocation2 + $0x20] sm:$0xe]  ;;  %v7201_v4 = vcombine.low %v10265_v7, %v10324_v63  ;;  %v10374_v43 = vld [vmem:[#allocation2 + $0x34] sm:$0x1] }
 0x1ca   :  { %8199 = vmatprep.mubr.bf16.mxu0 %v8583_v36  ;;  %8244 = vmatpush3.bf16.msra.mxu0 %v8582_v54  ;;  %v7202_v39 = vcombine.low %v10334_v5, %v10338_v6  ;;  %v5078_v0 = vrot.slane %v10291_v15, 5  ;;  %v7177_v42 = vrot.slane %v4003_v53, 9  ;;  %v4005_v57 = vld [vmem:[#allocation2 + $0x80] sm:$0xe]  ;;  %v4092_v55 = vrot.slane %v10191_v1, 5  ;;  %v8586_v1 = vld [vmem:[%s11172_s3 + $0x130] sm:$0xff]  }
 0x1cb   :  { %8245 = vmatprep.subr.bf16.mxu0 %v8585_v11  ;;  %v7178_v22 = vrot.slane %v4004_v32, 9  ;;  %v4096_v19 = vrot.slane %v10205_v48, 5  ;;  %v7279_v25 = vrot.slane %v10302_v21, 9  ;;  %v10351_v54 = vld [vmem:[#allocation2 + $0x2c] sm:$0x1]  ;;  %v5082_v16 = vrot.slane %v10313_v2, 5 }
 0x1cc   :  { %8158 = vmatpush3.bf16.msra.mxu1 %v8580_v33  ;;  %v10355_v46 = vsel %vm9869_vm10, %v7278_v45, %v5078_v0  ;;  %v7280_v49 = vrot.slane %v5027_v52, 9  ;;  %v5086_v12 = vrot.slane %v10341_v37, 5  ;;  %v8587_v48 = vld [vmem:[#allocation2 + $0x68] ss:$8 sps:$4 sm:$0xff]   ;;  %v10364_v13 = vsel %vm9869_vm10, %v7277_v51, %v5074_v31  ;;  %v8589_v56 = vld [vmem:[#allocation2 + $0x78] ss:$8 sps:$4 sm:$0xff]  }
 0x1cd   :  { %8207 = vmatprep.subr.bf16.mxu1 %v8584_v28  ;;  %v10368_v14 = vsel %vm9869_vm10, %v7177_v42, %v4092_v55  ;;  %v10372_v33 = vsel %vm9869_vm10, %v7178_v22, %v4096_v19  ;;  %v7179_v23 = vrot.slane %v4005_v57, 9  ;;  %v5029_v30 = vld [vmem:[#allocation2 + $0x30] sm:$0xe]  ;;  %v7309_v59 = vcombine.low %v10364_v13, %v10355_v46  ;;  %v4558_v3 = vld [vmem:[#allocation2 + $0x8] sm:$0xf] }
 0x1ce   :  { %8246 = vmatpush3.bf16.msra.mxu0 %v8585_v11  ;;  %v7203_v29 = vcombine.low %v10368_v14, %v10372_v33  ;;  %v10382_v18 = vsel %vm9869_vm10, %v7280_v49, %v5086_v12  ;;  %v4100_v61 = vrot.slane %v10216_v58, 5  ;;  %v8591_v21 = vld [vmem:[%s11172_s3 + $0x150] sm:$0xff]   ;;  %v10394_v11 = vsel %vm9869_vm10, %v7279_v25, %v5082_v16  ;;  %v10406_v51 = vld [vmem:[#allocation2 + $0x3c] sm:$0x1]  ;;  %v10417_v45 = vld [vmem:[#allocation2 + $0x44] sm:$0x1] }
 0x1cf   :  { %8160 = vmatmul.mubr.bf16.vlgmr.msra.gmra.mxu1 %v7198_v47  ;;  %8247 = vmatprep.subr.bf16.mxu0 %v10330_v50  ;;  %v7180_v24 = vrot.slane %v4006_v62, 9  ;;  %v4104_v20 = vrot.slane %v10222_v26, 5  ;;  %v7281_v38 = vrot.slane %v5028_v41, 9  ;;  %v4560_v58 = vld [vmem:[#allocation2 + $0x10] sm:$0xf]  ;;  %v5090_v47 = vrot.slane %v10351_v54, 5 }
 0x1d0   :  { %8163 = vmatprep.mubr.bf16.mxu1 %v7199_v34  ;;  %8208 = vmatpush3.bf16.msra.mxu1 %v8584_v28  ;;  %v10402_v9 = vsel %vm9869_vm10, %v7179_v23, %v4100_v61  ;;  %v7282_v53 = vrot.slane %v5029_v30, 9  ;;  %v5094_v36 = vrot.slane %v10374_v43, 5  ;;  %v8594_v26 = vld [vmem:[%s11172_s3 + $0x148] sm:$0xff]   ;;  %v7310_v28 = vcombine.low %v10394_v11, %v10382_v18  ;;  %v5030_v52 = vld [vmem:[#allocation2 + $0x38] sm:$0xe]  ;;  %v8597_v46 = vld [vmem:[%s11172_s3 + $0x110] sm:$0xff]  }
 0x1d1   :  { %8209 = vmatprep.subr.bf16.mxu1 %v8586_v1  ;;  %8200 = vmatmul.mubr.bf16.gmra.mxu0 %v8587_v48  ;;  %v10415_v34 = vsel %vm9869_vm10, %v7180_v24, %v4104_v20  ;;  %v4591_v32 = vshrl.u32 %v4558_v3, 16  ;;  %v4594_v31 = vshll.u32 %v4558_v3, 16  ;;  %v10422_v0 = vsel %vm9869_vm10, %v7281_v38, %v5090_v47  ;;  %v5031_v55 = vld [vmem:[#allocation2 + $0x40] sm:$0xe]  ;;  %v4562_v16 = vld [vmem:[#allocation2 + $0x18] sm:$0xf] }
 0x1d2   :  { %8203 = vmatprep.mubr.bf16.mxu0 %v8589_v56  ;;  %8248 = vmatpush3.bf16.msra.mxu0 %v10330_v50  ;;  %v10426_v42 = vsel %vm9869_vm10, %v7282_v53, %v5094_v36  ;;  %v4600_v57 = vshll.u32 %v10279_v35, 16  ;;  %v4605_v62 = vshrl.u32 %v4560_v58, 16  ;;  %v7204_v22 = vcombine.low %v10402_v9, %v10415_v34  ;;  %v8592_v35 = vld [vmem:[%s11172_s3 + $0x120] sm:$0xff]   ;;  %v8593_v23 = vld [vmem:[#allocation2 + $0x88] ss:$8 sps:$4 sm:$0xff]   ;;  %v8603_v9 = vld [vmem:[%s11172_s3 + $0x1b8] sm:$0xff]  }
 0x1d3   :  { %8249 = vmatprep.subr.bf16.mxu0 %v8591_v21  ;;  %v7311_v19 = vcombine.low %v10422_v0, %v10426_v42  ;;  %v4593_v50 = vrot.slane %v4591_v32, 4  ;;  %v4596_v25 = vrot.slane %v4594_v31, 5  ;;  %v4608_v12 = vshll.u32 %v4560_v58, 16  ;;  %v4564_v24 = vld [vmem:[#allocation2 + $0x20] sm:$0xf] }
 0x1d4   :  { %8210 = vmatpush3.bf16.msra.mxu1 %v8586_v1  ;;  %v4607_v49 = vrot.slane %v4605_v62, 4  ;;  %v4614_v41 = vshll.u32 %v10291_v15, 16  ;;  %v7283_v48 = vrot.slane %v5030_v52, 9  ;;  %v5098_v56 = vrot.slane %v10406_v51, 5  ;;  %v10439_v15 = vld [vmem:[#allocation2 + $0x5c] sm:$0x1] }
 0x1d5   :  { %8211 = vmatprep.subr.bf16.mxu1 %v8590_v60  ;;  %v4597_v30 = vor.u32 %v4596_v25, %v4593_v50  ;;  %v7284_v61 = vrot.slane %v5031_v55, 9  ;;  %v5102_v3 = vrot.slane %v10417_v45, 5  ;;  %v4602_v1 = vrot.slane %v4600_v57, 5  ;;  %v5032_v47 = vld [vmem:[#allocation2 + $0x58] sm:$0xe]  ;;  %v8596_v53 = vld [vmem:[%s11172_s3 + $0x140] sm:$0xff]  }
 0x1d6   :  { %8250 = vmatpush3.bf16.msra.mxu0 %v8591_v21  ;;  %v4610_v20 = vrot.slane %v4608_v12, 5  ;;  %v4619_v38 = vshrl.u32 %v4562_v16, 16  ;;  %v4622_v58 = vshll.u32 %v4562_v16, 16  ;;  %v4616_v32 = vrot.slane %v4614_v41, 5  ;;  %v5033_v52 = vld [vmem:[#allocation2 + $0x60] sm:$0xe] }
 0x1d7   :  { %8164 = vmatmul.mubr.bf16.gmra.mxu1 %v7200_v27  ;;  %8251 = vmatprep.subr.bf16.mxu0 %v8594_v26  ;;  %v4598_v36 = vrot.slane %v4597_v30, 4  ;;  %v10449_v21 = vsel %vm9869_vm10, %v7284_v61, %v5102_v3  ;;  %v4628_v31 = vshll.u32 %v10313_v2, 16  ;;  %v10457_v44 = vsel %vm9869_vm10, %v7283_v48, %v5098_v56  ;;  %v8595_v62 = vld [vmem:[%s11172_s3 + $0x118] sm:$0xff]   ;;  %v4568_v56 = vld [vmem:[#allocation2 + $0x30] sm:$0xf] }
 0x1d8   :  { %8167 = vmatprep.mubr.bf16.mxu1 %v7201_v4  ;;  %8212 = vmatpush3.bf16.msra.mxu1 %v8590_v60  ;;  %v4611_v10 = vor.u32 %v4610_v20, %v4607_v49  ;;  %v4621_v27 = vrot.slane %v4619_v38, 4  ;;  %v4624_v57 = vrot.slane %v4622_v58, 5  ;;  %v7312_v7 = vcombine.low %v10457_v44, %v10449_v21  ;;  %v10466_v60 = vld [vmem:[#allocation2 + $0x64] sm:$0x1]  ;;  %v4566_v49 = vld [vmem:[#allocation2 + $0x28] sm:$0xf] }
 0x1d9   :  { %8213 = vmatprep.subr.bf16.mxu1 %v8592_v35  ;;  %8204 = vmatmul.mubr.bf16.gmra.mxu0 %v8593_v23  ;;  %v4603_v2 = vsel %vm8855_vm2, %v4598_v36, %v4602_v1  ;;  %v4633_v63 = vshrl.u32 %v4564_v24, 16  ;;  %v4636_v4 = vshll.u32 %v4564_v24, 16  ;;  %v4642_v25 = vshll.u32 %v10341_v37, 16  ;;  %v8598_v12 = vld [vmem:[%s11172_s3 + $0x1f8] sm:$0xff]   ;;  %v10484_v20 = vld [vmem:[#allocation2 + $0x6c] sm:$0x1] }
 0x1da   :  { %8252 = vmatpush3.bf16.msra.mxu0 %v8594_v26  ;;  %8255 = vmatprep.mubr.bf16.mxu0 %v7309_v59  ;;  %v4612_v55 = vrot.slane %v4611_v10, 4  ;;  %v4625_v50 = vor.u32 %v4624_v57, %v4621_v27  ;;  %v7285_v16 = vrot.slane %v5032_v47, 9  ;;  %v5106_v23 = vrot.slane %v10439_v15, 5  ;;  %v10575_v44 = vld [vmem:[#allocation2 + $0x8c] sm:$0x1] }
 0x1db   :  { %8253 = vmatprep.subr.bf16.mxu0 %v8596_v53  ;;  %v4635_v41 = vrot.slane %v4633_v63, 4  ;;  %v4638_v48 = vrot.slane %v4636_v4, 5  ;;  %v7286_v26 = vrot.slane %v5033_v52, 9  ;;  %v4630_v59 = vrot.slane %v4628_v31, 5  ;;  %v5035_v31 = vld [vmem:[#allocation2 + $0x70] sm:$0xe] }
 0x1dc   :  { %8214 = vmatpush3.bf16.msra.mxu1 %v8592_v35  ;;  %v4617_v37 = vsel %vm8855_vm2, %v4612_v55, %v4616_v32  ;;  %v4626_v13 = vrot.slane %v4625_v50, 4  ;;  %v5110_v30 = vrot.slane %v10466_v60, 5  ;;  %v4644_v24 = vrot.slane %v4642_v25, 5  ;;  %v5034_v35 = vld [vmem:[#allocation2 + $0x68] sm:$0xe] }
 0x1dd   :  { %8215 = vmatprep.subr.bf16.mxu1 %v8595_v62  ;;  %v10482_v61 = vcombine.low %v4603_v2, %v4617_v37  ;;  %v4639_v3 = vor.u32 %v4638_v48, %v4635_v41  ;;  %v4647_v1 = vshrl.u32 %v4566_v49, 16  ;;  %v10488_v38 = vsel %vm9869_vm10, %v7285_v16, %v5106_v23  ;;  %v10495_v32 = vld [vmem:[#allocation2 + $0x74] sm:$0x1]  ;;  %v4570_v52 = vld [vmem:[#allocation2 + $0x38] sm:$0xf]  ;;  %v8599_v63 = vld [vmem:[%s11172_s3 + $0x108] sm:$0xff]  }
 0x1de   :  { %8254 = vmatpush3.bf16.msra.mxu0 %v8596_v53  ;;  %v10492_v58 = vsel %vm9869_vm10, %v7286_v26, %v5110_v30  ;;  %v4650_v47 = vshll.u32 %v4566_v49, 16  ;;  %v4656_v36 = vshll.u32 %v10351_v54, 16  ;;  %v8600_v53 = vld [vmem:[%s11172_s3 + $0x1f0] sm:$0xff]   ;;  %v4631_v10 = vsel %vm8855_vm2, %v4626_v13, %v4630_v59  ;;  %v8602_v55 = vld [vmem:[%s11172_s3 + $0x1e8] sm:$0xff]   ;;  %v10530_v41 = vld [vmem:[#allocation2 + $0x7c] sm:$0x1] }
 0x1df   :  { %8168 = vmatmul.mubr.bf16.gmra.mxu1 %v7202_v39  ;;  %8303 = vmatprep.subr.bf16.mxu0 %v8598_v12  ;;  %v4640_v27 = vrot.slane %v4639_v3, 4  ;;  %v4649_v57 = vrot.slane %v4647_v1, 4  ;;  %v4661_v2 = vshrl.u32 %v4568_v56, 16  ;;  %v7313_v5 = vcombine.low %v10488_v38, %v10492_v58  ;;  %v8601_v48 = vld [vmem:[%s11172_s3 + $0x100] sm:$0xff]   ;;  %v5036_v59 = vld [vmem:[#allocation2 + $0x78] sm:$0xe] }
 0x1e0   :  { %8171 = vmatprep.mubr.bf16.mxu1 %v7203_v29  ;;  %8216 = vmatpush3.bf16.msra.mxu1 %v8595_v62  ;;  %v4652_v6 = vrot.slane %v4650_v47, 5  ;;  %v4664_v39 = vshll.u32 %v4568_v56, 16  ;;  %v4670_v54 = vshll.u32 %v10374_v43, 16  ;;  %v4658_v33 = vrot.slane %v4656_v36, 5  ;;  %v8604_v1 = vld [vmem:[%s11172_s3 + $0x1e0] sm:$0xff]  }
 0x1e1   :  { %8217 = vmatprep.subr.bf16.mxu1 %v8597_v46  ;;  %8256 = vmatmul.mubr.bf16.vlgmr.msra.gmra.mxu0 %v7310_v28  ;;  %v4645_v14 = vsel %vm8855_vm2, %v4640_v27, %v4644_v24  ;;  %v4663_v29 = vrot.slane %v4661_v2, 4  ;;  %v7287_v62 = vrot.slane %v5034_v35, 9  ;;  %v5114_v11 = vrot.slane %v10484_v20, 5  ;;  %v4572_v28 = vld [vmem:[#allocation2 + $0x40] sm:$0xf] }
 0x1e2   :  { %8259 = vmatprep.mubr.bf16.mxu0 %v7311_v19  ;;  %8304 = vmatpush3.bf16.msra.mxu0 %v8598_v12  ;;  %v10522_v43 = vcombine.low %v4631_v10, %v4645_v14  ;;  %v4653_v4 = vor.u32 %v4652_v6, %v4649_v57  ;;  %v4666_v18 = vrot.slane %v4664_v39, 5  ;;  %v4672_v50 = vrot.slane %v4670_v54, 5  ;;  %v5037_v24 = vld [vmem:[#allocation2 + $0x80] sm:$0xe]  ;;  %v5039_v14 = vld [vmem:[#allocation2 + $0x90] sm:$0xe] }
 0x1e3   :  { %8305 = vmatprep.subr.bf16.mxu0 %v8600_v53  ;;  %v7288_v25 = vrot.slane %v5035_v31, 9  ;;  %v5118_v16 = vrot.slane %v10495_v32, 5  ;;  %v4675_v49 = vshrl.u32 %v4570_v52, 16  ;;  %v4678_v19 = vshll.u32 %v4570_v52, 16  ;;  %v4574_v52 = vld [vmem:[#allocation2 + $0x58] sm:$0xf] }
 0x1e4   :  { %8218 = vmatpush3.bf16.msra.mxu1 %v8597_v46  ;;  %v4654_v0 = vrot.slane %v4653_v4, 4  ;;  %v4667_v42 = vor.u32 %v4666_v18, %v4663_v29  ;;  %v4684_v12 = vshll.u32 %v10406_v51, 16  ;;  %v4689_v37 = vshrl.u32 %v4572_v28, 16  ;;  %v10539_v46 = vld [vmem:[#allocation2 + $0x84] sm:$0x1] }
 0x1e5   :  { %8219 = vmatprep.subr.bf16.mxu1 %v8599_v63  ;;  %v10537_v23 = vsel %vm9869_vm10, %v7288_v25, %v5118_v16  ;;  %v4677_v26 = vrot.slane %v4675_v49, 4  ;;  %v4692_v13 = vshll.u32 %v4572_v28, 16  ;;  %v10545_v56 = vsel %vm9869_vm10, %v7287_v62, %v5114_v11  ;;  %v4576_v27 = vld [vmem:[#allocation2 + $0x60] sm:$0xf]  ;;  %v10578_v18 = vld [vmem:[#allocation2 + $0x94] sm:$0x1] }
 0x1e6   :  { %8306 = vmatpush3.bf16.msra.mxu0 %v8600_v53  ;;  %v4659_v51 = vsel %vm8855_vm2, %v4654_v0, %v4658_v33  ;;  %v4668_v30 = vrot.slane %v4667_v42, 4  ;;  %v4680_v3 = vrot.slane %v4678_v19, 5  ;;  %v7314_v35 = vcombine.low %v10545_v56, %v10537_v23  ;;  %v8605_v28 = vld [vmem:[%s11172_s3 + $0x1b0] sm:$0xff]   ;;  %v4578_v16 = vld [vmem:[#allocation2 + $0x68] sm:$0xf] }
 0x1e7   :  { %8172 = vmatmul.mubr.bf16.gmra.mxu1 %v7204_v22  ;;  %8307 = vmatprep.subr.bf16.mxu0 %v8602_v55  ;;  %v4691_v47 = vrot.slane %v4689_v37, 4  ;;  %v4694_v36 = vrot.slane %v4692_v13, 5  ;;  %v4698_v31 = vshll.u32 %v10417_v45, 16  ;;  %v7289_v53 = vrot.slane %v5036_v59, 9  ;;  %v4580_v59 = vld [vmem:[#allocation2 + $0x70] sm:$0xf] }
 0x1e8   :  { %8220 = vmatpush3.bf16.msra.mxu1 %v8599_v63  ;;  %8223 = vmatprep.mubr.bf16.mxu1 %v10482_v61  ;;  %v4673_v34 = vsel %vm8855_vm2, %v4668_v30, %v4672_v50  ;;  %v4681_v22 = vor.u32 %v4680_v3, %v4677_v26  ;;  %v5122_v10 = vrot.slane %v10530_v41, 5  ;;  %v8606_v61 = vld [vmem:[%s11172_s3 + $0x1d8] sm:$0xff]   ;;  %v10569_v57 = vrot.slane %v4684_v12, 5 }
 0x1e9   :  { %8221 = vmatprep.subr.bf16.mxu1 %v8601_v48  ;;  %8260 = vmatmul.mubr.bf16.gmra.mxu0 %v7312_v7  ;;  %v7263_v45 = vcombine.low %v4659_v51, %v4673_v34  ;;  %v4695_v2 = vor.u32 %v4694_v36, %v4691_v47  ;;  %v7290_v6 = vrot.slane %v5037_v24, 9  ;;  %v4700_v54 = vrot.slane %v4698_v31, 5  ;;  %v5038_v7 = vld [vmem:[#allocation2 + $0x88] sm:$0xe]  ;;  %v5589_v24 = vld [vmem:[#allocation2 + $0x10] sm:$0xf] }
 0x1ea   :  { %8263 = vmatprep.mubr.bf16.mxu0 %v7313_v5  ;;  %8308 = vmatpush3.bf16.msra.mxu0 %v8602_v55  ;;  %v4682_v39 = vrot.slane %v4681_v22, 4  ;;  %v5126_v63 = vrot.slane %v10539_v46, 5  ;;  %v4703_v21 = vshrl.u32 %v4574_v52, 16  ;;  %v4706_v29 = vshll.u32 %v4574_v52, 16  ;;  %v10608_v52 = vld [vmem:[#allocation2 + $0x14] sm:$0x1] }
 0x1eb   :  { %8309 = vmatprep.subr.bf16.mxu0 %v8604_v1  ;;  %v4696_v33 = vrot.slane %v4695_v2, 4  ;;  %v4712_v62 = vshll.u32 %v10439_v15, 16  ;;  %v4717_v4 = vshrl.u32 %v4576_v27, 16  ;;  %v5123_v38 = vsel %vm9869_vm10, %v7289_v53, %v5122_v10 }
 0x1ec   :  { %8222 = vmatpush3.bf16.msra.mxu1 %v8601_v48  ;;  %v5127_v58 = vsel %vm9869_vm10, %v7290_v6, %v5126_v63  ;;  %v4705_v5 = vrot.slane %v4703_v21, 4  ;;  %v4720_v11 = vshll.u32 %v4576_v27, 16  ;;  %v4687_v15 = vsel %vm8855_vm2, %v4682_v39, %v10569_v57  ;;  %v8608_v48 = vld [vmem:[%s11172_s3 + $0x1d0] sm:$0xff]   ;;  %v4582_v39 = vld [vmem:[#allocation2 + $0x78] sm:$0xf] }
 0x1ed   :  { %8271 = vmatprep.subr.bf16.mxu1 %v8603_v9  ;;  %v4701_v55 = vsel %vm8855_vm2, %v4696_v33, %v4700_v54  ;;  %v7315_v50 = vcombine.low %v5123_v38, %v5127_v58  ;;  %v4708_v25 = vrot.slane %v4706_v29, 5  ;;  %v4714_v49 = vrot.slane %v4712_v62, 5  ;;  %v8609_v54 = vld [vmem:[%s11172_s3 + $0x1a0] sm:$0xff]  }
 0x1ee   :  { %8310 = vmatpush3.bf16.msra.mxu0 %v8604_v1  ;;  %v4719_v0 = vrot.slane %v4717_v4, 4  ;;  %v4722_v42 = vrot.slane %v4720_v11, 5  ;;  %v4726_v19 = vshll.u32 %v10466_v60, 16  ;;  %v7291_v26 = vrot.slane %v5038_v7, 9  ;;  %v4584_v38 = vld [vmem:[#allocation2 + $0x80] sm:$0xf] }
 0x1ef   :  { %8224 = vmatmul.mubr.bf16.vlgmr.msra.gmra.mxu1 %v10522_v43  ;;  %8311 = vmatprep.subr.bf16.mxu0 %v8606_v61  ;;  %v4709_v12 = vor.u32 %v4708_v25, %v4705_v5  ;;  %v5130_v37 = vrot.slane %v10575_v44, 5  ;;  %v7292_v13 = vrot.slane %v5039_v14, 9  ;;  %v5134_v3 = vrot.slane %v10578_v18, 5  ;;  %v8607_v43 = vld [vmem:[%s11172_s3 + $0x1a8] sm:$0xff]  }
 0x1f0   :  { %8227 = vmatprep.mubr.bf16.mxu1 %v7263_v45  ;;  %8272 = vmatpush3.bf16.msra.mxu1 %v8603_v9  ;;  %v4723_v51 = vor.u32 %v4722_v42, %v4719_v0  ;;  %v4728_v30 = vrot.slane %v4726_v19, 5  ;;  %v4731_v60 = vshrl.u32 %v4578_v16, 16  ;;  %v4734_v36 = vshll.u32 %v4578_v16, 16  ;;  %v5591_v9 = vld [vmem:[#allocation2 + $0x18] sm:$0xf] }
 0x1f1   :  { %8273 = vmatprep.subr.bf16.mxu1 %v8605_v28  ;;  %8264 = vmatmul.mubr.bf16.gmra.mxu0 %v7314_v35  ;;  %v4710_v1 = vrot.slane %v4709_v12, 4  ;;  %v5131_v47 = vsel %vm9869_vm10, %v7291_v26, %v5130_v37  ;;  %v4740_v31 = vshll.u32 %v10484_v20, 16  ;;  %v5135_v23 = vsel %vm9869_vm10, %v7292_v13, %v5134_v3  ;;  %v8610_v20 = vld [vmem:[%s11172_s3 + $0x1c8] sm:$0xff]   ;;  %v10617_v45 = vld [vmem:[#allocation2 + $0x1c] sm:$0x1] }
 0x1f2   :  { %8267 = vmatprep.mubr.bf16.mxu0 %v7315_v50  ;;  %8312 = vmatpush3.bf16.msra.mxu0 %v8606_v61  ;;  %v4724_v34 = vrot.slane %v4723_v51, 4  ;;  %v4733_v56 = vrot.slane %v4731_v60, 4  ;;  %v4745_v35 = vshrl.u32 %v4580_v59, 16  ;;  %v7264_v22 = vcombine.low %v4687_v15, %v4701_v55  ;;  %v8611_v16 = vld [vmem:[%s11172_s3 + $0x198] sm:$0xff]   ;;  %v5593_v12 = vld [vmem:[#allocation2 + $0x20] sm:$0xf] }
 0x1f3   :  { %v4715_v53 = vsel %vm8855_vm2, %v4710_v1, %v4714_v49  ;;  %8313 = vmatprep.subr.bf16.mxu0 %v8608_v48  ;;  %v7316_v10 = vcombine.low %v5131_v47, %v5135_v23  ;;  %v4736_v27 = vrot.slane %v4734_v36, 5  ;;  %v4748_v2 = vshll.u32 %v4580_v59, 16  ;;  %v5595_v59 = vld [vmem:[#allocation2 + $0x28] sm:$0xf] }
 0x1f4   :  { %8274 = vmatpush3.bf16.msra.mxu1 %v8605_v28  ;;  %v4729_v61 = vsel %vm8855_vm2, %v4724_v34, %v4728_v30  ;;  %v4747_v57 = vrot.slane %v4745_v35, 4  ;;  %v4754_v6 = vshll.u32 %v10495_v32, 16  ;;  %v4742_v21 = vrot.slane %v4740_v31, 5  ;;  %v8612_v32 = vld [vmem:[%s11172_s3 + $0x1c0] sm:$0xff]   ;;  %v8613_v31 = vld [vmem:[%s11172_s3 + $0x190] sm:$0xff]  }
 0x1f5   :  { %8275 = vmatprep.subr.bf16.mxu1 %v8607_v43  ;;  %v4737_v63 = vor.u32 %v4736_v27, %v4733_v56  ;;  %v5622_v7 = vshrl.u32 %v5589_v24, 16  ;;  %v5625_v14 = vshll.u32 %v5589_v24, 16  ;;  %v7265_v33 = vcombine.low %v4715_v53, %v4729_v61  ;;  %v10638_v24 = vld [vmem:[%s11174_s5 + $0x38] sm:$0xff]  }
 0x1f6   :  { %8314 = vmatpush3.bf16.msra.mxu0 %v8608_v48  ;;  %v4750_v29 = vrot.slane %v4748_v2, 5  ;;  %v5631_v62 = vshll.u32 %v10608_v52, 16  ;;  %v5636_v4 = vshrl.u32 %v5591_v9, 16  ;;  %v5639_v28 = vshll.u32 %v5591_v9, 16 }
 0x1f7   :  { %8228 = vmatmul.mubr.bf16.gmra.mxu1 %v7264_v22  ;;  %8315 = vmatprep.subr.bf16.mxu0 %v8610_v20  ;;  %v4738_v58 = vrot.slane %v4737_v63, 4  ;;  %v5624_v5 = vrot.slane %v5622_v7, 4  ;;  %v5627_v11 = vrot.slane %v5625_v14, 5  ;;  %v4756_v55 = vrot.slane %v4754_v6, 5  ;;  %v4586_v63 = vld [vmem:[#allocation2 + $0x88] sm:$0xf] }
 0x1f8   :  { %8231 = vmatprep.mubr.bf16.mxu1 %v7265_v33  ;;  %8276 = vmatpush3.bf16.msra.mxu1 %v8607_v43  ;;  %v4751_v15 = vor.u32 %v4750_v29, %v4747_v57  ;;  %v5638_v50 = vrot.slane %v5636_v4, 4  ;;  %v5645_v25 = vshll.u32 %v10617_v45, 16  ;;  %v5633_v0 = vrot.slane %v5631_v62, 5  ;;  %v8614_v57 = vld [vmem:[%s11172_s3 + $0x188] sm:$0xff]   ;;  %v4588_v29 = vld [vmem:[#allocation2 + $0x90] sm:$0xf] }
 0x1f9   :  { %8277 = vmatprep.subr.bf16.mxu1 %v8609_v54  ;;  %8268 = vmatmul.mubr.bf16.gmra.mxu0 %v7316_v10  ;;  %v5628_v49 = vor.u32 %v5627_v11, %v5624_v5  ;;  %v5641_v42 = vrot.slane %v5639_v28, 5  ;;  %v4759_v19 = vshrl.u32 %v4582_v39, 16  ;;  %v4743_v48 = vsel %vm8855_vm2, %v4738_v58, %v4742_v21  ;;  %v10649_v10 = vld [vmem:[#allocation2 + $0x24] sm:$0x1] }
 0x1fa   :  { %v4752_v26 = vrot.slane %v4751_v15, 4  ;;  %8316 = vmatpush3.bf16.msra.mxu0 %v8610_v20  ;;  %v5647_v37 = vrot.slane %v5645_v25, 5  ;;  %v4762_v13 = vshll.u32 %v4582_v39, 16  ;;  %v4773_v60 = vshrl.u32 %v4584_v38, 16 }
 0x1fb   :  { %v5629_v51 = vrot.slane %v5628_v49, 4  ;;  %v5642_v30 = vor.u32 %v5641_v42, %v5638_v50  ;;  %v4761_v3 = vrot.slane %v4759_v19, 4  ;;  %8317 = vmatprep.subr.bf16.mxu0 %v8612_v32  ;;  %v4768_v47 = vshll.u32 %v10530_v41, 16 }
 0x1fc   :  { %8278 = vmatpush3.bf16.msra.mxu1 %v8609_v54  ;;  %v4757_v43 = vsel %vm8855_vm2, %v4752_v26, %v4756_v55  ;;  %v4764_v1 = vrot.slane %v4762_v13, 5  ;;  %v4776_v36 = vshll.u32 %v4584_v38, 16  ;;  %v4775_v56 = vrot.slane %v4773_v60, 4  ;;  %v10657_v54 = vld [vmem:[#allocation2 + $0x2c] sm:$0x1] }
 0x1fd   :  { %v7266_v9 = vcombine.low %v4743_v48, %v4757_v43  ;;  %8279 = vmatprep.subr.bf16.mxu1 %v8611_v16  ;;  %v5634_v34 = vsel %vm8855_vm2, %v5629_v51, %v5633_v0  ;;  %v5643_v23 = vrot.slane %v5642_v30, 4  ;;  %v4782_v53 = vshll.u32 %v10539_v46, 16  ;;  %v8616_v48 = vld [vmem:[%s11172_s3 + $0x180] sm:$0xff]   ;;  %v5599_v51 = vld [vmem:[#allocation2 + $0x38] sm:$0xf] }
 0x1fe   :  { %v4765_v35 = vor.u32 %v4764_v1, %v4761_v3  ;;  %v4778_v22 = vrot.slane %v4776_v36, 5  ;;  %8318 = vmatpush3.bf16.msra.mxu0 %v8612_v32  ;;  %v5650_v41 = vshrl.u32 %v5593_v12, 16  ;;  %v5653_v27 = vshll.u32 %v5593_v12, 16  ;;  %v10666_v12 = vld [vmem:[#allocation2 + $0x34] sm:$0x1] }
 0x1ff   :  { %8232 = vmatmul.mubr.bf16.gmra.mxu1 %v7266_v9  ;;  %v5648_v20 = vsel %vm8855_vm2, %v5643_v23, %v5647_v37  ;;  %v5664_v61 = vshrl.u32 %v5595_v59, 16  ;;  %8367 = vmatprep.subr.bf16.mxu0 %v10638_v24  ;;  %v4770_v39 = vrot.slane %v4768_v47, 5  ;;  %v4784_v21 = vrot.slane %v4782_v53, 5  ;;  %v10672_v36 = vld [vmem:[#allocation2 + $0x3c] sm:$0x1] }
 0x200   :  { %v7373_v2 = vcombine.low %v5634_v34, %v5648_v20  ;;  %v4766_v6 = vrot.slane %v4765_v35, 4  ;;  %v4779_v46 = vor.u32 %v4778_v22, %v4775_v56  ;;  %8280 = vmatpush3.bf16.msra.mxu1 %v8611_v16  ;;  %v5652_v7 = vrot.slane %v5650_v41, 4  ;;  %v5597_v16 = vld [vmem:[#allocation2 + $0x30] sm:$0xf]  ;;  %v2930_v35 = vld [vmem:[#allocation2 + $0x48] sm:$0x1] }
 0x201   :  { %8281 = vmatprep.subr.bf16.mxu1 %v8613_v31  ;;  %v5655_v14 = vrot.slane %v5653_v27, 5  ;;  %v5659_v33 = vshll.u32 %v10649_v10, 16  ;;  %v5666_v38 = vrot.slane %v5664_v61, 4  ;;  %v5667_v32 = vshll.u32 %v5595_v59, 16  ;;  %v2992_v27 = vld [vmem:[#allocation2 + $0x4c] sm:$0x1] }
 0x202   :  { %8319 = vmatprep.mubr.bf16.mxu0 %v7373_v2  ;;  %v4771_v62 = vsel %vm8855_vm2, %v4766_v6, %v4770_v39  ;;  %v4780_v4 = vrot.slane %v4779_v46, 4  ;;  %v5673_v5 = vshll.u32 %v10657_v54, 16  ;;  %v4787_v11 = vshrl.u32 %v4586_v63, 16  ;;  %v5601_v61 = vld [vmem:[#allocation2 + $0x40] sm:$0xf]  ;;  %v10687_v46 = vld [vmem:[%s11174_s5 + $0x30] sm:$0xff]  }
 0x203   :  { %v5656_v58 = vor.u32 %v5655_v14, %v5652_v7  ;;  %v4790_v28 = vshll.u32 %v4586_v63, 16  ;;  %v5669_v55 = vrot.slane %v5667_v32, 5  ;;  %v4796_v50 = vshll.u32 %v10575_v44, 16  ;;  %v5605_v32 = vld [vmem:[#allocation2 + $0x60] sm:$0xf] }
 0x204   :  { %v4785_v15 = vsel %vm8855_vm2, %v4780_v4, %v4784_v21  ;;  %8282 = vmatpush3.bf16.msra.mxu1 %v8613_v31  ;;  %v4801_v25 = vshrl.u32 %v4588_v29, 16  ;;  %v4789_v42 = vrot.slane %v4787_v11, 4  ;;  %v5661_v26 = vrot.slane %v5659_v33, 5 }
 0x205   :  { %v7267_v49 = vcombine.low %v4771_v62, %v4785_v15  ;;  %v5657_v0 = vrot.slane %v5656_v58, 4  ;;  %v4792_v19 = vrot.slane %v4790_v28, 5  ;;  %8283 = vmatprep.subr.bf16.mxu1 %v8614_v57  ;;  %v5670_v37 = vor.u32 %v5669_v55, %v5666_v38  ;;  %v5607_v15 = vld [vmem:[#allocation2 + $0x68] sm:$0xf] }
 0x206   :  { %v4803_v13 = vrot.slane %v4801_v25, 4  ;;  %v4804_v59 = vshll.u32 %v4588_v29, 16  ;;  %v5675_v44 = vrot.slane %v5673_v5, 5  ;;  %v4810_v3 = vshll.u32 %v10578_v18, 16  ;;  %v10680_v18 = vld [vmem:[%s11172_s3 + $0x238] sm:$0xff]  }
 0x207   :  { %8235 = vmatprep.mubr.bf16.mxu1 %v7267_v49  ;;  %v4793_v30 = vor.u32 %v4792_v19, %v4789_v42  ;;  %v5678_v60 = vshrl.u32 %v5597_v16, 16  ;;  %v5671_v43 = vrot.slane %v5670_v37, 4  ;;  %v4798_v1 = vrot.slane %v4796_v50, 5  ;;  %v8615_v25 = vld [vmem:[#allocation2 + $0x10] ss:$8 sps:$4 sm:$0xff]  }
 0x208   :  { %v4806_v47 = vrot.slane %v4804_v59, 5  ;;  %v5681_v31 = vshll.u32 %v5597_v16, 16  ;;  %8284 = vmatpush3.bf16.msra.mxu1 %v8614_v57  ;;  %v5662_v9 = vsel %vm8855_vm2, %v5657_v0, %v5661_v26  ;;  %v5687_v23 = vshll.u32 %v10666_v12, 16  ;;  %v10704_v0 = vld [vmem:[%s11174_s5 + $0x28] sm:$0xff]   ;;  %v10706_v42 = vld [vmem:[#allocation2 + $0x44] sm:$0x1] }
 0x209   :  { %v5680_v34 = vrot.slane %v5678_v60, 4  ;;  %v5692_v56 = vshrl.u32 %v5599_v51, 16  ;;  %8285 = vmatprep.subr.bf16.mxu1 %v8616_v48  ;;  %v5676_v22 = vsel %vm8855_vm2, %v5671_v43, %v5675_v44  ;;  %v4794_v53 = vrot.slane %v4793_v30, 4  ;;  %v10708_v19 = vld [vmem:[#allocation2 + $0x64] sm:$0x1] }
 0x20a   :  { %v4807_v41 = vor.u32 %v4806_v47, %v4803_v13  ;;  %v5683_v20 = vrot.slane %v5681_v31, 5  ;;  %v7374_v57 = vcombine.low %v5662_v9, %v5676_v22  ;;  %v4812_v2 = vrot.slane %v4810_v3, 5 }
 0x20b   :  { %v5694_v6 = vrot.slane %v5692_v56, 4  ;;  %v5695_v39 = vshll.u32 %v5599_v51, 16  ;;  %v5701_v7 = vshll.u32 %v10672_v36, 16  ;;  %v2931_v14 = vsel %vm9502_vm5, 0, %v2930_v35  ;;  %v10712_v51 = vld [vmem:[#allocation2 + $0x6c] sm:$0x1] }
 0x20c   :  { %v4808_v63 = vrot.slane %v4807_v41, 4  ;;  %v5684_v21 = vor.u32 %v5683_v20, %v5680_v34  ;;  %8286 = vmatpush3.bf16.msra.mxu1 %v8616_v48  ;;  %8320 = vmatmul.mubr.bf16.vlgmr.msra.gmra.mxu0 %v7374_v57  ;;  %2932 = vst [vmem:[#allocation2 + $0x48] sm:$0x1] %v2931_v14  ;;  %v2993_v62 = vsel %vm9509_vm7, 0, %v2992_v27  ;;  %v5706_v4 = vshrl.u32 %v5601_v61, 16  ;;  %v10722_v34 = vld [vmem:[%s11174_s5 + $0x20] sm:$0xff]  }
 0x20d   :  { %v5697_v33 = vrot.slane %v5695_v39, 5  ;;  %v5709_v38 = vshll.u32 %v5601_v61, 16  ;;  %8335 = vmatprep.subr.bf16.mxu1 %v10680_v18  ;;  %v4799_v58 = vsel %vm8855_vm2, %v4794_v53, %v4798_v1  ;;  %v5689_v28 = vrot.slane %v5687_v23, 5  ;;  %2994 = vst [vmem:[#allocation2 + $0x4c] sm:$0x1] %v2993_v62  ;;  %8368 = vmatpush3.bf16.msra.mxu0 %v10638_v24  ;;  %v10738_v62 = vld [vmem:[%s11174_s5 + $0x18] sm:$0xff]  }
 0x20e   :  { %v4813_v5 = vsel %vm8855_vm2, %v4808_v63, %v4812_v2  ;;  %v5685_v11 = vrot.slane %v5684_v21, 4  ;;  %v5708_v16 = vrot.slane %v5706_v4, 4  ;;  %8369 = vmatprep.subr.bf16.mxu0 %v10687_v46  ;;  %v5734_v48 = vshrl.u32 %v5605_v32, 16  ;;  %v5609_v1 = vld [vmem:[#allocation2 + $0x70] sm:$0xf] }
 0x20f   :  { %v7268_v55 = vcombine.low %v4799_v58, %v4813_v5  ;;  %v5698_v50 = vor.u32 %v5697_v33, %v5694_v6  ;;  %v5711_v49 = vrot.slane %v5709_v38, 5  ;;  %v5737_v26 = vshll.u32 %v5605_v32, 16  ;;  %v8617_v61 = vld [vmem:[#allocation2 + $0x20] ss:$8 sps:$4 sm:$0xff]   ;;  %v8621_v2 = vld [vmem:[%s11172_s3 + $0x230] sm:$0xff]  }
 0x210   :  { %v5690_v37 = vsel %vm8855_vm2, %v5685_v11, %v5689_v28  ;;  %v5703_v59 = vrot.slane %v5701_v7, 5  ;;  %v5748_v44 = vshrl.u32 %v5607_v15, 16  ;;  %v5736_v3 = vrot.slane %v5734_v48, 4  ;;  %v10731_v6 = vld [vmem:[#allocation2 + $0x74] sm:$0x1] }
 0x211   :  { %8236 = vmatmul.mubr.bf16.gmra.mxu1 %v7268_v55  ;;  %v5699_v13 = vrot.slane %v5698_v50, 4  ;;  %v5712_v30 = vor.u32 %v5711_v49, %v5708_v16  ;;  %v5739_v60 = vrot.slane %v5737_v26, 5  ;;  %v5751_v43 = vshll.u32 %v5607_v15, 16  ;;  %8370 = vmatpush3.bf16.msra.mxu0 %v10687_v46  ;;  %v5611_v14 = vld [vmem:[#allocation2 + $0x78] sm:$0xf] }
 0x212   :  { %8287 = vmatprep.mubr.bf16.mxu1 %v8615_v25  ;;  %v5715_v31 = vshll.u32 %v10706_v42, 16  ;;  %v5750_v9 = vrot.slane %v5748_v44, 4  ;;  %8371 = vmatprep.subr.bf16.mxu0 %v10704_v0  ;;  %v5743_v22 = vshll.u32 %v10708_v19, 16  ;;  %v5757_v57 = vshll.u32 %v10712_v51, 16  ;;  %v5613_v5 = vld [vmem:[#allocation2 + $0x80] sm:$0xf] }
 0x213   :  { %v5704_v47 = vsel %vm8855_vm2, %v5699_v13, %v5703_v59  ;;  %v5603_v56 = vld [vmem:[#allocation2 + $0x48] sm:$0xf]  ;;  %v5740_v35 = vor.u32 %v5739_v60, %v5736_v3  ;;  %v5753_v53 = vrot.slane %v5751_v43, 5  ;;  %v5762_v39 = vshrl.u32 %v5609_v1, 16  ;;  %v8619_v15 = vld [vmem:[#allocation2 + $0x30] ss:$8 sps:$4 sm:$0xff]  }
 0x214   :  { %v7375_v23 = vcombine.low %v5690_v37, %v5704_v47  ;;  %v10725_v41 = vld [vmem:[#allocation2 + $0x4c] sm:$0x1]  ;;  %v5720_v20 = vshrl.u32 %v5603_v56, 16  ;;  %v5723_v27 = vshll.u32 %v5603_v56, 16  ;;  %v5713_v63 = vrot.slane %v5712_v30, 4 }
 0x215   :  { %v5729_v21 = vshll.u32 %v10725_v41, 16  ;;  %v5754_v7 = vor.u32 %v5753_v53, %v5750_v9  ;;  %v5765_v33 = vshll.u32 %v5609_v1, 16  ;;  %8372 = vmatpush3.bf16.msra.mxu0 %v10704_v0  ;;  %v5717_v4 = vrot.slane %v5715_v31, 5  ;;  %v10741_v49 = vld [vmem:[#allocation2 + $0x7c] sm:$0x1]  ;;  %v8624_v31 = vld [vmem:[%s11172_s3 + $0x228] sm:$0xff]  }
 0x216   :  { %8323 = vmatprep.mubr.bf16.mxu0 %v7375_v23  ;;  %v5722_v38 = vrot.slane %v5720_v20, 4  ;;  %v5725_v32 = vrot.slane %v5723_v27, 5  ;;  %v5741_v58 = vrot.slane %v5740_v35, 4  ;;  %8373 = vmatprep.subr.bf16.mxu0 %v10722_v34  ;;  %v5745_v11 = vrot.slane %v5743_v22, 5  ;;  %v5615_v44 = vld [vmem:[#allocation2 + $0x88] sm:$0xf] }
 0x217   :  { %v5755_v28 = vrot.slane %v5754_v7, 4  ;;  %v5764_v55 = vrot.slane %v5762_v39, 4  ;;  %v5767_v50 = vrot.slane %v5765_v33, 5  ;;  %v5731_v16 = vrot.slane %v5729_v21, 5  ;;  %v10749_v47 = vld [vmem:[#allocation2 + $0x84] sm:$0x1] }
 0x218   :  { %v5726_v25 = vor.u32 %v5725_v32, %v5722_v38  ;;  %v5776_v48 = vshrl.u32 %v5611_v14, 16  ;;  %v5779_v26 = vshll.u32 %v5611_v14, 16  ;;  %v5718_v37 = vsel %vm8855_vm2, %v5713_v63, %v5717_v4  ;;  %v10757_v23 = vld [vmem:[#allocation2 + $0x8c] sm:$0x1]  ;;  %v10763_v22 = vld [vmem:[%s11174_s5 + $0x10] sm:$0xff]  }
 0x219   :  { %8288 = vmatmul.mubr.bf16.vlgmr.msra.gmra.mxu1 %v8617_v61  ;;  %v5759_v13 = vrot.slane %v5757_v57, 5  ;;  %v5771_v59 = vshll.u32 %v10731_v6, 16  ;;  %v5790_v30 = vshrl.u32 %v5613_v5, 16  ;;  %v5746_v60 = vsel %vm8855_vm2, %v5741_v58, %v5745_v11  ;;  %8374 = vmatpush3.bf16.msra.mxu0 %v10722_v34  ;;  %v2960_v57 = vld [vmem:[#allocation2 + $0x98] sm:$0x1]  ;;  %v8627_v11 = vld [vmem:[%s11172_s3 + $0x220] sm:$0xff]  }
 0x21a   :  { %8291 = vmatprep.mubr.bf16.mxu1 %v8619_v15  ;;  %8336 = vmatpush3.bf16.msra.mxu1 %v10680_v18  ;;  %v5727_v3 = vrot.slane %v5726_v25, 4  ;;  %v5778_v43 = vrot.slane %v5776_v48, 4  ;;  %v5781_v1 = vrot.slane %v5779_v26, 5  ;;  %v5768_v9 = vor.u32 %v5767_v50, %v5764_v55  ;;  %v3022_v39 = vld [vmem:[#allocation2 + $0x9c] sm:$0x1]  ;;  %v10782_v25 = vld [vmem:[%s11174_s5 + $0x8] sm:$0xff]  }
 0x21b   :  { %8337 = vmatprep.subr.bf16.mxu1 %v8621_v2  ;;  %v5760_v18 = vsel %vm8855_vm2, %v5755_v28, %v5759_v13  ;;  %v5792_v56 = vrot.slane %v5790_v30, 4  ;;  %v5793_v35 = vshll.u32 %v5613_v5, 16  ;;  %8375 = vmatprep.subr.bf16.mxu0 %v10738_v62  ;;  %v5785_v27 = vshll.u32 %v10741_v49, 16  ;;  %v5617_v33 = vld [vmem:[#allocation2 + $0x90] sm:$0xf] }
 0x21c   :  { %v5732_v53 = vsel %vm8855_vm2, %v5727_v3, %v5731_v16  ;;  %v5782_v20 = vor.u32 %v5781_v1, %v5778_v43  ;;  %v5804_v61 = vshrl.u32 %v5615_v44, 16  ;;  %v5799_v7 = vshll.u32 %v10749_v47, 16  ;;  %v8623_v32 = vld [vmem:[#allocation2 + $0x40] ss:$8 sps:$4 sm:$0xff]   ;;  %v8630_v43 = vld [vmem:[%s11172_s3 + $0x218] sm:$0xff]  }
 0x21d   :  { %v7376_v63 = vcombine.low %v5718_v37, %v5732_v53  ;;  %v5795_v21 = vrot.slane %v5793_v35, 5  ;;  %v5807_v14 = vshll.u32 %v5615_v44, 16  ;;  %v7377_v4 = vcombine.low %v5746_v60, %v5760_v18  ;;  %8376 = vmatpush3.bf16.msra.mxu0 %v10738_v62  ;;  %v8625_v15 = vld [vmem:[#allocation2 + $0x60] ss:$8 sps:$4 sm:$0xff]  }
 0x21e   :  { %8338 = vmatpush3.bf16.msra.mxu1 %v8621_v2  ;;  %v5783_v38 = vrot.slane %v5782_v20, 4  ;;  %v5806_v58 = vrot.slane %v5804_v61, 4  ;;  %v5813_v5 = vshll.u32 %v10757_v23, 16  ;;  %v2961_v55 = vsel %vm9502_vm5, 0, %v2960_v57  ;;  %8377 = vmatprep.subr.bf16.mxu0 %v10763_v22  ;;  %v10793_v1 = vld [vmem:[%s11174_s5] sm:$0xff]   ;;  %v8633_v61 = vld [vmem:[%s11172_s3 + $0x210] sm:$0xff]  }
 0x21f   :  { %8339 = vmatprep.subr.bf16.mxu1 %v8624_v31  ;;  %8324 = vmatmul.mubr.bf16.gmra.mxu0 %v7376_v63  ;;  %v5796_v2 = vor.u32 %v5795_v21, %v5792_v56  ;;  %v5809_v28 = vrot.slane %v5807_v14, 5  ;;  %v3023_v50 = vsel %vm9509_vm7, 0, %v3022_v39  ;;  %v5769_v16 = vrot.slane %v5768_v9, 4  ;;  %2962 = vst [vmem:[#allocation2 + $0x98] sm:$0x1] %v2961_v55  ;;  %v8636_v55 = vld [vmem:[%s11172_s3 + $0x208] sm:$0xff]  }
 0x220   :  { %8327 = vmatprep.mubr.bf16.mxu0 %v7377_v4  ;;  %v5787_v48 = vrot.slane %v5785_v27, 5  ;;  %3024 = vst [vmem:[#allocation2 + $0x9c] sm:$0x1] %v3023_v50  ;;  %v5818_v26 = vshrl.u32 %v5617_v33, 16  ;;  %v5821_v37 = vshll.u32 %v5617_v33, 16  ;;  %v5801_v13 = vrot.slane %v5799_v7, 5 }
 0x221   :  { %8292 = vmatmul.mubr.bf16.gmra.mxu1 %v8623_v32  ;;  %v5797_v17 = vrot.slane %v5796_v2, 4  ;;  %v5810_v44 = vor.u32 %v5809_v28, %v5806_v58  ;;  %v5773_v29 = vrot.slane %v5771_v59, 5  ;;  %8378 = vmatpush3.bf16.msra.mxu0 %v10763_v22  ;;  %v5815_v18 = vrot.slane %v5813_v5, 5  ;;  %v10797_v9 = vld [vmem:[#allocation2 + $0x94] sm:$0x1] }
 0x222   :  { %8295 = vmatprep.mubr.bf16.mxu1 %v8625_v15  ;;  %8340 = vmatpush3.bf16.msra.mxu1 %v8624_v31  ;;  %v5788_v30 = vsel %vm8855_vm2, %v5783_v38, %v5787_v48  ;;  %v5820_v3 = vrot.slane %v5818_v26, 4  ;;  %v5823_v60 = vrot.slane %v5821_v37, 5  ;;  %v6055_v56 = vld [vmem:[#allocation2 + $0x10] sm:$0xe]  ;;  %v5827_v63 = vshll.u32 %v10797_v9, 16 }
 0x223   :  { %8341 = vmatprep.subr.bf16.mxu1 %v8627_v11  ;;  %v5802_v59 = vsel %vm8855_vm2, %v5797_v17, %v5801_v13  ;;  %v5811_v31 = vrot.slane %v5810_v44, 4  ;;  %8379 = vmatprep.subr.bf16.mxu0 %v10782_v25  ;;  %v5774_v35 = vsel %vm8855_vm2, %v5769_v16, %v5773_v29  ;;  %v8629_v27 = vld [vmem:[#allocation2 + $0x70] ss:$8 sps:$4 sm:$0xff]   ;;  %v8631_v21 = vld [vmem:[#allocation2 + $0x80] ss:$8 sps:$4 sm:$0xff]   ;;  %v7389_v14 = vrot.slane %v6055_v56, 9 }
 0x224   :  { %v7378_v53 = vcombine.low %v5774_v35, %v5788_v30  ;;  %v5824_v39 = vor.u32 %v5823_v60, %v5820_v3  ;;  %v6056_v7 = vld [vmem:[#allocation2 + $0x18] sm:$0xe]  ;;  %v6105_v5 = vrot.slane %v10608_v52, 5  ;;  %v6109_v50 = vrot.slane %v10617_v45, 5  ;;  %v6058_v37 = vld [vmem:[#allocation2 + $0x28] sm:$0xe] }
 0x225   :  { %v5816_v20 = vsel %vm8855_vm2, %v5811_v31, %v5815_v18  ;;  %8380 = vmatpush3.bf16.msra.mxu0 %v10782_v25  ;;  %v5829_v16 = vrot.slane %v5827_v63, 5  ;;  %v6059_v17 = vld [vmem:[#allocation2 + $0x30] sm:$0xe]  ;;  %v8638_v30 = vld [vmem:[%s11172_s3 + $0x200] sm:$0xff]   ;;  %v6060_v31 = vld [vmem:[#allocation2 + $0x38] sm:$0xe] }
 0x226   :  { %8342 = vmatpush3.bf16.msra.mxu1 %v8627_v11  ;;  %v7379_v57 = vcombine.low %v5802_v59, %v5816_v20  ;;  %v5619_v33 = vld [vmem:[#allocation2 + $0x98] sm:$0xf]  ;;  %8381 = vmatprep.subr.bf16.mxu0 %v10793_v1  ;;  %v7390_v11 = vrot.slane %v6056_v7, 9  ;;  %v5825_v2 = vrot.slane %v5824_v39, 4  ;;  %v6106_v52 = vsel %vm9869_vm10, %v7389_v14, %v6105_v5  ;;  %v6057_v3 = vld [vmem:[#allocation2 + $0x20] sm:$0xe] }
 0x227   :  { %8343 = vmatprep.subr.bf16.mxu1 %v8630_v43  ;;  %8328 = vmatmul.mubr.bf16.gmra.mxu0 %v7378_v53  ;;  %v10809_v4 = vld [vmem:[#allocation2 + $0x9c] sm:$0x1]  ;;  %v5832_v38 = vshrl.u32 %v5619_v33, 16  ;;  %v5835_v32 = vshll.u32 %v5619_v33, 16  ;;  %v8635_v29 = vld [vmem:[#allocation2 + $0x90] ss:$8 sps:$4 sm:$0xff]  }
 0x228   :  { %8331 = vmatprep.mubr.bf16.mxu0 %v7379_v57  ;;  %v5841_v58 = vshll.u32 %v10809_v4, 16  ;;  %v5830_v13 = vsel %vm8855_vm2, %v5825_v2, %v5829_v16  ;;  %v6110_v45 = vsel %vm9869_vm10, %v7390_v11, %v6109_v50  ;;  %v6117_v59 = vrot.slane %v10657_v54, 5  ;;  %v8640_v53 = vld [vmem:[%s11171_s0 + $0xd8] ss:$8 sps:$4 sm:$0xff]   ;;  %v6062_v63 = vld [vmem:[#allocation2 + $0x48] sm:$0xe] }
 0x229   :  { %8296 = vmatmul.mubr.bf16.gmra.mxu1 %v8629_v27  ;;  %v5834_v28 = vrot.slane %v5832_v38, 4  ;;  %v5837_v15 = vrot.slane %v5835_v32, 5  ;;  %8382 = vmatpush3.bf16.msra.mxu0 %v10793_v1  ;;  %v7421_v60 = vcombine.low %v6106_v52, %v6110_v45  ;;  %v7393_v56 = vrot.slane %v6059_v17, 9  ;;  %v6061_v39 = vld [vmem:[#allocation2 + $0x40] sm:$0xe] }
 0x22a   :  { %8299 = vmatprep.mubr.bf16.mxu1 %v8631_v21  ;;  %8344 = vmatpush3.bf16.msra.mxu1 %v8630_v43  ;;  %v5843_v26 = vrot.slane %v5841_v58, 5  ;;  %v7392_v43 = vrot.slane %v6058_v37, 9  ;;  %v6121_v35 = vrot.slane %v10666_v12, 5  ;;  %v7391_v27 = vrot.slane %v6057_v3, 9  ;;  %v6063_v7 = vld [vmem:[#allocation2 + $0x60] sm:$0xe] }
 0x22b   :  { %8345 = vmatprep.subr.bf16.mxu1 %v8633_v61  ;;  %v5838_v48 = vor.u32 %v5837_v15, %v5834_v28  ;;  %v7394_v54 = vrot.slane %v6060_v31, 9  ;;  %v6125_v57 = vrot.slane %v10672_v36, 5  ;;  %v8641_v14 = vld [vmem:[%s11171_s0 + $0xe8] ss:$8 sps:$4 sm:$0xff]   ;;  %v7395_v33 = vrot.slane %v6061_v39, 9 }
 0x22c   :  { %v6118_v8 = vsel %vm9869_vm10, %v7392_v43, %v6117_v59  ;;  %v6122_v12 = vsel %vm9869_vm10, %v7393_v56, %v6121_v35  ;;  %v6129_v32 = vrot.slane %v10706_v42, 5  ;;  %v7396_v58 = vrot.slane %v6062_v63, 9  ;;  %v6064_v11 = vld [vmem:[#allocation2 + $0x68] sm:$0xe]  ;;  %v8642_v15 = vld [vmem:[%s11171_s0 + $0xf8] ss:$8 sps:$4 sm:$0xff]  }
 0x22d   :  { %v5839_v44 = vrot.slane %v5838_v48, 4  ;;  %v6126_v36 = vsel %vm9869_vm10, %v7394_v54, %v6125_v57  ;;  %v6133_v5 = vrot.slane %v10725_v41, 5  ;;  %v7397_v2 = vrot.slane %v6063_v7, 9  ;;  %v6066_v16 = vld [vmem:[#allocation2 + $0x78] sm:$0xe] }
 0x22e   :  { %8346 = vmatpush3.bf16.msra.mxu1 %v8633_v61  ;;  %v6113_v61 = vrot.slane %v10649_v10, 5  ;;  %v7423_v38 = vcombine.low %v6122_v12, %v6126_v36  ;;  %v6137_v28 = vrot.slane %v10708_v19, 5  ;;  %v6141_v42 = vrot.slane %v10712_v51, 5  ;;  %v8643_v37 = vld [vmem:[%s11171_s0 + $0x108] ss:$8 sps:$4 sm:$0xff]  }
 0x22f   :  { %8347 = vmatprep.subr.bf16.mxu1 %v8636_v55  ;;  %v5844_v18 = vsel %vm8855_vm2, %v5839_v44, %v5843_v26  ;;  %v6130_v41 = vsel %vm9869_vm10, %v7395_v33, %v6129_v32  ;;  %v6134_v50 = vsel %vm9869_vm10, %v7396_v58, %v6133_v5  ;;  %v6065_v26 = vld [vmem:[#allocation2 + $0x70] sm:$0xe]  ;;  %v7400_v17 = vrot.slane %v6066_v16, 9  ;;  %v6068_v44 = vld [vmem:[#allocation2 + $0x88] sm:$0xe] }
 0x230   :  { %v7380_v20 = vcombine.low %v5830_v13, %v5844_v18  ;;  %v6114_v21 = vsel %vm9869_vm10, %v7391_v27, %v6113_v61  ;;  %v6138_v19 = vsel %vm9869_vm10, %v7397_v2, %v6137_v28  ;;  %v7424_v48 = vcombine.low %v6130_v41, %v6134_v50  ;;  %v6069_v43 = vld [vmem:[#allocation2 + $0x90] sm:$0xe] }
 0x231   :  { %8300 = vmatmul.mubr.bf16.gmra.mxu1 %v8635_v29  ;;  %v7422_v10 = vcombine.low %v6114_v21, %v6118_v8  ;;  %v6149_v13 = vrot.slane %v10741_v49, 5  ;;  %v7399_v45 = vrot.slane %v6065_v26, 9  ;;  %v7402_v3 = vrot.slane %v6068_v44, 9 }
 0x232   :  { %8348 = vmatpush3.bf16.msra.mxu1 %v8636_v55  ;;  %8351 = vmatprep.mubr.bf16.mxu1 %v7421_v60  ;;  %v7398_v55 = vrot.slane %v6064_v11, 9  ;;  %v6157_v60 = vrot.slane %v10757_v23, 5  ;;  %v7403_v31 = vrot.slane %v6069_v43, 9  ;;  %v6161_v56 = vrot.slane %v10797_v9, 5  ;;  %v8644_v9 = vld [vmem:[%s11171_s0 + $0x1f8] ss:$8 sps:$4 sm:$0xff]  }
 0x233   :  { %8349 = vmatprep.subr.bf16.mxu1 %v8638_v30  ;;  %8332 = vmatmul.mubr.bf16.gmra.mxu0 %v7380_v20  ;;  %v6150_v49 = vsel %vm9869_vm10, %v7400_v17, %v6149_v13 }
 0x234   :  { %8383 = vmatprep.mubr.bf16.mxu0 %v8640_v53  ;;  %v6142_v51 = vsel %vm9869_vm10, %v7398_v55, %v6141_v42  ;;  %v6158_v23 = vsel %vm9869_vm10, %v7402_v3, %v6157_v60  ;;  %v6165_v53 = vrot.slane %v10809_v4, 5 }
 0x235   :  { %v7425_v52 = vcombine.low %v6138_v19, %v6142_v51 }
 0x236   :  { %8350 = vmatpush3.bf16.msra.mxu1 %v8638_v30  ;;  %v6145_v30 = vrot.slane %v10731_v6, 5 }
 0x237   :  { %8399 = vmatprep.subr.bf16.mxu1 %v10638_v24 }
 0x239   :  { %8352 = vmatmul.mubr.bf16.vlgmr.msra.gmra.mxu1 %v7422_v10 }
 0x23a   :  { %8355 = vmatprep.mubr.bf16.mxu1 %v7423_v38  ;;  %8407 = vmatpush3.bf16.msra.mxu1 %v10638_v24  ;;  %v6067_v24 = vld [vmem:[#allocation2 + $0x80] sm:$0xe] }
 0x23b   :  { %8400 = vmatprep.subr.bf16.mxu1 %v10687_v46  ;;  %8384 = vmatmul.mubr.bf16.vlgmr.msra.gmra.mxu0 %v8641_v14  ;;  %v7401_v29 = vrot.slane %v6067_v24, 9 }
 0x23c   :  { %8387 = vmatprep.mubr.bf16.mxu0 %v8642_v15 }
 0x23e   :  { %8408 = vmatpush3.bf16.msra.mxu1 %v10687_v46  ;;  %v6153_v46 = vrot.slane %v10749_v47, 5  ;;  %v6070_v47 = vld [vmem:[#allocation2 + $0x98] sm:$0xe] }
 0x23f   :  { %8401 = vmatprep.subr.bf16.mxu1 %v10704_v0  ;;  %v7404_v35 = vrot.slane %v6070_v47, 9 }
 0x240   :  { %v6154_v59 = vsel %vm9869_vm10, %v7401_v29, %v6153_v46 }
 0x241   :  { %8356 = vmatmul.mubr.bf16.gmra.mxu1 %v7424_v48  ;;  %v7427_v18 = vcombine.low %v6154_v59, %v6158_v23  ;;  %v6166_v20 = vsel %vm9869_vm10, %v7404_v35, %v6165_v53 }
 0x242   :  { %8359 = vmatprep.mubr.bf16.mxu1 %v7425_v52  ;;  %8409 = vmatpush3.bf16.msra.mxu1 %v10704_v0  ;;  %v6146_v0 = vsel %vm9869_vm10, %v7399_v45, %v6145_v30 }
 0x243   :  { %8402 = vmatprep.subr.bf16.mxu1 %v10722_v34  ;;  %8388 = vmatmul.mubr.bf16.gmra.mxu0 %v8643_v37  ;;  %v7426_v6 = vcombine.low %v6146_v0, %v6150_v49 }
 0x246   :  { %8410 = vmatpush3.bf16.msra.mxu1 %v10722_v34  ;;  %v6162_v34 = vsel %vm9869_vm10, %v7403_v31, %v6161_v56 }
 0x247   :  { %8403 = vmatprep.subr.bf16.mxu1 %v10738_v62  ;;  %v7428_v27 = vcombine.low %v6162_v34, %v6166_v20 }
 0x249   :  { %8360 = vmatmul.mubr.bf16.gmra.mxu1 %v7426_v6 }
 0x24a   :  { %8363 = vmatprep.mubr.bf16.mxu1 %v7427_v18  ;;  %8411 = vmatpush3.bf16.msra.mxu1 %v10738_v62  ;;  %v8646_v62 = vld [vmem:[%s11171_s0 + $0x218] ss:$8 sps:$4 sm:$0xff]  }
 0x24b   :  { %8404 = vmatprep.subr.bf16.mxu1 %v10763_v22 }
 0x24e   :  { %8412 = vmatpush3.bf16.msra.mxu1 %v10763_v22  ;;  %v8647_v22 = vld [vmem:[%s11171_s0 + $0x228] ss:$8 sps:$4 sm:$0xff]  }
 0x24f   :  { %8405 = vmatprep.subr.bf16.mxu1 %v10782_v25 }
 0x251   :  { %8364 = vmatmul.mubr.bf16.gmra.mxu1 %v7428_v27 }
 0x252   :  { %8413 = vmatpush3.bf16.msra.mxu1 %v10782_v25  ;;  %8391 = vmatprep.mubr.bf16.mxu1 %v8644_v9 }
 0x253   :  { %8406 = vmatprep.subr.bf16.mxu1 %v10793_v1 }
 0x256   :  { %8414 = vmatpush3.bf16.msra.mxu1 %v10793_v1 }
 0x259   :  { %8392 = vmatmul.mubr.bf16.vlgmr.msra.gmra.mxu1 %v8645_v40 }
 0x25a   :  { %8395 = vmatprep.mubr.bf16.mxu1 %v8646_v62 }
 0x25f   :  { %v8129_v25 = vpop.f32.mrf.mxu0 }
 0x261   :  { %8396 = vmatmul.mubr.bf16.gmra.mxu1 %v8647_v22  ;;  %v3928_v4 = vpop.f32.mrf.mxu0 }
 0x263   :  { %v8130_v61 = vpop.f32.mrf.mxu0 }
 0x265   :  { %v3931_v54 = vpop.f32.mrf.mxu0 }
 0x267   :  { %v8133_v57 = vpop.f32.mrf.mxu0 }
 0x269   :  { %v3944_v8 = vpop.f32.mrf.mxu0 }
 0x26b   :  { %v8134_v39 = vpop.f32.mrf.mxu0 }
 0x26d   :  { %v3947_v1 = vpop.f32.mrf.mxu0 }
 0x26e   :  { %v8097_v12 = vpop.f32.mrf.mxu1 }
 0x26f   :  { %v3937_v63 = vadd.f32 %v8129_v25, %v8097_v12 }
 0x270   :  { %v3735_v21 = vpop.f32.mrf.mxu1  ;;  %v8137_v7 = vpop.f32.mrf.mxu0 }
 0x271   :  { %v3929_v10 = vadd.f32 %v3928_v4, %v3735_v21 }
 0x272   :  { %v8098_v36 = vpop.f32.mrf.mxu1  ;;  %v3960_v14 = vpop.f32.mrf.mxu0 }
 0x273   :  { %v3940_v33 = vadd.f32 %v8130_v61, %v8098_v36 }
 0x274   :  { %v3738_v38 = vpop.f32.mrf.mxu1  ;;  %v8138_v32 = vpop.f32.mrf.mxu0 }
 0x275   :  { %v3932_v58 = vadd.f32 %v3931_v54, %v3738_v38 }
 0x276   :  { %v3963_v5 = vpop.f32.mrf.mxu0 }
 0x277   :  { %v8101_v11 = vpop.f32.mrf.mxu1 }
 0x278   :  { %v3953_v2 = vadd.f32 %v8133_v57, %v8101_v11  ;;  %v8141_v28 = vpop.f32.mrf.mxu0 }
 0x279   :  { %v3751_v15 = vpop.f32.mrf.mxu1 }
 0x27a   :  { %v3945_v55 = vadd.f32 %v3944_v8, %v3751_v15  ;;  %v3976_v42 = vpop.f32.mrf.mxu0 }
 0x27b   :  { %v8102_v41 = vpop.f32.mrf.mxu1 }
 0x27c   :  { %v3956_v50 = vadd.f32 %v8134_v39, %v8102_v41  ;;  %v8142_v19 = vpop.f32.mrf.mxu0 }
 0x27d   :  { %v3754_v16 = vpop.f32.mrf.mxu1 }
 0x27e   :  { %v3948_v24 = vadd.f32 %v3947_v1, %v3754_v16  ;;  %v3979_v48 = vpop.f32.mrf.mxu0 }
 0x27f   :  { %v8105_v51 = vpop.f32.mrf.mxu1 }
 0x280   :  { %v3969_v26 = vadd.f32 %v8137_v7, %v8105_v51  ;;  %v8193_v52 = vpop.f32.mrf.mxu0 }
 0x281   :  { %v3767_v37 = vpop.f32.mrf.mxu1 }
 0x282   :  { %v3961_v17 = vadd.f32 %v3960_v14, %v3767_v37  ;;  %v4479_v13 = vpop.f32.mrf.mxu0 }
 0x283   :  { %v8106_v44 = vpop.f32.mrf.mxu1 }
 0x284   :  { %v3972_v29 = vadd.f32 %v8138_v32, %v8106_v44  ;;  %v8194_v46 = vpop.f32.mrf.mxu0 }
 0x285   :  { %v3770_v45 = vpop.f32.mrf.mxu1 }
 0x286   :  { %v3964_v30 = vadd.f32 %v3963_v5, %v3770_v45  ;;  %v4482_v3 = vpop.f32.mrf.mxu0 }
 0x287   :  { %v8109_v60 = vpop.f32.mrf.mxu1 }
 0x288   :  { %v3985_v49 = vadd.f32 %v8141_v28, %v8109_v60 }
 0x289   :  { %v3783_v43 = vpop.f32.mrf.mxu1  ;;  %v8197_v59 = vpop.f32.mrf.mxu0 }
 0x28a   :  { %v3977_v47 = vadd.f32 %v3976_v42, %v3783_v43 }
 0x28b   :  { %v8110_v0 = vpop.f32.mrf.mxu1  ;;  %v4495_v6 = vpop.f32.mrf.mxu0 }
 0x28c   :  { %v3988_v23 = vadd.f32 %v8142_v19, %v8110_v0 }
 0x28d   :  { %v3786_v31 = vpop.f32.mrf.mxu1  ;;  %v8198_v18 = vpop.f32.mrf.mxu0 }
 0x28e   :  { %v3980_v56 = vadd.f32 %v3979_v48, %v3786_v31 }
 0x28f   :  { %v8161_v35 = vpop.f32.mrf.mxu1  ;;  %v4498_v53 = vpop.f32.mrf.mxu0 }
 0x290   :  { %v4302_v34 = vadd.f32 %v8161_v35, %v3937_v63 }
 0x291   :  { %v4237_v20 = vpop.f32.mrf.mxu1  ;;  %v8201_v9 = vpop.f32.mrf.mxu0 }
 0x292   :  { %v4300_v27 = vadd.f32 %v4237_v20, %v3929_v10  ;;  %v10912_v40 = vadd.f32 %v8193_v52, %v4302_v34 }
 0x293   :  { %v8162_v62 = vpop.f32.mrf.mxu1  ;;  %v4511_v22 = vpop.f32.mrf.mxu0 }
 0x294   :  { %v4303_v25 = vadd.f32 %v8162_v62, %v3940_v33  ;;  %v10914_v4 = vadd.f32 %v4479_v13, %v4300_v27 }
 0x295   :  { %v4240_v61 = vpop.f32.mrf.mxu1  ;;  %v8202_v54 = vpop.f32.mrf.mxu0 }
 0x296   :  { %v4301_v57 = vadd.f32 %v4240_v61, %v3932_v58  ;;  %v10916_v8 = vadd.f32 %v8194_v46, %v4303_v25 }
 0x297   :  { %v8165_v39 = vpop.f32.mrf.mxu1  ;;  %v4514_v12 = vpop.f32.mrf.mxu0 }
 0x298   :  { %v4306_v1 = vadd.f32 %v8165_v39, %v3953_v2  ;;  %v10918_v21 = vadd.f32 %v4482_v3, %v4301_v57 }
 0x299   :  { %v4253_v63 = vpop.f32.mrf.mxu1  ;;  %v8205_v7 = vpop.f32.mrf.mxu0 }
 0x29a   :  { %v4304_v10 = vadd.f32 %v4253_v63, %v3945_v55  ;;  %v10920_v36 = vadd.f32 %v8197_v59, %v4306_v1 }
 0x29b   :  { %v8166_v14 = vpop.f32.mrf.mxu1  ;;  %v4527_v38 = vpop.f32.mrf.mxu0 }
 0x29c   :  { %v4307_v33 = vadd.f32 %v8166_v14, %v3956_v50  ;;  %v10922_v32 = vadd.f32 %v4495_v6, %v4304_v10 }
 0x29d   :  { %v4256_v5 = vpop.f32.mrf.mxu1  ;;  %v8206_v11 = vpop.f32.mrf.mxu0 }
 0x29e   :  { %v4305_v58 = vadd.f32 %v4256_v5, %v3948_v24  ;;  %v10924_v28 = vadd.f32 %v8198_v18, %v4307_v33 }
 0x29f   :  { %v8169_v15 = vpop.f32.mrf.mxu1  ;;  %v4530_v42 = vpop.f32.mrf.mxu0 }
 0x2a0   :  { %v4310_v2 = vadd.f32 %v8169_v15, %v3969_v26  ;;  %v10926_v41 = vadd.f32 %v4498_v53, %v4305_v58 }
 0x2a1   :  { %v4269_v19 = vpop.f32.mrf.mxu1  ;;  %v10928_v16 = vpop.f32.mrf.mxu0 }
 0x2a2   :  { %v4308_v55 = vadd.f32 %v4269_v19, %v3961_v17  ;;  %v4552_v48 = vadd.f32 %v8201_v9, %v4310_v2 }
 0x2a3   :  { %v8170_v51 = vpop.f32.mrf.mxu1  ;;  %v10930_v52 = vpop.f32.mrf.mxu0 }
 0x2a4   :  { %v4311_v50 = vadd.f32 %v8170_v51, %v3972_v29  ;;  %v4550_v37 = vadd.f32 %v4511_v22, %v4308_v55 }
 0x2a5   :  { %v4272_v13 = vpop.f32.mrf.mxu1  ;;  %v10932_v44 = vpop.f32.mrf.mxu0 }
 0x2a6   :  { %v4309_v24 = vadd.f32 %v4272_v13, %v3964_v30  ;;  %v4553_v46 = vadd.f32 %v8202_v54, %v4311_v50 }
 0x2a7   :  { %v8173_v45 = vpop.f32.mrf.mxu1  ;;  %v10934_v3 = vpop.f32.mrf.mxu0 }
 0x2a8   :  { %v4314_v26 = vadd.f32 %v8173_v45, %v3985_v49  ;;  %v4551_v60 = vadd.f32 %v4514_v12, %v4309_v24 }
 0x2a9   :  { %v4285_v43 = vpop.f32.mrf.mxu1  ;;  %v10936_v59 = vpop.f32.mrf.mxu0 }
 0x2aa   :  { %v4312_v17 = vadd.f32 %v4285_v43, %v3977_v47  ;;  %v4556_v0 = vadd.f32 %v8205_v7, %v4314_v26 }
 0x2ab   :  { %v8174_v6 = vpop.f32.mrf.mxu1  ;;  %v10938_v31 = vpop.f32.mrf.mxu0 }
 0x2ac   :  { %v4315_v29 = vadd.f32 %v8174_v6, %v3988_v23  ;;  %v4554_v18 = vadd.f32 %v4527_v38, %v4312_v17 }
 0x2ad   :  { %v4288_v35 = vpop.f32.mrf.mxu1  ;;  %v10940_v53 = vpop.f32.mrf.mxu0 }
 0x2ae   :  { %v4313_v30 = vadd.f32 %v4288_v35, %v3980_v56  ;;  %v4557_v34 = vadd.f32 %v8206_v11, %v4315_v29 }
 0x2af   :  { %v10942_v20 = vpop.f32.mrf.mxu1  ;;  %v10944_v9 = vpop.f32.mrf.mxu0 }
 0x2b0   :  { %v4555_v49 = vadd.f32 %v4530_v42, %v4313_v30 }
 0x2b1   :  { %v10946_v27 = vpop.f32.mrf.mxu1  ;;  %v8265_v62 = vpop.f32.mrf.mxu0 }
 0x2b3   :  { %v10948_v47 = vpop.f32.mrf.mxu1  ;;  %v5299_v22 = vpop.f32.mrf.mxu0 }
 0x2b5   :  { %v10950_v25 = vpop.f32.mrf.mxu1  ;;  %v8266_v61 = vpop.f32.mrf.mxu0 }
 0x2b7   :  { %v10952_v23 = vpop.f32.mrf.mxu1  ;;  %v5302_v57 = vpop.f32.mrf.mxu0 }
 0x2b9   :  { %v10954_v54 = vpop.f32.mrf.mxu1  ;;  %v8269_v1 = vpop.f32.mrf.mxu0 }
 0x2bb   :  { %v10956_v56 = vpop.f32.mrf.mxu1  ;;  %v5315_v33 = vpop.f32.mrf.mxu0 }
 0x2bd   :  { %v10958_v39 = vpop.f32.mrf.mxu1  ;;  %v8270_v2 = vpop.f32.mrf.mxu0 }
 0x2bf   :  { %v8233_v12 = vpop.f32.mrf.mxu1  ;;  %v5318_v55 = vpop.f32.mrf.mxu0 }
 0x2c0   :  { %v5018_v63 = vadd.f32 %v8233_v12, %v4552_v48 }
 0x2c1   :  { %v4977_v7 = vpop.f32.mrf.mxu1 }
 0x2c2   :  { %v5016_v10 = vadd.f32 %v4977_v7, %v4550_v37  ;;  %v10960_v14 = vadd.f32 %v8265_v62, %v5018_v63 }
 0x2c3   :  { %v8234_v38 = vpop.f32.mrf.mxu1 }
 0x2c4   :  { %v5019_v5 = vadd.f32 %v8234_v38, %v4553_v46  ;;  %v10962_v11 = vadd.f32 %v5299_v22, %v5016_v10 }
 0x2c5   :  { %v4980_v58 = vpop.f32.mrf.mxu1 }
 0x2c6   :  { %v5017_v15 = vadd.f32 %v4980_v58, %v4551_v60  ;;  %v10964_v42 = vadd.f32 %v8266_v61, %v5019_v5 }
 0x2c8   :  { %v10966_v19 = vadd.f32 %v5302_v57, %v5017_v15 }
 0x2cc   :  { %v8321_v51 = vpop.f32.mrf.mxu0 }
 0x2ce   :  { %v5976_v37 = vpop.f32.mrf.mxu0 }
 0x2d0   :  { %v10972_v60 = vpop.f32.mrf.mxu0 }
 0x2d1   :  { %v8237_v50 = vpop.f32.mrf.mxu1 }
 0x2d2   :  { %v5022_v48 = vadd.f32 %v8237_v50, %v4556_v0  ;;  %v10978_v0 = vpop.f32.mrf.mxu0  ;;  %v5008_v50 = vadd.f32 %v10946_v27, %v10914_v4  ;;  %v5014_v27 = vadd.f32 %v10952_v23, %v10920_v36 }
 0x2d3   :  { %v4993_v13 = vpop.f32.mrf.mxu1 }
 0x2d4   :  { %v5020_v24 = vadd.f32 %v4993_v13, %v4554_v18  ;;  %v10968_v45 = vadd.f32 %v8269_v1, %v5022_v48 }
 0x2d5   :  { %v8238_v26 = vpop.f32.mrf.mxu1 }
 0x2d6   :  { %v5023_v46 = vadd.f32 %v8238_v26, %v4557_v34  ;;  %v10970_v43 = vadd.f32 %v5315_v33, %v5020_v24  ;;  %v5011_v24 = vadd.f32 %v10948_v47, %v10916_v8 }
 0x2d7   :  { %v4996_v17 = vpop.f32.mrf.mxu1 }
 0x2d8   :  { %v5021_v6 = vadd.f32 %v4996_v17, %v4555_v49  ;;  %v10974_v29 = vadd.f32 %v8270_v2, %v5023_v46  ;;  %v5010_v2 = vadd.f32 %v10942_v20, %v10912_v40  ;;  %v5009_v17 = vadd.f32 %v10950_v25, %v10918_v21 }
 0x2d9   :  { %v8289_v35 = vpop.f32.mrf.mxu1  ;;  %v5330_v20 = vadd.f32 %v10930_v52, %v5008_v50  ;;  %v5333_v8 = vadd.f32 %v10932_v44, %v5011_v24  ;;  %v5015_v50 = vadd.f32 %v10956_v56, %v10924_v28  ;;  %v11043_v44 = vld [vmem:[%s11175_s4] ss:$0 sm:$0xff]  ;;  %v5013_v28 = vadd.f32 %v10958_v39, %v10926_v41 }
 0x2da   :  { %v10976_v30 = vadd.f32 %v5318_v55, %v5021_v6  ;;  %v5332_v26 = vadd.f32 %v10928_v16, %v5010_v2  ;;  %v5012_v16 = vadd.f32 %v10954_v54, %v10922_v32  ;;  %v5331_v52 = vadd.f32 %v10934_v3, %v5009_v17  ;;  %v11051_v3 = vld [vmem:[%s11176_s6] ss:$0 sm:$0xff] }
 0x2db   :  { %v5510_v62 = vpop.f32.mrf.mxu1  ;;  %v5336_v32 = vadd.f32 %v10936_v59, %v5014_v27  ;;  %v5335_v39 = vadd.f32 %v10944_v9, %v5013_v28 }
 0x2dc   :  { %11247 = vst [vmem:[#allocation5_spill] sm:$0xff] %v10976_v30  ;;  %v5575_v40 = vadd.f32 %v8289_v35, %v5332_v26  ;;  %v5573_v30 = vadd.f32 %v5510_v62, %v5330_v20  ;;  %v5334_v56 = vadd.f32 %v10938_v31, %v5012_v16 }
 0x2dd   :  { %v8290_v22 = vpop.f32.mrf.mxu1 }
 0x2de   :  { %v5576_v21 = vadd.f32 %v8290_v22, %v5333_v8  ;;  %v6041_v35 = vadd.f32 %v8321_v51, %v5575_v40  ;;  %v6039_v22 = vadd.f32 %v5976_v37, %v5573_v30  ;;  %v5337_v37 = vadd.f32 %v10940_v53, %v5015_v50 }
 0x2df   :  { %v5513_v18 = vpop.f32.mrf.mxu1  ;;  %v10980_v61 = vpop.f32.mrf.mxu0 }
 0x2e0   :  { %v5574_v23 = vadd.f32 %v5513_v18, %v5331_v52  ;;  %v6042_v17 = vadd.f32 %v10972_v60, %v5576_v21 }
 0x2e1   :  { %v8293_v57 = vpop.f32.mrf.mxu1  ;;  %v10982_v34 = vpop.f32.mrf.mxu0 }
 0x2e2   :  { %v5579_v24 = vadd.f32 %v8293_v57, %v5336_v32  ;;  %v6040_v31 = vadd.f32 %v10978_v0, %v5574_v23 }
 0x2e3   :  { %v5526_v12 = vpop.f32.mrf.mxu1  ;;  %v10984_v1 = vpop.f32.mrf.mxu0 }
 0x2e4   :  { %v5577_v20 = vadd.f32 %v5526_v12, %v5334_v56  ;;  %v6045_v12 = vadd.f32 %v10980_v61, %v5579_v24 }
 0x2e5   :  { %v10986_v63 = vpop.f32.mrf.mxu1  ;;  %v10988_v49 = vpop.f32.mrf.mxu0 }
 0x2e6   :  { %v5580_v60 = vadd.f32 %v10986_v63, %v5337_v37  ;;  %v6043_v28 = vadd.f32 %v10982_v34, %v5577_v20 }
 0x2e7   :  { %v10990_v7 = vpop.f32.mrf.mxu1  ;;  %v10992_v10 = vpop.f32.mrf.mxu0 }
 0x2e8   :  { %v5578_v0 = vadd.f32 %v10990_v7, %v5335_v39  ;;  %v6046_v7 = vadd.f32 %v10984_v1, %v5580_v60 }
 0x2e9   :  { %v10994_v38 = vpop.f32.mrf.mxu1  ;;  %v10996_v33 = vpop.f32.mrf.mxu0 }
 0x2eb   :  { %v10998_v5 = vpop.f32.mrf.mxu1  ;;  %v11000_v58 = vpop.f32.mrf.mxu0 }
 0x2ed   :  { %v11002_v15 = vpop.f32.mrf.mxu1  ;;  %v11010_v48 = vpop.f32.mrf.mxu0 }
 0x2ef   :  { %v11006_v55 = vpop.f32.mrf.mxu1 }
 0x2f1   :  { %v11012_v13 = vpop.f32.mrf.mxu1 }
 0x2f3   :  { %v11017_v46 = vpop.f32.mrf.mxu1  ;;  %v11022_v6 = vpop.f32.mrf.mxu0 }
 0x2f5   :  { %v11024_v4 = vpop.f32.mrf.mxu1  ;;  %v11029_v47 = vpop.f32.mrf.mxu0 }
 0x2f7   :  { %v11033_v2 = vpop.f32.mrf.mxu1  ;;  %v11036_v25 = vpop.f32.mrf.mxu0 }
 0x2f9   :  { %v8353_v36 = vpop.f32.mrf.mxu1  ;;  %v11046_v54 = vpop.f32.mrf.mxu0 }
 0x2fa   :  { %v6363_v62 = vadd.f32 %v8353_v36, %v6041_v35 }
 0x2fb   :  { %v6298_v51 = vpop.f32.mrf.mxu1  ;;  %v8385_v59 = vpop.f32.mrf.mxu0 }
 0x2fc   :  { %v6386_v18 = vadd.f32 %v11043_v44, %v6363_v62  ;;  %v6361_v26 = vadd.f32 %v6298_v51, %v6039_v22  ;;  %v6578_v30 = vadd.f32 %v8385_v59, %v11051_v3 }
 0x2fd   :  { %v8354_v40 = vpop.f32.mrf.mxu1  ;;  %v6569_v41 = vpop.f32.mrf.mxu0 }
 0x2fe   :  { %v6384_v27 = vadd.f32 %v11043_v44, %v6361_v26  ;;  %v6364_v8 = vadd.f32 %v8354_v40, %v6042_v17  ;;  %v6634_v57 = vadd.f32 %v6578_v30, %v6386_v18  ;;  %v6570_v16 = vadd.f32 %v11051_v3, %v6569_v41 }
 0x2ff   :  { %v6301_v52 = vpop.f32.mrf.mxu1  ;;  %v8386_v35 = vpop.f32.mrf.mxu0 }
 0x300   :  { %v6387_v53 = vadd.f32 %v11043_v44, %v6364_v8  ;;  %v6362_v21 = vadd.f32 %v6301_v52, %v6040_v31  ;;  %v6650_v50 = vmax.f32 %v6634_v57, 0.0  ;;  %v6632_v36 = vadd.f32 %v6570_v16, %v6384_v27 }
 0x301   :  { %v6581_v32 = vadd.f32 %v8386_v35, %v11051_v3  ;;  %v8357_v62 = vpop.f32.mrf.mxu1  ;;  %v6572_v22 = vpop.f32.mrf.mxu0  ;;  %v6044_v27 = vadd.f32 %v10988_v49, %v5578_v0 }
 0x302   :  { %v6385_v9 = vadd.f32 %v11043_v44, %v6362_v21  ;;  %v6367_v23 = vadd.f32 %v8357_v62, %v6045_v12  ;;  %6666 = vst [vmem:[%s11177_s7 + $0x10] sm:$0xff] %v6650_v50  ;;  %v6648_v63 = vmax.f32 %v6632_v36, 0.0  ;;  %v6573_v61 = vadd.f32 %v11051_v3, %v6572_v22 }
 0x303   :  { %v6635_v56 = vadd.f32 %v6581_v32, %v6387_v53  ;;  %v6314_v51 = vpop.f32.mrf.mxu1  ;;  %v8389_v26 = vpop.f32.mrf.mxu0 }
 0x304   :  { %v6390_v24 = vadd.f32 %v11043_v44, %v6367_v23  ;;  %v6365_v18 = vadd.f32 %v6314_v51, %v6043_v28  ;;  %6664 = vst [vmem:[%s11177_s7] sm:$0xff] %v6648_v63  ;;  %v6633_v59 = vadd.f32 %v6573_v61, %v6385_v9  ;;  %v6594_v17 = vadd.f32 %v8389_v26, %v11051_v3 }
 0x305   :  { %v6651_v34 = vmax.f32 %v6635_v56, 0.0  ;;  %v8358_v37 = vpop.f32.mrf.mxu1  ;;  %v6585_v20 = vpop.f32.mrf.mxu0  ;;  %v5583_v28 = vadd.f32 %v10994_v38, %v10960_v14  ;;  %v5581_v56 = vadd.f32 %v10998_v5, %v10962_v11  ;;  %v5584_v51 = vadd.f32 %v11002_v15, %v10964_v42 }
 0x306   :  { %v6388_v30 = vadd.f32 %v11043_v44, %v6365_v18  ;;  %v6368_v40 = vadd.f32 %v8358_v37, %v6046_v7  ;;  %v6649_v1 = vmax.f32 %v6633_v59, 0.0  ;;  %v6638_v8 = vadd.f32 %v6594_v17, %v6390_v24 }
 0x307   :  { %6667 = vst [vmem:[%s11177_s7 + $0x18] sm:$0xff] %v6651_v34  ;;  %v6586_v41 = vadd.f32 %v11051_v3, %v6585_v20  ;;  %v6317_v31 = vpop.f32.mrf.mxu1  ;;  %v8390_v16 = vpop.f32.mrf.mxu0  ;;  %v6049_v24 = vadd.f32 %v10992_v10, %v5583_v28  ;;  %v5582_v26 = vadd.f32 %v11006_v55, %v10966_v19  ;;  %v6047_v14 = vadd.f32 %v10996_v33, %v5581_v56 }
 0x308   :  { %v6391_v39 = vadd.f32 %v11043_v44, %v6368_v40  ;;  %v6366_v57 = vadd.f32 %v6317_v31, %v6044_v27  ;;  %6665 = vst [vmem:[%s11177_s7 + $0x8] sm:$0xff] %v6649_v1  ;;  %v6654_v52 = vmax.f32 %v6638_v8, 0.0  ;;  %v6597_v49 = vadd.f32 %v8390_v16, %v11051_v3 }
 0x309   :  { %v6636_v60 = vadd.f32 %v6586_v41, %v6388_v30  ;;  %v8361_v53 = vpop.f32.mrf.mxu1  ;;  %v6588_v35 = vpop.f32.mrf.mxu0  ;;  %v5587_v38 = vadd.f32 %v11012_v13, %v10968_v45  ;;  %v6050_v11 = vadd.f32 %v11000_v58, %v5584_v51  ;;  %v5585_v5 = vadd.f32 %v11017_v46, %v10970_v43  ;;  %v11248_v46 = vld [vmem:[#allocation5_spill] sm:$0xff] }
 0x30a   :  { %v6389_v21 = vadd.f32 %v11043_v44, %v6366_v57  ;;  %6670 = vst [vmem:[%s11177_s7 + $0x30] sm:$0xff] %v6654_v52  ;;  %v6639_v50 = vadd.f32 %v6597_v49, %v6391_v39  ;;  %v6589_v36 = vadd.f32 %v11051_v3, %v6588_v35  ;;  %v6371_v7 = vadd.f32 %v8361_v53, %v6049_v24 }
 0x30b   :  { %v6652_v12 = vmax.f32 %v6636_v60, 0.0  ;;  %v6330_v32 = vpop.f32.mrf.mxu1  ;;  %v6048_v17 = vadd.f32 %v11010_v48, %v5582_v26  ;;  %v5588_v33 = vadd.f32 %v11024_v4, %v10974_v29  ;;  %v6053_v45 = vadd.f32 %v11022_v6, %v5587_v38 }
 0x30c   :  { %v6655_v62 = vmax.f32 %v6639_v50, 0.0  ;;  %v6637_v0 = vadd.f32 %v6589_v36, %v6389_v21  ;;  %v6369_v59 = vadd.f32 %v6330_v32, %v6047_v14  ;;  %v6394_v10 = vadd.f32 %v11043_v44, %v6371_v7 }
 0x30d   :  { %6668 = vst [vmem:[%s11177_s7 + $0x20] sm:$0xff] %v6652_v12  ;;  %v8362_v9 = vpop.f32.mrf.mxu1  ;;  %v5586_v30 = vadd.f32 %v11033_v2, %v11248_v46  ;;  %v6051_v48 = vadd.f32 %v11029_v47, %v5585_v5  ;;  %v6054_v8 = vadd.f32 %v11036_v25, %v5588_v33 }
 0x30e   :  { %6671 = vst [vmem:[%s11177_s7 + $0x38] sm:$0xff] %v6655_v62  ;;  %v6653_v23 = vmax.f32 %v6637_v0, 0.0  ;;  %v6372_v15 = vadd.f32 %v8362_v9, %v6050_v11  ;;  %v6392_v13 = vadd.f32 %v11043_v44, %v6369_v59 }
 0x30f   :  { %v6333_v22 = vpop.f32.mrf.mxu1  ;;  %v6052_v16 = vadd.f32 %v11046_v54, %v5586_v30 }
 0x310   :  { %6669 = vst [vmem:[%s11177_s7 + $0x28] sm:$0xff] %v6653_v23  ;;  %v6370_v58 = vadd.f32 %v6333_v22, %v6048_v17  ;;  %v6395_v27 = vadd.f32 %v11043_v44, %v6372_v15 }
 0x311   :  { %v8365_v63 = vpop.f32.mrf.mxu1 }
 0x312   :  { %v6375_v40 = vadd.f32 %v8365_v63, %v6053_v45  ;;  %v6393_v31 = vadd.f32 %v11043_v44, %v6370_v58 }
 0x313   :  { %v6346_v61 = vpop.f32.mrf.mxu1 }
 0x314   :  { %v6373_v4 = vadd.f32 %v6346_v61, %v6051_v48  ;;  %v6398_v57 = vadd.f32 %v11043_v44, %v6375_v40 }
 0x315   :  { %v8366_v18 = vpop.f32.mrf.mxu1 }
 0x316   :  { %v6376_v60 = vadd.f32 %v8366_v18, %v6054_v8  ;;  %v6396_v21 = vadd.f32 %v11043_v44, %v6373_v4 }
 0x317   :  { %v6349_v34 = vpop.f32.mrf.mxu1 }
 0x318   :  { %v6374_v12 = vadd.f32 %v6349_v34, %v6052_v16  ;;  %v6399_v62 = vadd.f32 %v11043_v44, %v6376_v60 }
 0x319   :  { %v8393_v42 = vpop.f32.mrf.mxu1 }
 0x31a   :  { %v6610_v19 = vadd.f32 %v8393_v42, %v11051_v3  ;;  %v6397_v28 = vadd.f32 %v11043_v44, %v6374_v12 }
 0x31b   :  { %v6601_v55 = vpop.f32.mrf.mxu1 }
 0x31c   :  { %v6642_v37 = vadd.f32 %v6610_v19, %v6394_v10  ;;  %v6602_v43 = vadd.f32 %v11051_v3, %v6601_v55 }
 0x31d   :  { %v8394_v20 = vpop.f32.mrf.mxu1 }
 0x31e   :  { %v6658_v1 = vmax.f32 %v6642_v37, 0.0  ;;  %v6640_v29 = vadd.f32 %v6602_v43, %v6392_v13  ;;  %v6613_v6 = vadd.f32 %v8394_v20, %v11051_v3 }
 0x31f   :  { %v6604_v41 = vpop.f32.mrf.mxu1 }
 0x320   :  { %6674 = vst [vmem:[%s11177_s7 + $0x50] sm:$0xff] %v6658_v1  ;;  %v6656_v2 = vmax.f32 %v6640_v29, 0.0  ;;  %v6643_v39 = vadd.f32 %v6613_v6, %v6395_v27  ;;  %v6605_v47 = vadd.f32 %v11051_v3, %v6604_v41 }
 0x321   :  { %v8397_v52 = vpop.f32.mrf.mxu1 }
 0x322   :  { %6672 = vst [vmem:[%s11177_s7 + $0x40] sm:$0xff] %v6656_v2  ;;  %v6659_v25 = vmax.f32 %v6643_v39, 0.0  ;;  %v6641_v49 = vadd.f32 %v6605_v47, %v6393_v31  ;;  %v6626_v53 = vadd.f32 %v8397_v52, %v11051_v3 }
 0x323   :  { %v6617_v35 = vpop.f32.mrf.mxu1 }
 0x324   :  { %6675 = vst [vmem:[%s11177_s7 + $0x58] sm:$0xff] %v6659_v25  ;;  %v6657_v50 = vmax.f32 %v6641_v49, 0.0  ;;  %v6646_v54 = vadd.f32 %v6626_v53, %v6398_v57  ;;  %v6618_v36 = vadd.f32 %v11051_v3, %v6617_v35 }
 0x325   :  { %v8398_v32 = vpop.f32.mrf.mxu1 }
 0x326   :  { %6673 = vst [vmem:[%s11177_s7 + $0x48] sm:$0xff] %v6657_v50  ;;  %v6662_v0 = vmax.f32 %v6646_v54, 0.0  ;;  %v6644_v9 = vadd.f32 %v6618_v36, %v6396_v21  ;;  %v6629_v23 = vadd.f32 %v8398_v32, %v11051_v3 }
 0x327   :  { %v6620_v22 = vpop.f32.mrf.mxu1 }
 0x328   :  { %6678 = vst [vmem:[%s11177_s7 + $0x70] sm:$0xff] %v6662_v0  ;;  %v6660_v63 = vmax.f32 %v6644_v9, 0.0  ;;  %v6647_v56 = vadd.f32 %v6629_v23, %v6399_v62  ;;  %v6621_v61 = vadd.f32 %v11051_v3, %v6620_v22 }
 0x32a   :  { %6676 = vst [vmem:[%s11177_s7 + $0x60] sm:$0xff] %v6660_v63  ;;  %v6663_v51 = vmax.f32 %v6647_v56, 0.0  ;;  %v6645_v24 = vadd.f32 %v6621_v61, %v6397_v28 }
 0x32c   :  { %6679 = vst [vmem:[%s11177_s7 + $0x78] sm:$0xff] %v6663_v51  ;;  %v6661_v18 = vmax.f32 %v6645_v24, 0.0 }
 0x32e   :  { %6677 = vst [vmem:[%s11177_s7 + $0x68] sm:$0xff] %v6661_v18 }

</bundles_post_ra>
